<compile_context>
chip_gen: v7x
topology: tpu7x:2x2x1
jax: 0.10.0
libtpu: 0.0.40
codegen_flags: <defaults>
</compile_context>

<pallas_src>
import functools

import jax
import jax.numpy as jnp
from jax.experimental import pallas as pl
from jax.experimental.pallas import tpu as pltpu


# ------------------------------ Pallas kernel -------------------------------

def _gsa_kernel(x_ref, pos_ref,
                w1x_ref, w1p_ref, b1_ref,
                w2_ref, b2_ref,
                w3_ref, b3_ref,
                o_ref, acc_ref, *, G, tile_n, T):
    """Fused MLP([256+3,256,512,1024]) + per-cloud max pool.

    grid = (CG, T): cg indexes a group of G whole clouds ("parallel"); t indexes
    the point tile inside each cloud ("arbitrary", running max held in acc_ref).
    Tiling guarantees blocks divide the arrays -> no padded rows, no masks.
    """
    t = pl.program_id(1)
    f_in = x_ref.shape[-1]
    cout = w3_ref.shape[-1]
    m = G * tile_n

    # ---- layer 1: Linear (+ folded eval-mode BN) + ReLU --------------------
    # x part on the MXU (bf16 operands, f32 accumulate); the 3 pos columns as
    # rank-1 broadcast FMAs on the VPU (free under the MXU, no K padding).
    x2 = x_ref[...].reshape(m, f_in).astype(w1x_ref.dtype)
    pos2 = pos_ref[...].reshape(m, 3)
    h = jnp.dot(x2, w1x_ref[...], preferred_element_type=jnp.float32)
    h = h + pos2[:, 0:1] * w1p_ref[0:1, :]
    h = h + pos2[:, 1:2] * w1p_ref[1:2, :]
    h = h + pos2[:, 2:3] * w1p_ref[2:3, :]
    h = jnp.maximum(h + b1_ref[...], 0.0)

    # ---- layer 2: Linear (+ folded BN) + ReLU -------------------------------
    h = jnp.dot(h.astype(w2_ref.dtype), w2_ref[...],
                preferred_element_type=jnp.float32)
    h = jnp.maximum(h + b2_ref[...], 0.0)

    # ---- layer 3: plain last layer of torch_geometric MLP (no BN / no ReLU) --
    h = jnp.dot(h.astype(w3_ref.dtype), w3_ref[...],
                preferred_element_type=jnp.float32)
    h = h + b3_ref[...]

    # ---- per-cloud max over this point tile ---------------------------------
    tile_max = jnp.max(h.reshape(G, tile_n, cout), axis=1)        # (G, cout)

    if T == 1:
        o_ref[0] = tile_max.astype(o_ref.dtype)
    else:
        @pl.when(t == 0)
        def _():
            acc_ref[...] = jnp.full(acc_ref.shape, -jnp.inf, acc_ref.dtype)

        acc_ref[...] = jnp.maximum(acc_ref[...], tile_max)

        @pl.when(t == T - 1)
        def _():
            o_ref[0] = acc_ref[...].astype(o_ref.dtype)


# ------------------------------ tiling helpers -------------------------------

def _largest_divisor_leq(n, cap, multiple_of=1):
    best = None
    for d in range(1, min(n, cap) + 1):
        if n % d == 0 and d % multiple_of == 0:
            best = d
    return best


def _choose_tiling(B, n_per, target_rows):
    """Pick (G clouds per step, tile_n points per step-tile) with exact division."""
    if n_per >= target_rows:
        # split regime: one cloud over T tiles; prefer tile_n multiple of 256, then 16.
        G = 1
        tile_n = n_per                       # fallback: whole cloud in one tile
        for m in (256, 16, 8):
            d = _largest_divisor_leq(n_per, target_rows, m)
            if d is not None:
                tile_n = d
                break
    else:
        # packed regime: whole clouds per step, as many as fit under target_rows.
        tile_n = n_per
        G = _largest_divisor_leq(B, max(1, target_rows // n_per)) or 1
    T = n_per // tile_n
    CG = B // G
    return G, tile_n, T, CG


# ------------------------------- parameter prep ------------------------------

def make_mlp_params(key, channels, norm):
    """torch_geometric.nn.MLP: Lin(+BN+ReLU) per layer, plain last layer."""
    params = []
    n_layers = len(channels) - 1
    for li in range(n_layers):
        cin, cout = channels[li], channels[li + 1]
        key, k1, k2 = jax.random.split(key, 3)
        w = jax.random.normal(k1, (cin, cout), jnp.float32) * (1.0 / float(cin) ** 0.5)
        b = jax.random.normal(k2, (cout,), jnp.float32) * 0.01
        is_last = li == n_layers - 1
        if norm and not is_last:
            # Eval-mode BatchNorm folded into the linear layer
            # (gamma=1, beta=0, running_mean=0, running_var=1).
            gamma = jnp.ones((cout,), jnp.float32)
            beta = jnp.zeros((cout,), jnp.float32)
            run_mean = jnp.zeros((cout,), jnp.float32)
            run_var = jnp.ones((cout,), jnp.float32)
            scale = gamma * jax.lax.rsqrt(run_var + 1e-5)
            w = w * scale[None, :]
            b = (b - run_mean) * scale + beta
        params.append((w, b, "none" if is_last else "relu"))
    return params


def prepare_params(mlp_params, f_in):
    """One-time prep (outside the jitted forward): split w1 into x/pos parts,
    cast matmul weights to bf16, reshape biases to [1, C]."""
    (w1, b1, _), (w2, b2, _), (w3, b3, _) = mlp_params
    assert w1.shape[0] == f_in + 3, "layer-1 expects cat([x, pos]) input"
    return dict(
        w1x=w1[:f_in, :].astype(jnp.bfloat16),          # [f_in, c1]  MXU operand
        w1p=w1[f_in:, :].astype(jnp.float32),           # [3,    c1]  VPU rank-1 rows
        b1=b1.reshape(1, -1).astype(jnp.float32),
        w2=w2.astype(jnp.bfloat16),
        b2=b2.reshape(1, -1).astype(jnp.float32),
        w3=w3.astype(jnp.bfloat16),
        b3=b3.reshape(1, -1).astype(jnp.float32),
    )


# --------------------------------- wrapper -----------------------------------

def global_sa_module_pallas(prep, x, pos, batch, num_clouds, *,
                            target_rows=1024,
                            vmem_limit_bytes=32 * 1024 * 1024):
    """GlobalSAModule forward.

    x:[N,f_in], pos:[N,3], batch:[N] int (contiguous equal-size clouds).
    Returns (x_out:[B,1024], pos_out:[B,3]=0, batch_out:[B]=arange(B)).
    """
    B = int(num_clouds)
    N, f_in = x.shape
    assert N % B == 0, "clouds must have equal point counts"
    n_per = N // B
    assert prep["w1x"].shape[0] == f_in

    # Layout check (only when `batch` is concrete; skipped under jit tracing).
    try:
        expected = jnp.repeat(jnp.arange(B, dtype=batch.dtype), n_per)
        ok = bool(jnp.all(batch == expected))
    except jax.errors.ConcretizationTypeError:
        ok = True
    if not ok:
        raise ValueError("batch must be sorted/contiguous with equal-size clouds")

    G, tile_n, T, CG = _choose_tiling(B, n_per, target_rows)
    c1 = prep["w1x"].shape[1]
    c2 = prep["w2"].shape[1]
    cout = prep["w3"].shape[1]

    # Metadata-only reshapes (no HBM pass): [N, C] -> [B, n_per, C].
    x3 = x.reshape(B, n_per, f_in)
    pos3 = pos.reshape(B, n_per, 3)

    kern = functools.partial(_gsa_kernel, G=G, tile_n=tile_n, T=T)

    out3d = pl.pallas_call(
        kern,
        out_shape=jax.ShapeDtypeStruct((CG, G, cout), jnp.float32),
        grid=(CG, T),
        in_specs=[
            pl.BlockSpec((G, tile_n, f_in), lambda cg, t: (cg, t, 0)),
            pl.BlockSpec((G, tile_n, 3), lambda cg, t: (cg, t, 0)),
            pl.BlockSpec((f_in, c1), lambda cg, t: (0, 0)),
            pl.BlockSpec((3, c1), lambda cg, t: (0, 0)),
            pl.BlockSpec((1, c1), lambda cg, t: (0, 0)),
            pl.BlockSpec((c1, c2), lambda cg, t: (0, 0)),
            pl.BlockSpec((1, c2), lambda cg, t: (0, 0)),
            pl.BlockSpec((c2, cout), lambda cg, t: (0, 0)),
            pl.BlockSpec((1, cout), lambda cg, t: (0, 0)),
        ],
        out_specs=pl.BlockSpec((1, G, cout), lambda cg, t: (cg, 0, 0)),
        scratch_shapes=[pltpu.VMEM((G, cout), jnp.float32)],
        compiler_params=pltpu.CompilerParams(
            dimension_semantics=("parallel", "arbitrary"),
            vmem_limit_bytes=vmem_limit_bytes),
    )(x3, pos3,
      prep["w1x"], prep["w1p"], prep["b1"],
      prep["w2"], prep["b2"],
      prep["w3"], prep["b3"])

    x_out = out3d.reshape(CG * G, cout)          # CG*G == B by construction
    pos_out = jnp.zeros((B, 3), pos.dtype)
    batch_out = jnp.arange(B, dtype=jnp.int32)
    return x_out, pos_out, batch_out


# ------------------------------ pure-JAX reference ---------------------------

def global_sa_module_ref(mlp_params, x, pos, num_clouds):
    (w1, b1, _), (w2, b2, _), (w3, b3, _) = mlp_params
    f_in = x.shape[1]
    h = jnp.dot(x.astype(jnp.bfloat16), w1[:f_in].astype(jnp.bfloat16),
                preferred_element_type=jnp.float32)
    h = h + pos @ w1[f_in:] + b1
    h = jnp.maximum(h, 0.0)
    h = jnp.dot(h.astype(jnp.bfloat16), w2.astype(jnp.bfloat16),
                preferred_element_type=jnp.float32) + b2
    h = jnp.maximum(h, 0.0)
    h = jnp.dot(h.astype(jnp.bfloat16), w3.astype(jnp.bfloat16),
                preferred_element_type=jnp.float32) + b3
    B = num_clouds
    n_per = h.shape[0] // B
    return jnp.max(h.reshape(B, n_per, -1), axis=1)


# ----------------------------------- main ------------------------------------

if __name__ == "__main__":
    key = jax.random.PRNGKey(0)
    num_clouds = 2            # batch size (number of point clouds)
    pts_per_cloud = 64        # points surviving SA1/SA2 per cloud
    f_in = 256                # feature width produced by the previous SA module
    N = num_clouds * pts_per_cloud

    kx, kp, kw = jax.random.split(key, 3)
    x = jax.random.normal(kx, (N, f_in), jnp.float32)
    pos = jax.random.uniform(kp, (N, 3), jnp.float32)
    batch = jnp.repeat(jnp.arange(num_clouds, dtype=jnp.int32), pts_per_cloud)

    # GlobalSAModule(MLP([256 + 3, 256, 512, 1024]))
    params = make_mlp_params(kw, [f_in + 3, 256, 512, 1024], norm=True)
    prep = prepare_params(params, f_in)      # one-time weight prep, outside jit

    ref = global_sa_module_ref(params, x, pos, num_clouds)

    @functools.partial(jax.jit, static_argnames=("target_rows",))
    def run(x, pos, batch, *, target_rows):
        return global_sa_module_pallas(prep, x, pos, batch, num_clouds,
                                       target_rows=target_rows)

    # 1) default packed tiling: G=2 clouds per step, grid=(1,1)
    # 2) forced split tiling (target_rows=32): G=1, tile_n=32, grid=(2,2) ->
    #    exercises the running-max accumulator path across point tiles.
    for target_rows in (1024, 32):
        x_out, pos_out, batch_out = run(x, pos, batch, target_rows=target_rows)
        jax.block_until_ready(x_out)

        assert x_out.shape == (num_clouds, 1024)
        assert pos_out.shape == (num_clouds, 3)
        assert batch_out.shape == (num_clouds,)
        assert bool(jnp.all(jnp.isfinite(x_out)))
        assert bool(jnp.allclose(x_out, ref, rtol=2e-2, atol=2e-2))
        assert bool(jnp.all(pos_out == 0.0))
        assert bool(jnp.all(batch_out == jnp.arange(num_clouds)))

    print("KERNEL_OK")
</pallas_src>

<mosaic_0001>
module attributes {stable_mosaic.version = 11 : i64} {
  func.func @_gsa_kernel(%arg0: i32, %arg1: i32, %arg2: memref<2x64x256xf32, #tpu.memory_space<vmem>>, %arg3: memref<2x64x3xf32, #tpu.memory_space<vmem>>, %arg4: memref<256x256xbf16, #tpu.memory_space<vmem>>, %arg5: memref<3x256xf32, #tpu.memory_space<vmem>>, %arg6: memref<1x256xf32, #tpu.memory_space<vmem>>, %arg7: memref<256x512xbf16, #tpu.memory_space<vmem>>, %arg8: memref<1x512xf32, #tpu.memory_space<vmem>>, %arg9: memref<512x1024xbf16, #tpu.memory_space<vmem>>, %arg10: memref<1x1024xf32, #tpu.memory_space<vmem>>, %arg11: memref<1x2x1024xf32, #tpu.memory_space<vmem>>, %arg12: memref<2x1024xf32, #tpu.memory_space<vmem>>) attributes {dimension_semantics = [#tpu.dimension_semantics<parallel>, #tpu.dimension_semantics<arbitrary>], iteration_bounds = array<i64: 1, 1>, scalar_prefetch = 0 : i64, scratch_operands = 1 : i64, tpu.core_type = #tpu.core_type<tc>, window_params = [{transform_indices = @transform_0, window_bounds = array<i64: 2, 64, 256>}, {transform_indices = @transform_1, window_bounds = array<i64: 2, 64, 3>}, {pipeline_mode = #tpu.pipeline_mode<synchronous>, transform_indices = @transform_2, window_bounds = array<i64: 256, 256>}, {pipeline_mode = #tpu.pipeline_mode<synchronous>, transform_indices = @transform_3, window_bounds = array<i64: 3, 256>}, {pipeline_mode = #tpu.pipeline_mode<synchronous>, transform_indices = @transform_4, window_bounds = array<i64: 1, 256>}, {pipeline_mode = #tpu.pipeline_mode<synchronous>, transform_indices = @transform_5, window_bounds = array<i64: 256, 512>}, {pipeline_mode = #tpu.pipeline_mode<synchronous>, transform_indices = @transform_6, window_bounds = array<i64: 1, 512>}, {pipeline_mode = #tpu.pipeline_mode<synchronous>, transform_indices = @transform_7, window_bounds = array<i64: 512, 1024>}, {pipeline_mode = #tpu.pipeline_mode<synchronous>, transform_indices = @transform_8, window_bounds = array<i64: 1, 1024>}, {transform_indices = @transform_9, window_bounds = array<i64: 1, 2, 1024>}]} {
    %c0 = arith.constant 0 : index
    %c0_0 = arith.constant 0 : index
    %c0_1 = arith.constant 0 : index
    %0 = vector.load %arg2[%c0, %c0_0, %c0_1] : memref<2x64x256xf32, #tpu.memory_space<vmem>>, vector<2x64x256xf32>
    %1 = vector.shape_cast %0 : vector<2x64x256xf32> to vector<128x256xf32>
    %2 = arith.truncf %1 : vector<128x256xf32> to vector<128x256xbf16>
    %c0_2 = arith.constant 0 : index
    %c0_3 = arith.constant 0 : index
    %c0_4 = arith.constant 0 : index
    %3 = vector.load %arg3[%c0_2, %c0_3, %c0_4] : memref<2x64x3xf32, #tpu.memory_space<vmem>>, vector<2x64x3xf32>
    %4 = vector.shape_cast %3 : vector<2x64x3xf32> to vector<128x3xf32>
    %c0_5 = arith.constant 0 : index
    %c0_6 = arith.constant 0 : index
    %5 = vector.load %arg4[%c0_5, %c0_6] : memref<256x256xbf16, #tpu.memory_space<vmem>>, vector<256x256xbf16>
    %cst = arith.constant dense<0.000000e+00> : vector<128x256xf32>
    %6 = tpu.matmul %2, %5, %cst {dimension_numbers = #tpu.dot_dimension_numbers<[1], [0], [0], [1], [0, 0, 1, 1], [], []>} : vector<128x256xbf16>, vector<256x256xbf16>, vector<128x256xf32> -> vector<128x256xf32>
    %7 = vector.extract_strided_slice %4 {offsets = [0, 0], sizes = [128, 1], strides = [1, 1]} : vector<128x3xf32> to vector<128x1xf32>
    %c0_7 = arith.constant 0 : index
    %c0_8 = arith.constant 0 : index
    %8 = vector.load %arg5[%c0_7, %c0_8] : memref<3x256xf32, #tpu.memory_space<vmem>>, vector<1x256xf32>
    %9 = vector.broadcast %7 : vector<128x1xf32> to vector<128x256xf32>
    %10 = vector.broadcast %8 : vector<1x256xf32> to vector<128x256xf32>
    %11 = arith.mulf %9, %10 : vector<128x256xf32>
    %12 = arith.addf %6, %11 : vector<128x256xf32>
    %13 = vector.extract_strided_slice %4 {offsets = [0, 1], sizes = [128, 1], strides = [1, 1]} : vector<128x3xf32> to vector<128x1xf32>
    %c1 = arith.constant 1 : index
    %c0_9 = arith.constant 0 : index
    %14 = vector.load %arg5[%c1, %c0_9] : memref<3x256xf32, #tpu.memory_space<vmem>>, vector<1x256xf32>
    %15 = vector.broadcast %13 : vector<128x1xf32> to vector<128x256xf32>
    %16 = vector.broadcast %14 : vector<1x256xf32> to vector<128x256xf32>
    %17 = arith.mulf %15, %16 : vector<128x256xf32>
    %18 = arith.addf %12, %17 : vector<128x256xf32>
    %19 = vector.extract_strided_slice %4 {offsets = [0, 2], sizes = [128, 1], strides = [1, 1]} : vector<128x3xf32> to vector<128x1xf32>
    %c2 = arith.constant 2 : index
    %c0_10 = arith.constant 0 : index
    %20 = vector.load %arg5[%c2, %c0_10] : memref<3x256xf32, #tpu.memory_space<vmem>>, vector<1x256xf32>
    %21 = vector.broadcast %19 : vector<128x1xf32> to vector<128x256xf32>
    %22 = vector.broadcast %20 : vector<1x256xf32> to vector<128x256xf32>
    %23 = arith.mulf %21, %22 : vector<128x256xf32>
    %24 = arith.addf %18, %23 : vector<128x256xf32>
    %c0_11 = arith.constant 0 : index
    %c0_12 = arith.constant 0 : index
    %25 = vector.load %arg6[%c0_11, %c0_12] : memref<1x256xf32, #tpu.memory_space<vmem>>, vector<1x256xf32>
    %26 = vector.broadcast %25 : vector<1x256xf32> to vector<128x256xf32>
    %27 = arith.addf %24, %26 : vector<128x256xf32>
    %cst_13 = arith.constant 0.000000e+00 : f32
    %28 = vector.broadcast %cst_13 : f32 to vector<128x256xf32>
    %29 = arith.maximumf %27, %28 : vector<128x256xf32>
    %30 = arith.truncf %29 : vector<128x256xf32> to vector<128x256xbf16>
    %c0_14 = arith.constant 0 : index
    %c0_15 = arith.constant 0 : index
    %31 = vector.load %arg7[%c0_14, %c0_15] : memref<256x512xbf16, #tpu.memory_space<vmem>>, vector<256x512xbf16>
    %cst_16 = arith.constant dense<0.000000e+00> : vector<128x512xf32>
    %32 = tpu.matmul %30, %31, %cst_16 {dimension_numbers = #tpu.dot_dimension_numbers<[1], [0], [0], [1], [0, 0, 1, 1], [], []>} : vector<128x256xbf16>, vector<256x512xbf16>, vector<128x512xf32> -> vector<128x512xf32>
    %c0_17 = arith.constant 0 : index
    %c0_18 = arith.constant 0 : index
    %33 = vector.load %arg8[%c0_17, %c0_18] : memref<1x512xf32, #tpu.memory_space<vmem>>, vector<1x512xf32>
    %34 = vector.broadcast %33 : vector<1x512xf32> to vector<128x512xf32>
    %35 = arith.addf %32, %34 : vector<128x512xf32>
    %cst_19 = arith.constant 0.000000e+00 : f32
    %36 = vector.broadcast %cst_19 : f32 to vector<128x512xf32>
    %37 = arith.maximumf %35, %36 : vector<128x512xf32>
    %38 = arith.truncf %37 : vector<128x512xf32> to vector<128x512xbf16>
    %c0_20 = arith.constant 0 : index
    %c0_21 = arith.constant 0 : index
    %39 = vector.load %arg9[%c0_20, %c0_21] : memref<512x1024xbf16, #tpu.memory_space<vmem>>, vector<512x1024xbf16>
    %cst_22 = arith.constant dense<0.000000e+00> : vector<128x1024xf32>
    %40 = tpu.matmul %38, %39, %cst_22 {dimension_numbers = #tpu.dot_dimension_numbers<[1], [0], [0], [1], [0, 0, 1, 1], [], []>} : vector<128x512xbf16>, vector<512x1024xbf16>, vector<128x1024xf32> -> vector<128x1024xf32>
    %c0_23 = arith.constant 0 : index
    %c0_24 = arith.constant 0 : index
    %41 = vector.load %arg10[%c0_23, %c0_24] : memref<1x1024xf32, #tpu.memory_space<vmem>>, vector<1x1024xf32>
    %42 = vector.broadcast %41 : vector<1x1024xf32> to vector<128x1024xf32>
    %43 = arith.addf %40, %42 : vector<128x1024xf32>
    %44 = vector.shape_cast %43 : vector<128x1024xf32> to vector<2x64x1024xf32>
    %cst_25 = arith.constant dense<0xFF800000> : vector<2x1024xf32>
    %45 = vector.multi_reduction <maximumf>, %44, %cst_25 [1] : vector<2x64x1024xf32> to vector<2x1024xf32>
    %c0_26 = arith.constant 0 : index
    %c0_27 = arith.constant 0 : index
    %c0_28 = arith.constant 0 : index
    %46 = vector.load %arg11[%c0_26, %c0_27, %c0_28] : memref<1x2x1024xf32, #tpu.memory_space<vmem>>, vector<1x2x1024xf32>
    %47 = vector.shape_cast %46 : vector<1x2x1024xf32> to vector<2x1024xf32>
    %48 = vector.shape_cast %45 : vector<2x1024xf32> to vector<1x2x1024xf32>
    tpu.vector_store %arg11[%c0_26, %c0_27, %c0_28], %48 {strides = array<i32>} : memref<1x2x1024xf32, #tpu.memory_space<vmem>>, vector<1x2x1024xf32>,
    return
  }
  func.func @transform_0(%arg0: i32, %arg1: i32) -> (i32, i32, i32) {
    %c0_i32 = arith.constant 0 : i32
    %c0_i32_0 = arith.constant 0 : i32
    return %arg0, %arg1, %c0_i32 : i32, i32, i32
  }
  func.func @transform_1(%arg0: i32, %arg1: i32) -> (i32, i32, i32) {
    %c0_i32 = arith.constant 0 : i32
    %c0_i32_0 = arith.constant 0 : i32
    return %arg0, %arg1, %c0_i32 : i32, i32, i32
  }
  func.func @transform_2(%arg0: i32, %arg1: i32) -> (i32, i32) {
    %c0_i32 = arith.constant 0 : i32
    %c0_i32_0 = arith.constant 0 : i32
    %c0_i32_1 = arith.constant 0 : i32
    return %c0_i32, %c0_i32_0 : i32, i32
  }
  func.func @transform_3(%arg0: i32, %arg1: i32) -> (i32, i32) {
    %c0_i32 = arith.constant 0 : i32
    %c0_i32_0 = arith.constant 0 : i32
    %c0_i32_1 = arith.constant 0 : i32
    return %c0_i32, %c0_i32_0 : i32, i32
  }
  func.func @transform_4(%arg0: i32, %arg1: i32) -> (i32, i32) {
    %c0_i32 = arith.constant 0 : i32
    %c0_i32_0 = arith.constant 0 : i32
    %c0_i32_1 = arith.constant 0 : i32
    return %c0_i32, %c0_i32_0 : i32, i32
  }
  func.func @transform_5(%arg0: i32, %arg1: i32) -> (i32, i32) {
    %c0_i32 = arith.constant 0 : i32
    %c0_i32_0 = arith.constant 0 : i32
    %c0_i32_1 = arith.constant 0 : i32
    return %c0_i32, %c0_i32_0 : i32, i32
  }
  func.func @transform_6(%arg0: i32, %arg1: i32) -> (i32, i32) {
    %c0_i32 = arith.constant 0 : i32
    %c0_i32_0 = arith.constant 0 : i32
    %c0_i32_1 = arith.constant 0 : i32
    return %c0_i32, %c0_i32_0 : i32, i32
  }
  func.func @transform_7(%arg0: i32, %arg1: i32) -> (i32, i32) {
    %c0_i32 = arith.constant 0 : i32
    %c0_i32_0 = arith.constant 0 : i32
    %c0_i32_1 = arith.constant 0 : i32
    return %c0_i32, %c0_i32_0 : i32, i32
  }
  func.func @transform_8(%arg0: i32, %arg1: i32) -> (i32, i32) {
    %c0_i32 = arith.constant 0 : i32
    %c0_i32_0 = arith.constant 0 : i32
    %c0_i32_1 = arith.constant 0 : i32
    return %c0_i32, %c0_i32_0 : i32, i32
  }
  func.func @transform_9(%arg0: i32, %arg1: i32) -> (i32, i32, i32) {
    %c0_i32 = arith.constant 0 : i32
    %c0_i32_0 = arith.constant 0 : i32
    %c0_i32_1 = arith.constant 0 : i32
    return %arg0, %c0_i32, %c0_i32_0 : i32, i32, i32
  }
}

</mosaic_0001>

<bundles_post_ra>
// kernel: run.1
= control target key start
LH: loop header
LB: loop body
LE: loop exit
PB: predicated region body
PF: predicated region fallthrough
CT: control target
= control target key end

     0   :  { %v5283_v2 = vmov 1   ;;  %v5284_v3 = vmov 2   ;;  %v5285_v28 = vmov 0   ;;  %s8503_s0 = inlined_call_operand.vmem [shape: f32[2,64,256], index: 0, kind: input, shape index: {}]   ;;  %s8504_s1 = inlined_call_operand.vmem [shape: f32[2,64,3], index: 1, kind: input, shape index: {}]   ;;  %s8505_s2 = inlined_call_operand.vmem [shape: bf16[256,256], index: 2, kind: input, shape index: {}]   ;;  %s8506_s3 = inlined_call_operand.vmem [shape: f32[3,256], index: 3, kind: input, shape index: {}]   ;;  %s8507_s4 = inlined_call_operand.vmem [shape: f32[1,256], index: 4, kind: input, shape index: {}]   ;;  %s8508_s5 = inlined_call_operand.vmem [shape: bf16[256,512], index: 5, kind: input, shape index: {}]   ;;  %s8509_s6 = inlined_call_operand.vmem [shape: f32[1,512], index: 6, kind: input, shape index: {}]   ;;  %s8510_s7 = inlined_call_operand.vmem [shape: bf16[512,1024], index: 7, kind: input, shape index: {}]   ;;  %s8511_s8 = inlined_call_operand.vmem [shape: f32[1,1024], index: 8, kind: input, shape index: {}]   ;;  %s8512_s9 = inlined_call_operand.hbm [shape: f32[1,2,1024], index: 9, kind: output, shape index: {}]  }
   0x1   :  { %v5115_v0 = vld [vmem:[%s8505_s2 + $0x4] ss:$8 sps:$4 sm:$0xff]   ;;  %v5117_v1 = vld [vmem:[%s8505_s2] ss:$8 sps:$4 sm:$0xff]   ;;  %5087 = vset.pattern.permute.xlu1 %v5283_v2  ;;  %5088 = vset.pattern.permute.xlu0 %v5284_v3  ;;  %v5118_v4 = vld [vmem:[%s8505_s2 + $0x14] ss:$8 sps:$4 sm:$0xff]  }
   0x2   :  { %413 = vmatprep.subr.bf16.mxu0 %v5115_v0  ;;  %v5120_v5 = vld [vmem:[%s8505_s2 + $0x10] ss:$8 sps:$4 sm:$0xff]   ;;  %v5121_v6 = vld [vmem:[%s8505_s2 + $0x24] ss:$8 sps:$4 sm:$0xff]   ;;  %v5123_v7 = vld [vmem:[%s8505_s2 + $0x20] ss:$8 sps:$4 sm:$0xff]  }
   0x3   :  { %414 = vmatpush1.bf16.msra.mxu0 %v5117_v1  ;;  %v5124_v8 = vld [vmem:[%s8505_s2 + $0x34] ss:$8 sps:$4 sm:$0xff]   ;;  %v5126_v9 = vld [vmem:[%s8505_s2 + $0x30] ss:$8 sps:$4 sm:$0xff]   ;;  %v5127_v10 = vld [vmem:[%s8505_s2 + $0x44] ss:$8 sps:$4 sm:$0xff]  }
   0x4   :  { %415 = vmatprep.subr.bf16.mxu0 %v5118_v4  ;;  %v5129_v11 = vld [vmem:[%s8505_s2 + $0x40] ss:$8 sps:$4 sm:$0xff]   ;;  %v5130_v12 = vld [vmem:[%s8505_s2 + $0x54] ss:$8 sps:$4 sm:$0xff]   ;;  %v5132_v13 = vld [vmem:[%s8505_s2 + $0x50] ss:$8 sps:$4 sm:$0xff]  }
   0x5   :  { %v5133_v14 = vld [vmem:[%s8505_s2 + $0x64] ss:$8 sps:$4 sm:$0xff]   ;;  %v36_v17 = vld [vmem:[%s8503_s0 + $0x18] sm:$0xff]  ;;  %v5135_v18 = vld [vmem:[%s8505_s2 + $0x60] ss:$8 sps:$4 sm:$0xff]  }
   0x6   :  { %v81_v15 = vld [vmem:[%s8504_s1] sm:$0xff]  ;;  %v34_v16 = vld [vmem:[%s8503_s0 + $0x8] sm:$0xff]  ;;  %v5136_v21 = vld [vmem:[%s8505_s2 + $0x74] ss:$8 sps:$4 sm:$0xff]  }
   0x7   :  { %416 = vmatpush1.bf16.msra.mxu0 %v5120_v5  ;;  %529 = vperm.xlu1 %5087, %v81_v15   ;;  %v66_v19 = vpack.c.bf16 %v36_v17, %v34_v16  ;;  %v82_v20 = vld [vmem:[%s8504_s1 + $0x8] sm:$0xff]  ;;  %v83_v22 = vld [vmem:[%s8504_s1 + $0x10] sm:$0xff]  ;;  %v5409_v25 = vld [vmem:[%s8504_s1 + $0x20] sm:$0xff] }
   0x8   :  { %417 = vmatprep.subr.bf16.mxu0 %v5121_v6  ;;  %670 = vperm.xlu0 %5088, %v81_v15   ;;  %v5138_v23 = vld [vmem:[%s8505_s2 + $0x70] ss:$8 sps:$4 sm:$0xff]   ;;  %v5139_v24 = vld [vmem:[%s8505_s2 + $0x84] ss:$8 sps:$4 sm:$0xff]   ;;  %v5141_v26 = vld [vmem:[%s8505_s2 + $0x80] ss:$8 sps:$4 sm:$0xff]  }
   0x9   :  { %445 = vmatprep.mubr.bf16.mxu0 %v66_v19  ;;  %v5142_v27 = vld [vmem:[%s8505_s2 + $0x94] ss:$8 sps:$4 sm:$0xff]   ;;  %v5144_v29 = vld [vmem:[%s8505_s2 + $0x90] ss:$8 sps:$4 sm:$0xff]   ;;  %v5145_v30 = vld [vmem:[%s8505_s2 + $0xa4] ss:$8 sps:$4 sm:$0xff]  }
   0xa   :  { %v5147_v31 = vld [vmem:[%s8505_s2 + $0xa0] ss:$8 sps:$4 sm:$0xff]   ;;  %v5148_v32 = vld [vmem:[%s8505_s2 + $0xb4] ss:$8 sps:$4 sm:$0xff]   ;;  %v5150_v34 = vld [vmem:[%s8505_s2 + $0xb0] ss:$8 sps:$4 sm:$0xff]  }
   0xb   :  { %418 = vmatpush1.bf16.msra.mxu0 %v5123_v7  ;;  %533 = vperm.xlu1 %5087, %v82_v20   ;;  %v84_v33 = vld [vmem:[%s8504_s1 + $0x18] sm:$0xff]  ;;  %v5151_v35 = vld [vmem:[%s8505_s2 + $0xc4] ss:$8 sps:$4 sm:$0xff]   ;;  %v5153_v36 = vld [vmem:[%s8505_s2 + $0xc0] ss:$8 sps:$4 sm:$0xff]  }
   0xc   :  { %419 = vmatprep.subr.bf16.mxu0 %v5124_v8  ;;  %678 = vperm.xlu0 %5088, %v83_v22   ;;  %v5154_v37 = vld [vmem:[%s8505_s2 + $0xd4] ss:$8 sps:$4 sm:$0xff]   ;;  %v86_v38 = vld [vmem:[%s8504_s1 + $0x28] sm:$0xff]  ;;  %v5156_v39 = vld [vmem:[%s8505_s2 + $0xd0] ss:$8 sps:$4 sm:$0xff]  }
   0xd   :  { %v5157_v40 = vld [vmem:[%s8505_s2 + $0xe4] ss:$8 sps:$4 sm:$0xff]   ;;  %v5462_v41 = vld [vmem:[%s8504_s1 + $0x38] sm:$0xff]  ;;  %v5159_v43 = vld [vmem:[%s8505_s2 + $0xe0] ss:$8 sps:$4 sm:$0xff]  }
   0xe   :  { %v5467_v42 = vld [vmem:[%s8504_s1 + $0x48] sm:$0xff]  ;;  %v5160_v44 = vld [vmem:[%s8505_s2 + $0xf4] ss:$8 sps:$4 sm:$0xff]   ;;  %v5162_v47 = vld [vmem:[%s8505_s2 + $0xf0] ss:$8 sps:$4 sm:$0xff]  }
   0xf   :  { %420 = vmatpush1.bf16.msra.mxu0 %v5126_v9  ;;  %5089 = vset.pattern.permute.xlu1 %v5284_v3  ;;  %v5163_v45 = vld [vmem:[%s8508_s5 + $0x4] ss:$16 sps:$4 sm:$0xff]   ;;  %v5484_v46 = vld [vmem:[%s8504_s1 + $0x58] sm:$0xff]  ;;  %v38_v50 = vld [vmem:[%s8503_s0 + $0x28] sm:$0xff] }
  0x10   :  { %421 = vmatprep.subr.bf16.mxu0 %v5127_v10  ;;  %686 = vperm.xlu0 %5088, %v5409_v25   ;;  %v33_v48 = vld [vmem:[%s8503_s0] sm:$0xff]  ;;  %v35_v49 = vld [vmem:[%s8503_s0 + $0x10] sm:$0xff]  ;;  %v40_v51 = vld [vmem:[%s8503_s0 + $0x38] sm:$0xff] }
  0x11   :  { %674 = vperm.xlu1 %5089, %v82_v20   ;;  %1306 = vmatprep.subr.bf16.mxu1 %v5163_v45  ;;  %v5167_v52 = vld [vmem:[%s8508_s5 + $0xc] ss:$16 sps:$4 sm:$0xff]   ;;  %v5168_v53 = vld [vmem:[%s8508_s5] ss:$16 sps:$4 sm:$0xff]   ;;  %v5169_v54 = vld [vmem:[%s8508_s5 + $0x24] ss:$16 sps:$4 sm:$0xff]  }
  0x13   :  { %422 = vmatpush1.bf16.msra.mxu0 %v5129_v11 }
  0x14   :  { %423 = vmatprep.subr.bf16.mxu0 %v5130_v12  ;;  %5095 = vset.pattern.permute.xlu0 %v5285_v28 }
  0x15   :  { %5090 = vset.pattern.permute.xlu1 %v5285_v28  ;;  %132 = vperm.xlu0 %5095, %v81_v15  }
  0x16   :  { %142 = vperm.xlu1 %5090, %v83_v22  }
  0x17   :  { %424 = vmatpush1.bf16.msra.mxu0 %v5132_v13 }
  0x18   :  { %425 = vmatprep.subr.bf16.mxu0 %v5133_v14 }
  0x19   :  { %137 = vperm.xlu0 %5095, %v82_v20  }
  0x1a   :  { %5091 = vset.pattern.permute.xlu1 %v5283_v2 }
  0x1b   :  { %426 = vmatpush1.bf16.msra.mxu0 %v5135_v18  ;;  %537 = vperm.xlu1 %5091, %v83_v22  }
  0x1c   :  { %427 = vmatprep.subr.bf16.mxu0 %v5136_v21 }
  0x1d   :  { %147 = vperm.xlu0 %5095, %v84_v33  }
  0x1f   :  { %428 = vmatpush1.bf16.msra.mxu0 %v5138_v23  ;;  %541 = vperm.xlu1 %5091, %v84_v33  }
  0x20   :  { %429 = vmatprep.subr.bf16.mxu0 %v5139_v24 }
  0x21   :  { %157 = vperm.xlu0 %5095, %v86_v38  }
  0x23   :  { %430 = vmatpush1.bf16.msra.mxu0 %v5141_v26  ;;  %5092 = vset.pattern.permute.xlu1 %v5284_v3 }
  0x24   :  { %431 = vmatprep.subr.bf16.mxu0 %v5142_v27  ;;  %682 = vperm.xlu1 %5092, %v84_v33  }
  0x25   :  { %167 = vperm.xlu0 %5095, %v5462_v41  }
  0x27   :  { %432 = vmatpush1.bf16.msra.mxu0 %v5144_v29 }
  0x28   :  { %433 = vmatprep.subr.bf16.mxu0 %v5145_v30  ;;  %5093 = vset.pattern.permute.xlu1 %v5285_v28 }
  0x29   :  { %152 = vperm.xlu1 %5093, %v5409_v25   ;;  %177 = vperm.xlu0 %5095, %v5467_v42  }
  0x2b   :  { %434 = vmatpush1.bf16.msra.mxu0 %v5147_v31 }
  0x2c   :  { %435 = vmatprep.subr.bf16.mxu0 %v5148_v32 }
  0x2d   :  { %5094 = vset.pattern.permute.xlu1 %v5283_v2  ;;  %187 = vperm.xlu0 %5095, %v5484_v46  }
  0x2e   :  { %545 = vperm.xlu1 %5094, %v5409_v25  }
  0x2f   :  { %436 = vmatpush1.bf16.msra.mxu0 %v5150_v34 }
  0x30   :  { %437 = vmatprep.subr.bf16.mxu0 %v5151_v35 }
  0x33   :  { %438 = vmatpush1.bf16.msra.mxu0 %v5153_v36 }
  0x34   :  { %439 = vmatprep.subr.bf16.mxu0 %v5154_v37 }
  0x37   :  { %440 = vmatpush1.bf16.msra.mxu0 %v5156_v39 }
  0x38   :  { %441 = vmatprep.subr.bf16.mxu0 %v5157_v40 }
  0x3b   :  { %442 = vmatpush1.bf16.msra.mxu0 %v5159_v43 }
  0x3c   :  { %443 = vmatprep.subr.bf16.mxu0 %v5160_v44 }
  0x3d   :  { %14 = vsyncpa [#allocation4], 0  ;;  %v65_v55 = vpack.c.bf16 %v35_v49, %v33_v48  ;;  %1307 = vmatpush1.bf16.msra.mxu1 %v5168_v53  ;;  %v68_v56 = vpack.c.bf16 %v40_v51, %v38_v50  ;;  %v5165_v57 = vld [vmem:[%s8508_s5 + $0x8] ss:$16 sps:$4 sm:$0xff]   ;;  %549 = vperm.xlu1 %5094, %v86_v38   ;;  %v5173_v58 = vld [vmem:[%s8508_s5 + $0x2c] ss:$16 sps:$4 sm:$0xff]  }
  0x3e   :  { %1308 = vmatprep.subr.bf16.mxu1 %v5169_v54  ;;  %v87_v59 = vld [vmem:[%s8504_s1 + $0x30] sm:$0xff]  ;;  %5104 = vset.pattern.permute.xlu0 %v5284_v3  ;;  %v37_v62 = vld [vmem:[%s8503_s0 + $0x20] sm:$0xff]  ;;  %v5171_v0 = vld [vmem:[%s8508_s5 + $0x28] ss:$16 sps:$4 sm:$0xff]   ;;  %vm4407_vm0 = vcmask 1041409   ;;  %vm4409_vm1 = vcmask 1043459  }
  0x3f   :  { %444 = vmatpush1.bf16.msra.mxu0 %v5162_v47  ;;  %v5174_v60 = vld [vmem:[%s8508_s5 + $0x20] ss:$16 sps:$4 sm:$0xff]   ;;  %694 = vperm.xlu0 %5104, %v87_v59   ;;  %v5175_v61 = vld [vmem:[%s8508_s5 + $0x44] ss:$16 sps:$4 sm:$0xff]   ;;  %v42_v1 = vld [vmem:[%s8503_s0 + $0x48] sm:$0xff]  ;;  %vm4411_vm2 = vcmask 1045509  }
  0x40   :  { %1419 = vmatprep.subr.bf16.mxu0 %v5167_v52  ;;  %v39_v63 = vld [vmem:[%s8503_s0 + $0x30] sm:$0xff]  ;;  %v44_v4 = vld [vmem:[%s8503_s0 + $0x58] sm:$0xff]  ;;  %v5552_v6 = vld [vmem:[%s8504_s1 + $0x40] sm:$0xff]  ;;  %vm4413_vm3 = vcmask 1047559  }
  0x41   :  { %5096 = vset.pattern.permute.xlu1 %v5284_v3  ;;  %v5179_v5 = vld [vmem:[%s8508_s5 + $0x4c] ss:$16 sps:$4 sm:$0xff]   ;;  %1309 = vmatpush1.bf16.msra.mxu1 %v5174_v60  ;;  %v5180_v7 = vld [vmem:[%s8508_s5 + $0x40] ss:$16 sps:$4 sm:$0xff]   ;;  %v67_v8 = vpack.c.bf16 %v39_v63, %v37_v62  ;;  %v70_v9 = vpack.c.bf16 %v44_v4, %v42_v1  ;;  %v5177_v10 = vld [vmem:[%s8508_s5 + $0x48] ss:$16 sps:$4 sm:$0xff]  }
  0x42   :  { %446 = vmatmul.mubr.bf16.vlgmr.msra.gmra.mrb[0].mxu0 %v65_v55  ;;  %690 = vperm.xlu1 %5096, %v86_v38   ;;  %v5181_v11 = vld [vmem:[%s8508_s5 + $0x64] ss:$16 sps:$4 sm:$0xff]   ;;  %v5185_v12 = vld [vmem:[%s8508_s5 + $0x6c] ss:$16 sps:$4 sm:$0xff]   ;;  %v5186_v13 = vld [vmem:[%s8508_s5 + $0x60] ss:$16 sps:$4 sm:$0xff]  }
  0x43   :  { %455 = vmatprep.mubr.bf16.mxu0 %v68_v56  ;;  %1420 = vmatpush1.bf16.msra.mxu0 %v5165_v57  ;;  %v5574_v14 = vld [vmem:[%s8504_s1 + $0x50] sm:$0xff]  ;;  %v41_v16 = vld [vmem:[%s8503_s0 + $0x40] sm:$0xff]  ;;  %v46_v18 = vld [vmem:[%s8503_s0 + $0x68] sm:$0xff] }
  0x44   :  { %1421 = vmatprep.subr.bf16.mxu0 %v5173_v58  ;;  %702 = vperm.xlu0 %5104, %v5552_v6   ;;  %v5187_v15 = vld [vmem:[%s8508_s5 + $0x84] ss:$16 sps:$4 sm:$0xff]   ;;  %v48_v19 = vld [vmem:[%s8503_s0 + $0x78] sm:$0xff]  ;;  %v5192_v22 = vld [vmem:[%s8508_s5 + $0x80] ss:$16 sps:$4 sm:$0xff]  }
  0x45   :  { %1310 = vmatprep.subr.bf16.mxu1 %v5175_v61  ;;  %v43_v17 = vld [vmem:[%s8503_s0 + $0x50] sm:$0xff]  ;;  %v5183_v20 = vld [vmem:[%s8508_s5 + $0x68] ss:$16 sps:$4 sm:$0xff]   ;;  %v5191_v21 = vld [vmem:[%s8508_s5 + $0x8c] ss:$16 sps:$4 sm:$0xff]   ;;  %v72_v25 = vpack.c.bf16 %v48_v19, %v46_v18 }
  0x46   :  { %5097 = vset.pattern.permute.xlu1 %v5285_v28  ;;  %1311 = vmatpush1.bf16.msra.mxu1 %v5180_v7  ;;  %v69_v23 = vpack.c.bf16 %v43_v17, %v41_v16  ;;  %v5605_v24 = vld [vmem:[%s8504_s1 + $0x60] sm:$0xff]  ;;  %v5189_v27 = vld [vmem:[%s8508_s5 + $0x88] ss:$16 sps:$4 sm:$0xff]   ;;  %v5197_v29 = vld [vmem:[%s8508_s5 + $0xac] ss:$16 sps:$4 sm:$0xff]  }
  0x47   :  { %1422 = vmatpush1.bf16.msra.mxu0 %v5171_v0  ;;  %162 = vperm.xlu1 %5097, %v87_v59   ;;  %v5193_v26 = vld [vmem:[%s8508_s5 + $0xa4] ss:$16 sps:$4 sm:$0xff]   ;;  %v5198_v31 = vld [vmem:[%s8508_s5 + $0xa0] ss:$16 sps:$4 sm:$0xff]   ;;  %v50_v33 = vld [vmem:[%s8503_s0 + $0x88] sm:$0xff] }
  0x48   :  { %1423 = vmatprep.subr.bf16.mxu0 %v5179_v5  ;;  %710 = vperm.xlu0 %5104, %v5574_v14   ;;  %v45_v30 = vld [vmem:[%s8503_s0 + $0x60] sm:$0xff]  ;;  %v47_v32 = vld [vmem:[%s8503_s0 + $0x70] sm:$0xff]  ;;  %v52_v35 = vld [vmem:[%s8503_s0 + $0x98] sm:$0xff] }
  0x49   :  { %1312 = vmatprep.subr.bf16.mxu1 %v5181_v11  ;;  %v5199_v34 = vld [vmem:[%s8508_s5 + $0xc4] ss:$16 sps:$4 sm:$0xff]   ;;  %v5639_v36 = vld [vmem:[%s8504_s1 + $0x68] sm:$0xff]  ;;  %v71_v39 = vpack.c.bf16 %v47_v32, %v45_v30  ;;  %v5652_v40 = vld [vmem:[%s8504_s1 + $0x78] sm:$0xff]  ;;  %v74_v44 = vpack.c.bf16 %v52_v35, %v50_v33 }
  0x4a   :  { %456 = vmatmul.mubr.bf16.gmra.mrb[4].mxu0 %v67_v8  ;;  %1313 = vmatpush1.bf16.msra.mxu1 %v5186_v13  ;;  %v5195_v37 = vld [vmem:[%s8508_s5 + $0xa8] ss:$16 sps:$4 sm:$0xff]   ;;  %v5203_v38 = vld [vmem:[%s8508_s5 + $0xcc] ss:$16 sps:$4 sm:$0xff]   ;;  %v5204_v43 = vld [vmem:[%s8508_s5 + $0xc0] ss:$16 sps:$4 sm:$0xff]  }
  0x4b   :  { %465 = vmatprep.mubr.bf16.mxu0 %v70_v9  ;;  %1424 = vmatpush1.bf16.msra.mxu0 %v5177_v10  ;;  %v5205_v45 = vld [vmem:[%s8508_s5 + $0xe4] ss:$16 sps:$4 sm:$0xff]   ;;  %v5201_v47 = vld [vmem:[%s8508_s5 + $0xc8] ss:$16 sps:$4 sm:$0xff]   ;;  %v5209_v49 = vld [vmem:[%s8508_s5 + $0xec] ss:$16 sps:$4 sm:$0xff]  }
  0x4c   :  { %1425 = vmatprep.subr.bf16.mxu0 %v5185_v12  ;;  %5098 = vset.pattern.permute.xlu1 %v5283_v2  ;;  %v49_v48 = vld [vmem:[%s8503_s0 + $0x80] sm:$0xff]  ;;  %v54_v50 = vld [vmem:[%s8503_s0 + $0xa8] sm:$0xff]  ;;  %v56_v52 = vld [vmem:[%s8503_s0 + $0xb8] sm:$0xff] }
  0x4d   :  { %1314 = vmatprep.subr.bf16.mxu1 %v5187_v15  ;;  %553 = vperm.xlu1 %5098, %v87_v59   ;;  %v5210_v51 = vld [vmem:[%s8508_s5 + $0xe0] ss:$16 sps:$4 sm:$0xff]   ;;  %v5207_v53 = vld [vmem:[%s8508_s5 + $0xe8] ss:$16 sps:$4 sm:$0xff]   ;;  %v5211_v54 = vld [vmem:[%s8508_s5 + $0x104] ss:$16 sps:$4 sm:$0xff]   ;;  %v76_v58 = vpack.c.bf16 %v56_v52, %v54_v50 }
  0x4e   :  { %718 = vperm.xlu0 %5104, %v5605_v24   ;;  %1315 = vmatpush1.bf16.msra.mxu1 %v5192_v22  ;;  %v5695_v55 = vld [vmem:[%s8504_s1 + $0x70] sm:$0xff]  ;;  %v5215_v56 = vld [vmem:[%s8508_s5 + $0x10c] ss:$16 sps:$4 sm:$0xff]   ;;  %v5213_v60 = vld [vmem:[%s8508_s5 + $0x108] ss:$16 sps:$4 sm:$0xff]  }
  0x4f   :  { %1426 = vmatpush1.bf16.msra.mxu0 %v5183_v20  ;;  %1316 = vmatprep.subr.bf16.mxu1 %v5193_v26  ;;  %v5216_v59 = vld [vmem:[%s8508_s5 + $0x100] ss:$16 sps:$4 sm:$0xff]   ;;  %v5217_v61 = vld [vmem:[%s8508_s5 + $0x124] ss:$16 sps:$4 sm:$0xff]   ;;  %v5221_v62 = vld [vmem:[%s8508_s5 + $0x12c] ss:$16 sps:$4 sm:$0xff]  }
  0x50   :  { %1427 = vmatprep.subr.bf16.mxu0 %v5191_v21  ;;  %v53_v63 = vld [vmem:[%s8503_s0 + $0xa0] sm:$0xff]  ;;  %v55_v0 = vld [vmem:[%s8503_s0 + $0xb0] sm:$0xff]  ;;  %v58_v1 = vld [vmem:[%s8503_s0 + $0xc8] sm:$0xff] }
  0x51   :  { %557 = vperm.xlu1 %5098, %v5462_v41   ;;  %v5222_v4 = vld [vmem:[%s8508_s5 + $0x120] ss:$16 sps:$4 sm:$0xff]   ;;  %v60_v5 = vld [vmem:[%s8503_s0 + $0xd8] sm:$0xff]  ;;  %v5223_v7 = vld [vmem:[%s8508_s5 + $0x144] ss:$16 sps:$4 sm:$0xff]   ;;  %v75_v9 = vpack.c.bf16 %v55_v0, %v53_v63 }
  0x52   :  { %466 = vmatmul.mubr.bf16.gmra.mrb[8].mxu0 %v69_v23  ;;  %5109 = vset.pattern.permute.xlu0 %v5285_v28  ;;  %v5227_v8 = vld [vmem:[%s8508_s5 + $0x14c] ss:$16 sps:$4 sm:$0xff]   ;;  %v78_v10 = vpack.c.bf16 %v60_v5, %v58_v1  ;;  %v5225_v11 = vld [vmem:[%s8508_s5 + $0x148] ss:$16 sps:$4 sm:$0xff]   ;;  %v5228_v12 = vld [vmem:[%s8508_s5 + $0x140] ss:$16 sps:$4 sm:$0xff]  }
  0x53   :  { %475 = vmatprep.mubr.bf16.mxu0 %v72_v25  ;;  %1428 = vmatpush1.bf16.msra.mxu0 %v5189_v27  ;;  %v5229_v13 = vld [vmem:[%s8508_s5 + $0x164] ss:$16 sps:$4 sm:$0xff]   ;;  %v5233_v15 = vld [vmem:[%s8508_s5 + $0x16c] ss:$16 sps:$4 sm:$0xff]   ;;  %v5234_v20 = vld [vmem:[%s8508_s5 + $0x160] ss:$16 sps:$4 sm:$0xff]  }
  0x54   :  { %197 = vperm.xlu0 %5109, %v5639_v36   ;;  %1429 = vmatprep.subr.bf16.mxu0 %v5197_v29  ;;  %v57_v16 = vld [vmem:[%s8503_s0 + $0xc0] sm:$0xff]  ;;  %v59_v17 = vld [vmem:[%s8503_s0 + $0xd0] sm:$0xff]  ;;  %v62_v18 = vld [vmem:[%s8503_s0 + $0xe8] sm:$0xff] }
  0x55   :  { %1317 = vmatpush1.bf16.msra.mxu1 %v5198_v31  ;;  %5099 = vset.pattern.permute.xlu1 %v5284_v3  ;;  %v64_v19 = vld [vmem:[%s8503_s0 + $0xf8] sm:$0xff]  ;;  %v61_v23 = vld [vmem:[%s8503_s0 + $0xe0] sm:$0xff]  ;;  %v63_v25 = vld [vmem:[%s8503_s0 + $0xf0] sm:$0xff] }
  0x56   :  { %1318 = vmatprep.subr.bf16.mxu1 %v5199_v34  ;;  %698 = vperm.xlu1 %5099, %v5462_v41   ;;  %v51_v41 = vld [vmem:[%s8503_s0 + $0x90] sm:$0xff]  ;;  %v5231_v21 = vld [vmem:[%s8508_s5 + $0x168] ss:$16 sps:$4 sm:$0xff]   ;;  %v80_v22 = vpack.c.bf16 %v64_v19, %v62_v18  ;;  %v79_v26 = vpack.c.bf16 %v63_v25, %v61_v23  ;;  %v5251_v33 = vld [vmem:[%s8508_s5 + $0x1cc] ss:$16 sps:$4 sm:$0xff]  }
  0x57   :  { %1430 = vmatpush1.bf16.msra.mxu0 %v5195_v37  ;;  %v73_v57 = vpack.c.bf16 %v51_v41, %v49_v48  ;;  %v5240_v27 = vld [vmem:[%s8508_s5 + $0x180] ss:$16 sps:$4 sm:$0xff]   ;;  %v5241_v29 = vld [vmem:[%s8508_s5 + $0x1a4] ss:$16 sps:$4 sm:$0xff]   ;;  %v5243_v30 = vld [vmem:[%s8508_s5 + $0x1a8] ss:$16 sps:$4 sm:$0xff]  }
  0x58   :  { %207 = vperm.xlu0 %5109, %v5652_v40   ;;  %1431 = vmatprep.subr.bf16.mxu0 %v5203_v38  ;;  %v5246_v31 = vld [vmem:[%s8508_s5 + $0x1a0] ss:$16 sps:$4 sm:$0xff]   ;;  %v5247_v32 = vld [vmem:[%s8508_s5 + $0x1c4] ss:$16 sps:$4 sm:$0xff]   ;;  %v5249_v34 = vld [vmem:[%s8508_s5 + $0x1c8] ss:$16 sps:$4 sm:$0xff]  }
  0x59   :  { %1319 = vmatpush1.bf16.msra.mxu1 %v5204_v43  ;;  %v5253_v35 = vld [vmem:[%s8508_s5 + $0x1e4] ss:$16 sps:$4 sm:$0xff]   ;;  %v5255_v37 = vld [vmem:[%s8508_s5 + $0x1e8] ss:$16 sps:$4 sm:$0xff]   ;;  %v5258_v38 = vld [vmem:[%s8508_s5 + $0x1e0] ss:$16 sps:$4 sm:$0xff]  }
  0x5a   :  { %476 = vmatmul.mubr.bf16.gmra.mrb[12].mxu0 %v71_v39  ;;  %1320 = vmatprep.subr.bf16.mxu1 %v5205_v45  ;;  %v5898_v0 = vld [vmem:[%s8510_s7 + $0x28] sm:$0xff]  ;;  %v4472_v18 = vld [vmem:[%s8506_s3 + $0x1] ss:$4 sm:$0x3] }
  0x5b   :  { %485 = vmatprep.mubr.bf16.mxu0 %v74_v44  ;;  %5100 = vset.pattern.permute.xlu1 %v5285_v28  ;;  %v129_v23 = vld [vmem:[%s8506_s3] ss:$4 sm:$0x3] }
  0x5c   :  { %1432 = vmatpush1.bf16.msra.mxu0 %v5201_v47  ;;  %172 = vperm.xlu1 %5100, %v5552_v6  }
  0x5d   :  { %5113 = vset.pattern.permute.xlu0 %v5284_v3  ;;  %1433 = vmatprep.subr.bf16.mxu0 %v5209_v49 }
  0x5e   :  { %726 = vperm.xlu0 %5113, %v5695_v55   ;;  %1321 = vmatpush1.bf16.msra.mxu1 %v5210_v51 }
  0x5f   :  { %1322 = vmatprep.subr.bf16.mxu1 %v5211_v54 }
  0x60   :  { %1434 = vmatpush1.bf16.msra.mxu0 %v5207_v53  ;;  %5101 = vset.pattern.permute.xlu1 %v5283_v2 }
  0x61   :  { %1435 = vmatprep.subr.bf16.mxu0 %v5215_v56  ;;  %561 = vperm.xlu1 %5101, %v5552_v6   ;;  %v5219_v6 = vld [vmem:[%s8508_s5 + $0x128] ss:$16 sps:$4 sm:$0xff]  }
  0x62   :  { %486 = vmatmul.mubr.bf16.gmra.mrb[16].mxu0 %v73_v57  ;;  %1323 = vmatpush1.bf16.msra.mxu1 %v5216_v59  ;;  %v5879_v59 = vld [vmem:[%s8510_s7] sm:$0xff] }
  0x63   :  { %495 = vmatprep.mubr.bf16.mxu0 %v76_v58  ;;  %1324 = vmatprep.subr.bf16.mxu1 %v5217_v61  ;;  %v5889_v61 = vld [vmem:[%s8510_s7 + $0x8] sm:$0xff] }
  0x64   :  { %1436 = vmatpush1.bf16.msra.mxu0 %v5213_v60  ;;  %v5884_v60 = vld [vmem:[%s8510_s7 + $0x20] sm:$0xff] }
  0x65   :  { %1437 = vmatprep.subr.bf16.mxu0 %v5221_v62  ;;  %565 = vperm.xlu1 %5101, %v5467_v42   ;;  %v4539_v63 = vcombine.high %v5879_v59, %v5884_v60 }
  0x66   :  { %1325 = vmatpush1.bf16.msra.mxu1 %v5222_v4  ;;  %v4541_v4 = vcombine.high %v5889_v61, %v5898_v0 }
  0x67   :  { %1326 = vmatprep.subr.bf16.mxu1 %v5223_v7 }
  0x68   :  { %1438 = vmatpush1.bf16.msra.mxu0 %v5219_v6 }
  0x69   :  { %1439 = vmatprep.subr.bf16.mxu0 %v5227_v8  ;;  %5102 = vset.pattern.permute.xlu1 %v5284_v3 }
  0x6a   :  { %496 = vmatmul.mubr.bf16.gmra.mrb[20].mxu0 %v75_v9  ;;  %706 = vperm.xlu1 %5102, %v5467_v42   ;;  %v77_v42 = vpack.c.bf16 %v59_v17, %v57_v16 }
  0x6b   :  { %505 = vmatprep.mubr.bf16.mxu0 %v78_v10  ;;  %1327 = vmatpush1.bf16.msra.mxu1 %v5228_v12  ;;  %v211_v10 = vlaneseq }
  0x6c   :  { %1440 = vmatpush1.bf16.msra.mxu0 %v5225_v11  ;;  %1328 = vmatprep.subr.bf16.mxu1 %v5229_v13 }
  0x6d   :  { %1441 = vmatprep.subr.bf16.mxu0 %v5233_v15  ;;  %v5918_v13 = vshrl.u32 %v211_v10, 7 }
  0x6e   :  { %5103 = vset.pattern.permute.xlu1 %v5285_v28 }
  0x6f   :  { %182 = vperm.xlu1 %5103, %v5574_v14   ;;  %1329 = vmatpush1.bf16.msra.mxu1 %v5234_v20  ;;  %8585 = vst [vmem:[#allocation6_spill] sm:$0xff] %v5918_v13  ;;  %v5923_v16 = vsub.s32 0, %v5918_v13  ;;  %v5926_v17 = vsub.s32 1, %v5918_v13 }
  0x70   :  { %1442 = vmatpush1.bf16.msra.mxu0 %v5231_v21  ;;  %v4473_v21 = vld [vmem:[%s8506_s3 + $0x2] ss:$4 sm:$0x3] }
  0x71   :  { %8586 = vst [vmem:[#allocation7_spill] sm:$0xff] %v5923_v16  ;;  %8587 = vst [vmem:[#allocation8_spill] sm:$0xff] %v5926_v17  ;;  %v5948_v25 = vrot.slane %v4473_v21, %v5923_v16 }
  0x72   :  { %506 = vmatmul.mubr.bf16.gmra.mrb[24].mxu0 %v77_v42  ;;  %v5939_v42 = vrot.slane %v4472_v18, %v5923_v16 }
  0x73   :  { %515 = vmatprep.mubr.bf16.mxu0 %v80_v22  ;;  %5105 = vset.pattern.permute.xlu1 %v5283_v2  ;;  %v5942_v22 = vrot.slane %v4472_v18, %v5926_v17 }
  0x74   :  { %569 = vperm.xlu1 %5105, %v5574_v14   ;;  %v5235_v14 = vld [vmem:[%s8508_s5 + $0x184] ss:$16 sps:$4 sm:$0xff]  }
  0x75   :  { %1330 = vmatprep.subr.bf16.mxu1 %v5235_v14  ;;  %8588 = vst [vmem:[#allocation9_spill] sm:$0xff] %v5942_v22  ;;  %v5954_v14 = vrot.slane %v129_v23, %v5923_v16 }
  0x76   :  { %1331 = vmatpush1.bf16.msra.mxu1 %v5240_v27 }
  0x77   :  { %1332 = vmatprep.subr.bf16.mxu1 %v5241_v29 }
  0x78   :  { %573 = vperm.xlu1 %5105, %v5484_v46  }
  0x7a   :  { %516 = vmatmul.mubr.bf16.gmra.mrb[28].mxu0 %v79_v26  ;;  %1333 = vmatpush1.bf16.msra.mxu1 %v5246_v31  ;;  %v5951_v26 = vrot.slane %v4473_v21, %v5926_v17 }
  0x7b   :  { %1334 = vmatprep.subr.bf16.mxu1 %v5247_v32 }
  0x7c   :  { %5106 = vset.pattern.permute.xlu1 %v5284_v3 }
  0x7d   :  { %714 = vperm.xlu1 %5106, %v5484_v46   ;;  %v5239_v46 = vld [vmem:[%s8508_s5 + $0x18c] ss:$16 sps:$4 sm:$0xff]  }
  0x7e   :  { %1443 = vmatprep.subr.bf16.mxu0 %v5239_v46  ;;  %v5957_v46 = vrot.slane %v129_v23, %v5926_v17 }
  0x80   :  { %8589 = vst [vmem:[#allocation10_spill] sm:$0xff] %v5957_v46 }
  0x81   :  { %5107 = vset.pattern.permute.xlu1 %v5285_v28 }
  0x82   :  { %192 = vperm.xlu1 %5107, %v5605_v24  }
  0x86   :  { %5108 = vset.pattern.permute.xlu1 %v5283_v2  ;;  %v530_v39 = vpop.permute.xlu1 %529 }
  0x87   :  { %577 = vperm.xlu1 %5108, %v5605_v24   ;;  %v5237_v24 = vld [vmem:[%s8508_s5 + $0x188] ss:$16 sps:$4 sm:$0xff]   ;;  %v671_v45 = vpop.permute.xlu0 %670  ;;  %v5963_v29 = vmul.f32 %v5939_v42, %v530_v39 }
  0x88   :  { %1444 = vmatpush1.bf16.msra.mxu0 %v5237_v24  ;;  %v808_v24 = vld [vmem:[%s8507_s4] sm:$0x3]  ;;  %v5972_v31 = vmul.f32 %v5951_v26, %v671_v45 }
  0x8a   :  { %v534_v43 = vpop.permute.xlu1 %533 }
  0x8b   :  { %581 = vperm.xlu1 %5108, %v5639_v36   ;;  %v679_v48 = vpop.permute.xlu0 %678 }
  0x8f   :  { %5110 = vset.pattern.permute.xlu1 %v5284_v3  ;;  %v687_v41 = vpop.permute.xlu0 %686 }
  0x90   :  { %722 = vperm.xlu1 %5110, %v5639_v36   ;;  %v5257_v36 = vld [vmem:[%s8508_s5 + $0x1ec] ss:$16 sps:$4 sm:$0xff]   ;;  %v5848_v44 = vpop.permute.xlu1 %674 }
  0x94   :  { %5111 = vset.pattern.permute.xlu1 %v5285_v28  ;;  %v5245_v28 = vld [vmem:[%s8508_s5 + $0x1ac] ss:$16 sps:$4 sm:$0xff]   ;;  %v5856_v51 = vpop.permute.xlu0 %132 }
  0x95   :  { %202 = vperm.xlu1 %5111, %v5695_v55   ;;  %1445 = vmatprep.subr.bf16.mxu0 %v5245_v28  ;;  %v5850_v47 = vpop.permute.xlu1 %142  ;;  %v5966_v28 = vmul.f32 %v5942_v22, %v530_v39  ;;  %v5998_v39 = vrot.slane %v808_v24, %v5926_v17  ;;  %v6030_v18 = vmul.f32 %v5957_v46, %v5856_v51 }
  0x96   :  { %1446 = vmatpush1.bf16.msra.mxu0 %v5243_v30  ;;  %v5969_v30 = vmul.f32 %v5948_v25, %v671_v45  ;;  %v6006_v45 = vmul.f32 %v5951_v26, %v5848_v44 }
  0x97   :  { %1447 = vmatprep.subr.bf16.mxu0 %v5251_v33  ;;  %v5977_v33 = vmul.f32 %v5939_v42, %v534_v43 }
  0x99   :  { %5112 = vset.pattern.permute.xlu1 %v5283_v2  ;;  %v5252_v2 = vld [vmem:[%s8508_s5 + $0x1c0] ss:$16 sps:$4 sm:$0xff]  }
  0x9a   :  { %585 = vperm.xlu1 %5112, %v5695_v55   ;;  %1335 = vmatpush1.bf16.msra.mxu1 %v5252_v2  ;;  %v5852_v49 = vpop.permute.xlu1 %537  ;;  %v5983_v2 = vmul.f32 %v5948_v25, %v679_v48 }
  0x9b   :  { %1448 = vmatpush1.bf16.msra.mxu0 %v5249_v34  ;;  %1336 = vmatprep.subr.bf16.mxu1 %v5253_v35  ;;  %v5980_v34 = vmul.f32 %v5942_v22, %v534_v43  ;;  %v5986_v35 = vmul.f32 %v5951_v26, %v679_v48  ;;  %v6002_v43 = vmul.f32 %v5948_v25, %v5848_v44 }
  0x9c   :  { %1449 = vmatprep.subr.bf16.mxu0 %v5257_v36  ;;  %v5989_v36 = vmul.f32 %v5948_v25, %v687_v41  ;;  %v6010_v48 = vmul.f32 %v5954_v14, %v5850_v47  ;;  %v6022_v10 = vmul.f32 %v5942_v22, %v5852_v49  ;;  %v6026_v44 = vmul.f32 %v5954_v14, %v5856_v51 }
  0x9e   :  { %589 = vperm.xlu1 %5112, %v5652_v40   ;;  %1337 = vmatpush1.bf16.msra.mxu1 %v5258_v38  ;;  %v5854_v50 = vpop.permute.xlu1 %541  ;;  %8590 = vst [vmem:[#allocation11_spill] sm:$0xff] %v5989_v36  ;;  %v5995_v38 = vrot.slane %v808_v24, %v5923_v16 }
  0x9f   :  { %1450 = vmatpush1.bf16.msra.mxu0 %v5255_v37  ;;  %3206 = vmatprep.subr.bf16.mxu1 %v4539_v63  ;;  %v5992_v37 = vmul.f32 %v5951_v26, %v687_v41  ;;  %v6014_v41 = vmul.f32 %v5957_v46, %v5850_v47  ;;  %v6034_v47 = vmul.f32 %v5939_v42, %v5854_v50 }
  0xa0   :  { %3432 = vmatprep.subr.bf16.mxu0 %v4541_v4  ;;  %v6018_v4 = vmul.f32 %v5939_v42, %v5852_v49  ;;  %v6038_v21 = vmul.f32 %v5942_v22, %v5854_v50 }
  0xa1   :  { %8591 = vst [vmem:[#allocation12_spill] sm:$0xff] %v5992_v37 }
  0xa2   :  { %5114 = vset.pattern.permute.xlu1 %v5284_v3 }
  0xa3   :  { %730 = vperm.xlu1 %5114, %v5652_v40   ;;  %v5858_v3 = vpop.permute.xlu1 %682  ;;  %v5860_v40 = vpop.permute.xlu0 %137 }
  0xa4   :  { %v6042_v49 = vmul.f32 %v5954_v14, %v5860_v40  ;;  %v6046_v23 = vmul.f32 %v5957_v46, %v5860_v40  ;;  %v6068_v40 = vmul.f32 %v5948_v25, %v5858_v3  ;;  %v6072_v17 = vmul.f32 %v5951_v26, %v5858_v3 }
  0xa7   :  { %v5864_v53 = vpop.permute.xlu0 %147 }
  0xa8   :  { %v5862_v52 = vpop.permute.xlu1 %152  ;;  %v6050_v51 = vmul.f32 %v5954_v14, %v5864_v53  ;;  %v6054_v24 = vmul.f32 %v5957_v46, %v5864_v53 }
  0xa9   :  { %v6088_v13 = vmul.f32 %v5957_v46, %v5862_v52 }
  0xab   :  { %v5868_v55 = vpop.permute.xlu0 %157 }
  0xac   :  { %v6058_v50 = vmul.f32 %v5954_v14, %v5868_v55  ;;  %v6062_v1 = vmul.f32 %v5957_v46, %v5868_v55  ;;  %v6084_v55 = vmul.f32 %v5954_v14, %v5862_v52 }
  0xad   :  { %v5866_v54 = vpop.permute.xlu1 %545 }
  0xae   :  { %8592 = vst [vmem:[#allocation13_spill] sm:$0xff] %v6062_v1  ;;  %v6320_v1 = vld [vmem:[%s8510_s7 + $0x128] sm:$0xff] }
  0xaf   :  { %v5872_v57 = vpop.permute.xlu0 %167  ;;  %8640 = vst [vmem:[#allocation61_spill] sm:$0xff] %v6320_v1  ;;  %v6413_v1 = vld [vmem:[%s8510_s7 + $0x1c8] sm:$0xff] }
  0xb0   :  { %v6076_v53 = vmul.f32 %v5954_v14, %v5872_v57  ;;  %v6080_v16 = vmul.f32 %v5957_v46, %v5872_v57  ;;  %v6100_v57 = vmul.f32 %v5939_v42, %v5866_v54 }
  0xb2   :  { %8593 = vst [vmem:[#allocation14_spill] sm:$0xff] %v6076_v53  ;;  %8594 = vst [vmem:[#allocation15_spill] sm:$0xff] %v6080_v16  ;;  %v6104_v16 = vmul.f32 %v5942_v22, %v5866_v54 }
  0xb3   :  { %v5904_v5 = vpop.permute.xlu0 %177 }
  0xb4   :  { %v6092_v3 = vmul.f32 %v5954_v14, %v5904_v5  ;;  %v6096_v37 = vmul.f32 %v5957_v46, %v5904_v5  ;;  %8597 = vst [vmem:[#allocation18_spill] sm:$0xff] %v6104_v16  ;;  %v6325_v16 = vld [vmem:[%s8510_s7 + $0x140] sm:$0xff] }
  0xb6   :  { %8595 = vst [vmem:[#allocation16_spill] sm:$0xff] %v6092_v3  ;;  %8596 = vst [vmem:[#allocation17_spill] sm:$0xff] %v6096_v37 }
  0xb7   :  { %v5908_v7 = vpop.permute.xlu0 %187 }
  0xb8   :  { %v6108_v52 = vmul.f32 %v5954_v14, %v5908_v7  ;;  %v6112_v53 = vmul.f32 %v5957_v46, %v5908_v7 }
  0xba   :  { %8598 = vst [vmem:[#allocation19_spill] sm:$0xff] %v6108_v52  ;;  %8599 = vst [vmem:[#allocation20_spill] sm:$0xff] %v6112_v53 }
  0xbc   :  { %v5870_v56 = vpop.permute.xlu1 %549 }
  0xbd   :  { %v6116_v5 = vmul.f32 %v5939_v42, %v5870_v56  ;;  %v6120_v37 = vmul.f32 %v5942_v22, %v5870_v56 }
  0xbe   :  { %v5912_v9 = vpop.permute.xlu0 %694 }
  0xbf   :  { %8600 = vst [vmem:[#allocation21_spill] sm:$0xff] %v6116_v5  ;;  %8601 = vst [vmem:[#allocation22_spill] sm:$0xff] %v6120_v37  ;;  %v6126_v54 = vmul.f32 %v5948_v25, %v5912_v9  ;;  %v6130_v52 = vmul.f32 %v5951_v26, %v5912_v9  ;;  %v6298_v5 = vld [vmem:[%s8510_s7 + $0x120] sm:$0xff] }
  0xc0   :  { %8636 = vst [vmem:[#allocation57_spill] sm:$0xff] %v6298_v5 }
  0xc1   :  { %v5874_v58 = vpop.permute.xlu1 %690  ;;  %8602 = vst [vmem:[#allocation23_spill] sm:$0xff] %v6126_v54  ;;  %8603 = vst [vmem:[#allocation24_spill] sm:$0xff] %v6130_v52 }
  0xc2   :  { %v6134_v7 = vmul.f32 %v5948_v25, %v5874_v58  ;;  %v6138_v53 = vmul.f32 %v5951_v26, %v5874_v58 }
  0xc3   :  { %v5916_v12 = vpop.permute.xlu0 %702 }
  0xc4   :  { %8604 = vst [vmem:[#allocation25_spill] sm:$0xff] %v6134_v7  ;;  %8605 = vst [vmem:[#allocation26_spill] sm:$0xff] %v6138_v53  ;;  %v6142_v56 = vmul.f32 %v5948_v25, %v5916_v12  ;;  %v6146_v37 = vmul.f32 %v5951_v26, %v5916_v12  ;;  %v6270_v53 = vld [vmem:[%s8510_s7 + $0xe0] sm:$0xff] }
  0xc5   :  { %8632 = vst [vmem:[#allocation53_spill] sm:$0xff] %v6270_v53  ;;  %v6293_v7 = vld [vmem:[%s8510_s7 + $0x100] sm:$0xff] }
  0xc6   :  { %v5906_v6 = vpop.permute.xlu1 %162  ;;  %8606 = vst [vmem:[#allocation27_spill] sm:$0xff] %v6142_v56  ;;  %8607 = vst [vmem:[#allocation28_spill] sm:$0xff] %v6146_v37 }
  0xc7   :  { %v5931_v19 = vpop.permute.xlu0 %710  ;;  %v6150_v9 = vmul.f32 %v5954_v14, %v5906_v6  ;;  %v6154_v52 = vmul.f32 %v5957_v46, %v5906_v6  ;;  %8635 = vst [vmem:[#allocation56_spill] sm:$0xff] %v6293_v7  ;;  %v6393_v7 = vld [vmem:[%s8510_s7 + $0x1c0] sm:$0xff] }
  0xc8   :  { %v6158_v58 = vmul.f32 %v5948_v25, %v5931_v19  ;;  %v6162_v54 = vmul.f32 %v5951_v26, %v5931_v19  ;;  %v6181_v19 = vld [vmem:[%s8510_s7 + $0x40] sm:$0xff]  ;;  %8649 = vst [vmem:[#allocation70_spill] sm:$0xff] %v6393_v7 }
  0xc9   :  { %8608 = vst [vmem:[#allocation29_spill] sm:$0xff] %v6150_v9  ;;  %8609 = vst [vmem:[#allocation30_spill] sm:$0xff] %v6154_v52  ;;  %v6244_v9 = vld [vmem:[%s8510_s7 + $0xa8] sm:$0xff] }
  0xca   :  { %8610 = vst [vmem:[#allocation31_spill] sm:$0xff] %v6158_v58  ;;  %8611 = vst [vmem:[#allocation32_spill] sm:$0xff] %v6162_v54  ;;  %v6186_v54 = vld [vmem:[%s8510_s7 + $0x60] sm:$0xff] }
  0xcb   :  { %8626 = vst [vmem:[#allocation47_spill] sm:$0xff] %v6244_v9  ;;  %v6371_v9 = vld [vmem:[%s8510_s7 + $0x188] sm:$0xff] }
  0xcc   :  { %v5910_v8 = vpop.permute.xlu1 %553  ;;  %8645 = vst [vmem:[#allocation66_spill] sm:$0xff] %v6371_v9  ;;  %v6528_v9 = vld [vmem:[%s8510_s7 + $0x2a8] sm:$0xff] }
  0xcd   :  { %v719_v27 = vpop.permute.xlu0 %718  ;;  %v6166_v12 = vmul.f32 %v5939_v42, %v5910_v8  ;;  %v6170_v37 = vmul.f32 %v5942_v22, %v5910_v8  ;;  %v6191_v8 = vld [vmem:[%s8510_s7 + $0x48] sm:$0xff]  ;;  %8656 = vst [vmem:[#allocation77_spill] sm:$0xff] %v6528_v9 }
  0xce   :  { %v6173_v56 = vmul.f32 %v5948_v25, %v719_v27  ;;  %v6176_v6 = vmul.f32 %v5951_v26, %v719_v27 }
  0xcf   :  { %8612 = vst [vmem:[#allocation33_spill] sm:$0xff] %v6166_v12  ;;  %8613 = vst [vmem:[#allocation34_spill] sm:$0xff] %v6170_v37  ;;  %v6210_v37 = vld [vmem:[%s8510_s7 + $0x68] sm:$0xff]  ;;  %v6215_v12 = vld [vmem:[%s8510_s7 + $0x80] sm:$0xff] }
  0xd0   :  { %v5914_v11 = vpop.permute.xlu1 %557  ;;  %8614 = vst [vmem:[#allocation35_spill] sm:$0xff] %v6173_v56  ;;  %8615 = vst [vmem:[#allocation36_spill] sm:$0xff] %v6176_v6 }
  0xd1   :  { %v6195_v27 = vmul.f32 %v5939_v42, %v5914_v11  ;;  %v6199_v6 = vmul.f32 %v5942_v22, %v5914_v11  ;;  %8620 = vst [vmem:[#allocation41_spill] sm:$0xff] %v6215_v12  ;;  %v6220_v11 = vld [vmem:[%s8510_s7 + $0xa0] sm:$0xff]  ;;  %v6348_v12 = vld [vmem:[%s8510_s7 + $0x168] sm:$0xff] }
  0xd2   :  { %8621 = vst [vmem:[#allocation42_spill] sm:$0xff] %v6220_v11  ;;  %v6343_v11 = vld [vmem:[%s8510_s7 + $0x148] sm:$0xff]  ;;  %8642 = vst [vmem:[#allocation63_spill] sm:$0xff] %v6348_v12  ;;  %v6430_v12 = vld [vmem:[%s8510_s7 + $0x200] sm:$0xff] }
  0xd3   :  { %v198_v63 = vpop.permute.xlu0 %197  ;;  %8616 = vst [vmem:[#allocation37_spill] sm:$0xff] %v6195_v27  ;;  %8617 = vst [vmem:[#allocation38_spill] sm:$0xff] %v6199_v6  ;;  %v6239_v27 = vld [vmem:[%s8510_s7 + $0x88] sm:$0xff] }
  0xd4   :  { %v6202_v56 = vmul.f32 %v5954_v14, %v198_v63  ;;  %v6205_v58 = vmul.f32 %v5957_v46, %v198_v63  ;;  %8641 = vst [vmem:[#allocation62_spill] sm:$0xff] %v6343_v11  ;;  %v6435_v11 = vld [vmem:[%s8510_s7 + $0x220] sm:$0xff] }
  0xd5   :  { %v5920_v15 = vpop.permute.xlu1 %698 }
  0xd6   :  { %8618 = vst [vmem:[#allocation39_spill] sm:$0xff] %v6202_v56  ;;  %8619 = vst [vmem:[#allocation40_spill] sm:$0xff] %v6205_v58  ;;  %v6224_v56 = vmul.f32 %v5948_v25, %v5920_v15  ;;  %v6228_v63 = vmul.f32 %v5951_v26, %v5920_v15  ;;  %v6249_v15 = vld [vmem:[%s8510_s7 + $0xc0] sm:$0xff] }
  0xd7   :  { %v208_v3 = vpop.permute.xlu0 %207  ;;  %8627 = vst [vmem:[#allocation48_spill] sm:$0xff] %v6249_v15  ;;  %v6366_v15 = vld [vmem:[%s8510_s7 + $0x1a0] sm:$0xff] }
  0xd8   :  { %8622 = vst [vmem:[#allocation43_spill] sm:$0xff] %v6224_v56  ;;  %8623 = vst [vmem:[#allocation44_spill] sm:$0xff] %v6228_v63  ;;  %v6231_v58 = vmul.f32 %v5954_v14, %v208_v3  ;;  %v6234_v6 = vmul.f32 %v5957_v46, %v208_v3 }
  0xd9   :  { %8644 = vst [vmem:[#allocation65_spill] sm:$0xff] %v6366_v15  ;;  %v6447_v15 = vld [vmem:[%s8510_s7 + $0x208] sm:$0xff] }
  0xda   :  { %8624 = vst [vmem:[#allocation45_spill] sm:$0xff] %v6231_v58  ;;  %8625 = vst [vmem:[#allocation46_spill] sm:$0xff] %v6234_v6 }
  0xdb   :  { %v5933_v20 = vpop.permute.xlu1 %172 }
  0xdc   :  { %v6253_v58 = vmul.f32 %v5954_v14, %v5933_v20  ;;  %v6257_v3 = vmul.f32 %v5957_v46, %v5933_v20  ;;  %v6280_v20 = vld [vmem:[%s8510_s7 + $0xe8] sm:$0xff] }
  0xdd   :  { %v727_v52 = vpop.permute.xlu0 %726  ;;  %8634 = vst [vmem:[#allocation55_spill] sm:$0xff] %v6280_v20  ;;  %v6398_v20 = vld [vmem:[%s8510_s7 + $0x1e0] sm:$0xff] }
  0xde   :  { %8628 = vst [vmem:[#allocation49_spill] sm:$0xff] %v6253_v58  ;;  %8629 = vst [vmem:[#allocation50_spill] sm:$0xff] %v6257_v3  ;;  %v6262_v63 = vmul.f32 %v5948_v25, %v727_v52  ;;  %v6265_v56 = vmul.f32 %v5951_v26, %v727_v52  ;;  %v6275_v58 = vld [vmem:[%s8510_s7 + $0xc8] sm:$0xff]  ;;  %v6353_v52 = vld [vmem:[%s8510_s7 + $0x180] sm:$0xff] }
  0xdf   :  { %8633 = vst [vmem:[#allocation54_spill] sm:$0xff] %v6275_v58  ;;  %8643 = vst [vmem:[#allocation64_spill] sm:$0xff] %v6353_v52  ;;  %v6452_v52 = vld [vmem:[%s8510_s7 + $0x228] sm:$0xff] }
  0xe0   :  { %v5974_v32 = vpop.permute.xlu1 %561  ;;  %8630 = vst [vmem:[#allocation51_spill] sm:$0xff] %v6262_v63  ;;  %8631 = vst [vmem:[#allocation52_spill] sm:$0xff] %v6265_v56  ;;  %v6303_v63 = vld [vmem:[%s8510_s7 + $0x108] sm:$0xff] }
  0xe1   :  { %8637 = vst [vmem:[#allocation58_spill] sm:$0xff] %v6303_v63  ;;  %v6307_v56 = vmul.f32 %v5939_v42, %v5974_v32  ;;  %v6311_v3 = vmul.f32 %v5942_v22, %v5974_v32  ;;  %v6330_v32 = vld [vmem:[%s8510_s7 + $0x160] sm:$0xff]  ;;  %8650 = vst [vmem:[#allocation71_spill] sm:$0xff] %v6398_v20  ;;  %v6418_v63 = vld [vmem:[%s8510_s7 + $0x1e8] sm:$0xff] }
  0xe2   :  { %8651 = vst [vmem:[#allocation72_spill] sm:$0xff] %v6452_v52 }
  0xe3   :  { %8638 = vst [vmem:[#allocation59_spill] sm:$0xff] %v6307_v56  ;;  %8639 = vst [vmem:[#allocation60_spill] sm:$0xff] %v6311_v3  ;;  %v6376_v3 = vld [vmem:[%s8510_s7 + $0x1a8] sm:$0xff] }
  0xe4   :  { %v6064_v62 = vpop.permute.xlu1 %565  ;;  %8646 = vst [vmem:[#allocation67_spill] sm:$0xff] %v6376_v3  ;;  %v6507_v3 = vld [vmem:[%s8510_s7 + $0x280] sm:$0xff] }
  0xe5   :  { %v6380_v46 = vmul.f32 %v5939_v42, %v6064_v62  ;;  %v6384_v53 = vmul.f32 %v5942_v22, %v6064_v62 }
  0xe7   :  { %8647 = vst [vmem:[#allocation68_spill] sm:$0xff] %v6380_v46  ;;  %8648 = vst [vmem:[#allocation69_spill] sm:$0xff] %v6384_v53 }
  0xe9   :  { %v6122_v36 = vpop.permute.xlu1 %706 }
  0xee   :  { %v6259_v6 = vpop.permute.xlu1 %182 }
  0xf3   :  { %v6400_v58 = vpop.permute.xlu1 %569 }
 0x115   :  { %v447_v46 = vpop.f32.mrb[0].mxu0 }
 0x116   :  { %v448_v62 = vadd.f32 %v447_v46, %v6026_v44  ;;  %v449_v22 = vpop.f32.mrb[1].mxu0 }
 0x117   :  { %v450_v46 = vadd.f32 %v449_v22, %v6030_v18  ;;  %v451_v44 = vpop.f32.mrb[2].mxu0 }
 0x118   :  { %v635_v22 = vadd.f32 %v5963_v29, %v448_v62  ;;  %v452_v18 = vadd.f32 %v451_v44, %v6042_v49  ;;  %v453_v56 = vpop.f32.mrb[3].mxu0  ;;  %v6469_v29 = vld [vmem:[%s8510_s7 + $0x240] sm:$0xff]  ;;  %v6490_v44 = vld [vmem:[%s8510_s7 + $0x268] sm:$0xff] }
 0x119   :  { %v636_v20 = vadd.f32 %v5966_v28, %v450_v46  ;;  %v454_v7 = vadd.f32 %v453_v56, %v6046_v23  ;;  %8652 = vst [vmem:[#allocation73_spill] sm:$0xff] %v6469_v29  ;;  %v6474_v49 = vld [vmem:[%s8510_s7 + $0x260] sm:$0xff]  ;;  %v6485_v46 = vld [vmem:[%s8510_s7 + $0x248] sm:$0xff]  ;;  %v6502_v56 = vpop.permute.xlu1 %573 }
 0x11a   :  { %8653 = vst [vmem:[#allocation74_spill] sm:$0xff] %v6474_v49  ;;  %v776_v28 = vadd.f32 %v5969_v30, %v635_v22  ;;  %v637_v23 = vadd.f32 %v5977_v33, %v452_v18  ;;  %v6495_v33 = vmul.f32 %v5948_v25, %v6122_v36  ;;  %v6499_v22 = vmul.f32 %v5951_v26, %v6122_v36 }
 0x11b   :  { %v777_v30 = vadd.f32 %v5972_v31, %v636_v20  ;;  %v638_v18 = vadd.f32 %v5980_v34, %v454_v7  ;;  %v6512_v31 = vld [vmem:[%s8510_s7 + $0x2a0] sm:$0xff]  ;;  %v6523_v7 = vld [vmem:[%s8510_s7 + $0x288] sm:$0xff] }
 0x11c   :  { %8654 = vst [vmem:[#allocation75_spill] sm:$0xff] %v6512_v31  ;;  %v778_v20 = vadd.f32 %v6002_v43, %v637_v23  ;;  %v820_v62 = vadd.f32 %v5995_v38, %v776_v28  ;;  %8655 = vst [vmem:[#allocation76_spill] sm:$0xff] %v6523_v7  ;;  %v6567_v31 = vld [vmem:[%s8510_s7 + $0x2c8] sm:$0xff] }
 0x11d   :  { %v779_v43 = vadd.f32 %v6006_v45, %v638_v18  ;;  %v457_v23 = vpop.f32.mrb[4].mxu0  ;;  %v821_v28 = vadd.f32 %v5998_v39, %v777_v30  ;;  %v6544_v36 = vpop.permute.xlu1 %714 }
 0x11e   :  { %v458_v5 = vadd.f32 %v457_v23, %v6010_v48  ;;  %v459_v53 = vpop.f32.mrb[5].mxu0  ;;  %v822_v49 = vadd.f32 %v5995_v38, %v778_v20  ;;  %v6553_v20 = vld [vmem:[%s8510_s7 + $0x2c0] sm:$0xff]  ;;  %v852_v29 = vmax.f32 %v820_v62, 0.0 }
 0x11f   :  { %v460_v18 = vadd.f32 %v459_v53, %v6014_v41  ;;  %v461_v30 = vpop.f32.mrb[6].mxu0  ;;  %v823_v52 = vadd.f32 %v5998_v39, %v779_v43  ;;  %v6558_v41 = vld [vmem:[%s8510_s7 + $0x2e0] sm:$0xff]  ;;  %v853_v9 = vmax.f32 %v821_v28, 0.0 }
 0x120   :  { %v639_v53 = vadd.f32 %v6018_v4, %v458_v5  ;;  %v462_v43 = vadd.f32 %v461_v30, %v6050_v51  ;;  %v463_v23 = vpop.f32.mrb[7].mxu0  ;;  %v854_v34 = vmax.f32 %v822_v49, 0.0  ;;  %v6572_v4 = vld [vmem:[%s8510_s7 + $0x2e8] sm:$0xff]  ;;  %v8699_v30 = vld [vmem:[#allocation24_spill] sm:$0xff] }
 0x121   :  { %v640_v45 = vadd.f32 %v6022_v10, %v460_v18  ;;  %v464_v48 = vadd.f32 %v463_v23, %v6054_v24  ;;  %v855_v7 = vmax.f32 %v823_v52, 0.0  ;;  %8657 = vst [vmem:[#allocation78_spill] sm:$0xff] %v6572_v4  ;;  %v6581_v24 = vld [vmem:[%s8510_s7 + $0x300] sm:$0xff]  ;;  %v8693_v18 = vld [vmem:[#allocation55_spill] sm:$0xff] }
 0x122   :  { %v780_v51 = vadd.f32 %v5983_v2, %v639_v53  ;;  %v641_v5 = vadd.f32 %v6034_v47, %v462_v43  ;;  %v884_v49 = vpack.c.bf16 %v854_v34, %v852_v29  ;;  %8658 = vst [vmem:[#allocation79_spill] sm:$0xff] %v6581_v24  ;;  %v6586_v52 = vld [vmem:[%s8510_s7 + $0x320] sm:$0xff] }
 0x123   :  { %8659 = vst [vmem:[#allocation80_spill] sm:$0xff] %v6586_v52  ;;  %v781_v62 = vadd.f32 %v5986_v35, %v640_v45  ;;  %v642_v2 = vadd.f32 %v6038_v21, %v464_v48  ;;  %v885_v28 = vpack.c.bf16 %v855_v7, %v853_v9  ;;  %v6600_v21 = vpop.permute.xlu1 %192  ;;  %v6610_v48 = vmul.f32 %v5954_v14, %v6259_v6  ;;  %v8726_v52 = vld [vmem:[#allocation69_spill] sm:$0xff] }
 0x124   :  { %v782_v29 = vadd.f32 %v6068_v40, %v641_v5  ;;  %v824_v34 = vadd.f32 %v5995_v38, %v780_v51  ;;  %v8673_v40 = vcombine.low %v6181_v19, %v6186_v54 }
 0x125   :  { %v783_v53 = vadd.f32 %v6072_v17, %v642_v2  ;;  %v467_v43 = vpop.f32.mrb[8].mxu0  ;;  %1338 = vmatprep.mubr.bf16.mxu1 %v885_v28  ;;  %1451 = vmatprep.mubr.bf16.mxu0 %v885_v28  ;;  %v825_v35 = vadd.f32 %v5998_v39, %v781_v62  ;;  %v8675_v17 = vld [vmem:[#allocation25_spill] sm:$0xff] }
 0x126   :  { %v468_v9 = vadd.f32 %v467_v43, %v6084_v55  ;;  %v469_v7 = vpop.f32.mrb[9].mxu0  ;;  %1339 = vmatmul.mubr.bf16.vlgmr.msra.gmra.mrb[0].mxu1 %v884_v49  ;;  %1452 = vmatmul.mubr.bf16.vlgmr.msra.gmra.mrb[32].mxu0 %v884_v49  ;;  %v826_v45 = vadd.f32 %v5995_v38, %v782_v29  ;;  %v8660_v55 = vcombine.low %v5879_v59, %v5884_v60  ;;  %v856_v29 = vmax.f32 %v824_v34, 0.0  ;;  %v8664_v59 = vld [vmem:[#allocation18_spill] sm:$0xff] }
 0x127   :  { %v470_v23 = vadd.f32 %v469_v7, %v6088_v13  ;;  %v471_v51 = vpop.f32.mrb[10].mxu0  ;;  %v827_v5 = vadd.f32 %v5998_v39, %v783_v53  ;;  %v8661_v49 = vcombine.low %v5889_v61, %v5898_v0  ;;  %v8662_v13 = vcombine.high %v6181_v19, %v6186_v54  ;;  %v8665_v7 = vld [vmem:[#allocation13_spill] sm:$0xff]  ;;  %v8668_v34 = vld [vmem:[#allocation10_spill] sm:$0xff] }
 0x128   :  { %3207 = vmatpush1.bf16.msra.mxu1 %v8660_v55  ;;  %v643_v62 = vadd.f32 %v6100_v57, %v468_v9  ;;  %v472_v2 = vadd.f32 %v471_v51, %v6058_v50  ;;  %v473_v28 = vpop.f32.mrb[11].mxu0  ;;  %v858_v43 = vmax.f32 %v826_v45, 0.0  ;;  %v8663_v53 = vcombine.high %v6191_v8, %v6210_v37  ;;  %v6633_v50 = vld [vmem:[%s8510_s7 + $0x308] sm:$0xff]  ;;  %v8669_v45 = vld [vmem:[#allocation11_spill] sm:$0xff]  ;;  %v8681_v19 = vld [vmem:[#allocation26_spill] sm:$0xff] }
 0x129   :  { %3433 = vmatpush1.bf16.msra.mxu0 %v8661_v49  ;;  %3208 = vmatprep.subr.bf16.mxu1 %v8662_v13  ;;  %v644_v60 = vadd.f32 %v8664_v59, %v470_v23  ;;  %v474_v61 = vadd.f32 %v473_v28, %v8665_v7  ;;  %v857_v0 = vmax.f32 %v825_v35, 0.0  ;;  %v859_v55 = vmax.f32 %v827_v5, 0.0  ;;  %8666 = vst [vmem:[#allocation18_spill] sm:$0xff] %v6633_v50  ;;  %v6638_v57 = vld [vmem:[%s8510_s7 + $0x328] sm:$0xff]  ;;  %v8671_v5 = vld [vmem:[#allocation12_spill] sm:$0xff]  ;;  %v8672_v13 = vld [vmem:[#allocation22_spill] sm:$0xff]  ;;  %v6648_v7 = vpop.permute.xlu1 %577 }
 0x12a   :  { %3434 = vmatprep.subr.bf16.mxu0 %v8663_v53  ;;  %8667 = vst [vmem:[#allocation13_spill] sm:$0xff] %v6638_v57  ;;  %v6642_v9 = vmul.f32 %v8668_v34, %v6259_v6  ;;  %v784_v23 = vadd.f32 %v8669_v45, %v643_v62  ;;  %v8670_v51 = vld [vmem:[#allocation21_spill] sm:$0xff]  ;;  %v886_v35 = vpack.c.bf16 %v858_v43, %v856_v29  ;;  %v8677_v43 = vld [vmem:[#allocation42_spill] sm:$0xff] }
 0x12b   :  { %v645_v49 = vadd.f32 %v8670_v51, %v472_v2  ;;  %v785_v28 = vadd.f32 %v8671_v5, %v644_v60  ;;  %v646_v53 = vadd.f32 %v8672_v13, %v474_v61  ;;  %v887_v59 = vpack.c.bf16 %v859_v55, %v857_v0  ;;  %v8676_v29 = vld [vmem:[#allocation41_spill] sm:$0xff]  ;;  %v8679_v61 = vld [vmem:[#allocation47_spill] sm:$0xff] }
 0x12c   :  { %3209 = vmatpush1.bf16.msra.mxu1 %v8673_v40  ;;  %v8674_v6 = vcombine.low %v6191_v8, %v6210_v37  ;;  %v828_v2 = vadd.f32 %v5995_v38, %v784_v23  ;;  %v8678_v60 = vcombine.high %v8676_v29, %v8677_v43  ;;  %v8680_v0 = vcombine.high %v6239_v27, %v8679_v61  ;;  %v8682_v45 = vld [vmem:[#allocation29_spill] sm:$0xff]  ;;  %v8689_v8 = vld [vmem:[#allocation48_spill] sm:$0xff] }
 0x12d   :  { %v786_v62 = vadd.f32 %v8675_v17, %v645_v49  ;;  %v787_v40 = vadd.f32 %v8681_v19, %v646_v53  ;;  %v477_v55 = vpop.f32.mrb[12].mxu0  ;;  %1348 = vmatprep.mubr.bf16.mxu1 %v887_v59  ;;  %1461 = vmatprep.mubr.bf16.mxu0 %v887_v59  ;;  %v829_v37 = vadd.f32 %v5998_v39, %v785_v28  ;;  %v8683_v5 = vld [vmem:[#allocation9_spill] sm:$0xff]  ;;  %v8684_v53 = vld [vmem:[#allocation30_spill] sm:$0xff] }
 0x12e   :  { %3435 = vmatpush1.bf16.msra.mxu0 %v8674_v6  ;;  %3210 = vmatprep.subr.bf16.mxu1 %v8678_v60  ;;  %v6672_v17 = vmul.f32 %v5939_v42, %v6400_v58  ;;  %v478_v23 = vadd.f32 %v477_v55, %v8682_v45  ;;  %v479_v51 = vpop.f32.mrb[13].mxu0  ;;  %v6678_v13 = vmul.f32 %v8683_v5, %v6400_v58  ;;  %v860_v58 = vmax.f32 %v828_v2, 0.0 }
 0x12f   :  { %3436 = vmatprep.subr.bf16.mxu0 %v8680_v0  ;;  %1349 = vmatmul.mubr.bf16.gmra.mrb[4].mxu1 %v886_v35  ;;  %v830_v49 = vadd.f32 %v5995_v38, %v786_v62  ;;  %v480_v28 = vadd.f32 %v479_v51, %v8684_v53  ;;  %v481_v59 = vpop.f32.mrb[14].mxu0  ;;  %v831_v6 = vadd.f32 %v5998_v39, %v787_v40  ;;  %v8688_v62 = vld [vmem:[#allocation14_spill] sm:$0xff]  ;;  %v8690_v51 = vld [vmem:[#allocation53_spill] sm:$0xff] }
 0x130   :  { %1462 = vmatmul.mubr.bf16.gmra.mrb[36].mxu0 %v886_v35  ;;  %v8685_v60 = vcombine.low %v8676_v29, %v8677_v43  ;;  %v8686_v0 = vcombine.low %v6239_v27, %v8679_v61  ;;  %v8687_v35 = vld [vmem:[#allocation33_spill] sm:$0xff]  ;;  %v482_v55 = vadd.f32 %v481_v59, %v8688_v62  ;;  %v483_v45 = vpop.f32.mrb[15].mxu0  ;;  %v8691_v53 = vcombine.high %v8689_v8, %v8690_v51  ;;  %v8692_v40 = vld [vmem:[#allocation54_spill] sm:$0xff] }
 0x131   :  { %v647_v19 = vadd.f32 %v8687_v35, %v478_v23  ;;  %v862_v54 = vmax.f32 %v830_v49, 0.0  ;;  %v8694_v10 = vcombine.high %v8692_v40, %v8693_v18  ;;  %v8695_v29 = vld [vmem:[#allocation34_spill] sm:$0xff]  ;;  %v861_v61 = vmax.f32 %v829_v37, 0.0  ;;  %v6698_v23 = vpop.permute.xlu1 %581  ;;  %v8697_v49 = vld [vmem:[#allocation23_spill] sm:$0xff]  ;;  %v8698_v35 = vld [vmem:[#allocation37_spill] sm:$0xff] }
 0x132   :  { %3211 = vmatpush1.bf16.msra.mxu1 %v8685_v60  ;;  %3437 = vmatpush1.bf16.msra.mxu0 %v8686_v0  ;;  %v648_v43 = vadd.f32 %v8695_v29, %v480_v28  ;;  %v8696_v60 = vld [vmem:[#allocation15_spill] sm:$0xff]  ;;  %v863_v0 = vmax.f32 %v831_v6, 0.0  ;;  %v6702_v2 = vmul.f32 %v5939_v42, %v6502_v56  ;;  %v649_v62 = vadd.f32 %v8698_v35, %v482_v55 }
 0x133   :  { %3212 = vmatprep.subr.bf16.mxu1 %v8691_v53  ;;  %3438 = vmatprep.subr.bf16.mxu0 %v8694_v10  ;;  %v484_v27 = vadd.f32 %v483_v45, %v8696_v60  ;;  %v788_v59 = vadd.f32 %v8697_v49, %v647_v19  ;;  %v888_v53 = vpack.c.bf16 %v862_v54, %v860_v58  ;;  %v8700_v10 = vld [vmem:[#allocation38_spill] sm:$0xff]  ;;  %v8703_v19 = vld [vmem:[#allocation43_spill] sm:$0xff]  ;;  %v8705_v58 = vld [vmem:[#allocation57_spill] sm:$0xff] }
 0x134   :  { %v789_v47 = vadd.f32 %v8699_v30, %v648_v43  ;;  %v889_v28 = vpack.c.bf16 %v863_v0, %v861_v61  ;;  %v8701_v37 = vcombine.low %v8689_v8, %v8690_v51  ;;  %v8702_v6 = vcombine.low %v8692_v40, %v8693_v18  ;;  %v8704_v30 = vld [vmem:[#allocation56_spill] sm:$0xff]  ;;  %v8707_v43 = vld [vmem:[#allocation58_spill] sm:$0xff]  ;;  %v8708_v60 = vld [vmem:[#allocation61_spill] sm:$0xff] }
 0x135   :  { %v650_v57 = vadd.f32 %v8700_v10, %v484_v27  ;;  %v6716_v45 = vmul.f32 %v8683_v5, %v6502_v56  ;;  %v790_v55 = vadd.f32 %v8703_v19, %v649_v62  ;;  %v832_v54 = vadd.f32 %v5995_v38, %v788_v59  ;;  %v8710_v51 = vld [vmem:[#allocation44_spill] sm:$0xff]  ;;  %v487_v56 = vpop.f32.mrb[16].mxu0  ;;  %v6731_v27 = vpop.permute.xlu1 %722  ;;  %v8711_v49 = vld [vmem:[#allocation49_spill] sm:$0xff]  ;;  %v8712_v10 = vld [vmem:[#allocation50_spill] sm:$0xff] }
 0x136   :  { %3213 = vmatpush1.bf16.msra.mxu1 %v8701_v37  ;;  %3439 = vmatpush1.bf16.msra.mxu0 %v8702_v6  ;;  %v8706_v29 = vcombine.high %v8704_v30, %v8705_v58  ;;  %v8709_v8 = vcombine.high %v8707_v43, %v8708_v60  ;;  %v6728_v18 = vmul.f32 %v5948_v25, %v6544_v36  ;;  %v489_v35 = vpop.f32.mrb[17].mxu0 }
 0x137   :  { %v791_v40 = vadd.f32 %v8710_v51, %v650_v57  ;;  %1358 = vmatprep.mubr.bf16.mxu1 %v889_v28  ;;  %1471 = vmatprep.mubr.bf16.mxu0 %v889_v28  ;;  %v833_v61 = vadd.f32 %v5998_v39, %v789_v47  ;;  %v6736_v0 = vmul.f32 %v5951_v26, %v6544_v36  ;;  %v491_v37 = vpop.f32.mrb[18].mxu0  ;;  %v864_v51 = vmax.f32 %v832_v54, 0.0  ;;  %v8723_v54 = vld [vmem:[#allocation27_spill] sm:$0xff] }
 0x138   :  { %3214 = vmatprep.subr.bf16.mxu1 %v8706_v29  ;;  %3440 = vmatprep.subr.bf16.mxu0 %v8709_v8  ;;  %v488_v59 = vadd.f32 %v487_v56, %v8711_v49  ;;  %v834_v62 = vadd.f32 %v5995_v38, %v790_v55  ;;  %v6742_v57 = vmul.f32 %v5954_v14, %v6600_v21  ;;  %v8716_v55 = vld [vmem:[#allocation16_spill] sm:$0xff]  ;;  %v493_v8 = vpop.f32.mrb[19].mxu0 }
 0x139   :  { %1359 = vmatmul.mubr.bf16.gmra.mrb[8].mxu1 %v888_v53  ;;  %1472 = vmatmul.mubr.bf16.gmra.mrb[40].mxu0 %v888_v53  ;;  %v490_v28 = vadd.f32 %v489_v35, %v8712_v10  ;;  %v835_v47 = vadd.f32 %v5998_v39, %v791_v40  ;;  %v8713_v36 = vcombine.low %v8704_v30, %v8705_v58  ;;  %v8715_v53 = vld [vmem:[#allocation59_spill] sm:$0xff]  ;;  %v8718_v40 = vld [vmem:[#allocation62_spill] sm:$0xff]  ;;  %v8721_v30 = vld [vmem:[#allocation60_spill] sm:$0xff]  ;;  %v203_v4 = vpop.permute.xlu1 %202 }
 0x13a   :  { %v8714_v6 = vcombine.low %v8707_v43, %v8708_v60  ;;  %v651_v19 = vadd.f32 %v8715_v53, %v488_v59  ;;  %v492_v29 = vadd.f32 %v491_v37, %v8716_v55  ;;  %v866_v56 = vmax.f32 %v834_v62, 0.0  ;;  %v8719_v35 = vld [vmem:[#allocation63_spill] sm:$0xff]  ;;  %v8724_v37 = vld [vmem:[#allocation68_spill] sm:$0xff] }
 0x13b   :  { %3215 = vmatpush1.bf16.msra.mxu1 %v8713_v36  ;;  %v8717_v49 = vcombine.high %v6325_v16, %v6330_v32  ;;  %v8720_v10 = vcombine.high %v8718_v40, %v8719_v35  ;;  %v652_v58 = vadd.f32 %v8721_v30, %v490_v28  ;;  %v8722_v36 = vld [vmem:[#allocation17_spill] sm:$0xff]  ;;  %v865_v60 = vmax.f32 %v833_v61, 0.0 }
 0x13c   :  { %3441 = vmatpush1.bf16.msra.mxu0 %v8714_v6  ;;  %v494_v43 = vadd.f32 %v493_v8, %v8722_v36  ;;  %v867_v6 = vmax.f32 %v835_v47, 0.0  ;;  %v6764_v59 = vmul.f32 %v8668_v34, %v6600_v21  ;;  %v792_v62 = vadd.f32 %v8723_v54, %v651_v19  ;;  %v8737_v54 = vld [vmem:[#allocation19_spill] sm:$0xff] }
 0x13d   :  { %3216 = vmatprep.subr.bf16.mxu1 %v8717_v49  ;;  %3442 = vmatprep.subr.bf16.mxu0 %v8720_v10  ;;  %v653_v53 = vadd.f32 %v8724_v37, %v492_v29  ;;  %v890_v55 = vpack.c.bf16 %v866_v56, %v864_v51  ;;  %v8725_v49 = vld [vmem:[#allocation28_spill] sm:$0xff]  ;;  %v8727_v28 = vcombine.low %v6325_v16, %v6330_v32  ;;  %v8732_v51 = vld [vmem:[#allocation66_spill] sm:$0xff]  ;;  %v8733_v56 = vld [vmem:[#allocation67_spill] sm:$0xff] }
 0x13e   :  { %v793_v50 = vadd.f32 %v8725_v49, %v652_v58  ;;  %v654_v24 = vadd.f32 %v8726_v52, %v494_v43  ;;  %v891_v10 = vpack.c.bf16 %v867_v6, %v865_v60  ;;  %v8728_v61 = vcombine.low %v8718_v40, %v8719_v35  ;;  %v8729_v29 = vld [vmem:[#allocation64_spill] sm:$0xff]  ;;  %v8730_v52 = vld [vmem:[#allocation65_spill] sm:$0xff]  ;;  %v497_v35 = vpop.f32.mrb[20].mxu0 }
 0x13f   :  { %3217 = vmatpush1.bf16.msra.mxu1 %v8727_v28  ;;  %v6778_v21 = vmul.f32 %v5939_v42, %v6648_v7  ;;  %v794_v47 = vadd.f32 %v6495_v33, %v653_v53  ;;  %v836_v19 = vadd.f32 %v5995_v38, %v792_v62  ;;  %v8731_v8 = vcombine.high %v8729_v29, %v8730_v52  ;;  %v499_v36 = vpop.f32.mrb[21].mxu0 }
 0x140   :  { %3443 = vmatpush1.bf16.msra.mxu0 %v8728_v61  ;;  %v8734_v16 = vcombine.high %v8732_v51, %v8733_v56  ;;  %v6790_v32 = vmul.f32 %v8683_v5, %v6648_v7  ;;  %v795_v40 = vadd.f32 %v6499_v22, %v654_v24  ;;  %1368 = vmatprep.mubr.bf16.mxu1 %v891_v10  ;;  %v501_v24 = vpop.f32.mrb[22].mxu0  ;;  %v8742_v61 = vld [vmem:[#allocation20_spill] sm:$0xff] }
 0x141   :  { %3218 = vmatprep.subr.bf16.mxu1 %v8731_v8  ;;  %1481 = vmatprep.mubr.bf16.mxu0 %v891_v10  ;;  %v837_v33 = vadd.f32 %v5998_v39, %v793_v50  ;;  %v6796_v30 = vmul.f32 %v5939_v42, %v6698_v23  ;;  %v498_v58 = vadd.f32 %v497_v35, %v6610_v48  ;;  %v503_v37 = vpop.f32.mrb[23].mxu0 }
 0x142   :  { %3444 = vmatprep.subr.bf16.mxu0 %v8734_v16  ;;  %1369 = vmatmul.mubr.bf16.gmra.mrb[12].mxu1 %v890_v55  ;;  %v838_v43 = vadd.f32 %v5995_v38, %v794_v47  ;;  %v6802_v7 = vmul.f32 %v8683_v5, %v6698_v23  ;;  %v500_v22 = vadd.f32 %v499_v36, %v6642_v9  ;;  %v868_v23 = vmax.f32 %v836_v19, 0.0  ;;  %v8739_v9 = vld [vmem:[#allocation71_spill] sm:$0xff] }
 0x143   :  { %1482 = vmatmul.mubr.bf16.gmra.mrb[44].mxu0 %v890_v55  ;;  %v839_v50 = vadd.f32 %v5998_v39, %v795_v40  ;;  %v8735_v60 = vcombine.low %v8729_v29, %v8730_v52  ;;  %v8736_v48 = vcombine.low %v8732_v51, %v8733_v56  ;;  %v655_v6 = vadd.f32 %v6672_v17, %v498_v58  ;;  %v8738_v55 = vld [vmem:[#allocation70_spill] sm:$0xff]  ;;  %v586_v29 = vpop.permute.xlu1 %585  ;;  %v8743_v19 = vld [vmem:[#allocation31_spill] sm:$0xff]  ;;  %v8744_v40 = vld [vmem:[#allocation32_spill] sm:$0xff] }
 0x144   :  { %v502_v62 = vadd.f32 %v501_v24, %v8737_v54  ;;  %v870_v53 = vmax.f32 %v838_v43, 0.0  ;;  %v8740_v49 = vcombine.high %v8738_v55, %v8739_v9  ;;  %v8741_v10 = vcombine.high %v6413_v1, %v6418_v63 }
 0x145   :  { %3219 = vmatpush1.bf16.msra.mxu1 %v8735_v60  ;;  %3445 = vmatpush1.bf16.msra.mxu0 %v8736_v48  ;;  %v656_v28 = vadd.f32 %v6678_v13, %v500_v22  ;;  %v504_v47 = vadd.f32 %v503_v37, %v8742_v61  ;;  %v869_v52 = vmax.f32 %v837_v33, 0.0  ;;  %v871_v17 = vmax.f32 %v839_v50, 0.0 }
 0x146   :  { %3220 = vmatprep.subr.bf16.mxu1 %v8740_v49  ;;  %3446 = vmatprep.subr.bf16.mxu0 %v8741_v10  ;;  %v770_v8 = vmul.f32 %v5948_v25, %v6731_v27  ;;  %v796_v51 = vadd.f32 %v8743_v19, %v655_v6  ;;  %v657_v56 = vadd.f32 %v6702_v2, %v502_v62  ;;  %v8758_v19 = vld [vmem:[#allocation35_spill] sm:$0xff] }
 0x147   :  { %v892_v16 = vpack.c.bf16 %v870_v53, %v868_v23  ;;  %v797_v35 = vadd.f32 %v8744_v40, %v656_v28  ;;  %v658_v58 = vadd.f32 %v6716_v45, %v504_v47  ;;  %v893_v36 = vpack.c.bf16 %v871_v17, %v869_v52  ;;  %v8748_v45 = vld [vmem:[#allocation72_spill] sm:$0xff]  ;;  %v8754_v28 = vld [vmem:[#allocation74_spill] sm:$0xff] }
 0x148   :  { %v8745_v13 = vcombine.low %v8738_v55, %v8739_v9  ;;  %v8746_v33 = vcombine.low %v6413_v1, %v6418_v63  ;;  %v771_v43 = vmul.f32 %v5951_v26, %v6731_v27  ;;  %v798_v22 = vadd.f32 %v6728_v18, %v657_v56  ;;  %v507_v63 = vpop.f32.mrb[24].mxu0  ;;  %v8759_v40 = vld [vmem:[#allocation36_spill] sm:$0xff] }
 0x149   :  { %v840_v2 = vadd.f32 %v5995_v38, %v796_v51  ;;  %v8747_v24 = vcombine.high %v6430_v12, %v6435_v11  ;;  %v8749_v50 = vcombine.high %v6447_v15, %v8748_v45  ;;  %v799_v60 = vadd.f32 %v6736_v0, %v658_v58  ;;  %1378 = vmatprep.mubr.bf16.mxu1 %v893_v36  ;;  %v509_v6 = vpop.f32.mrb[25].mxu0 }
 0x14a   :  { %3221 = vmatpush1.bf16.msra.mxu1 %v8745_v13  ;;  %3447 = vmatpush1.bf16.msra.mxu0 %v8746_v33  ;;  %v249_v1 = vmul.f32 %v5954_v14, %v203_v4  ;;  %v841_v27 = vadd.f32 %v5998_v39, %v797_v35  ;;  %v250_v18 = vmul.f32 %v8668_v34, %v203_v4  ;;  %v511_v37 = vpop.f32.mrb[26].mxu0  ;;  %v590_v14 = vpop.permute.xlu1 %589 }
 0x14b   :  { %3222 = vmatprep.subr.bf16.mxu1 %v8747_v24  ;;  %3448 = vmatprep.subr.bf16.mxu0 %v8749_v50  ;;  %v508_v48 = vadd.f32 %v507_v63, %v6742_v57  ;;  %v842_v54 = vadd.f32 %v5995_v38, %v798_v22  ;;  %v631_v62 = vmul.f32 %v5939_v42, %v586_v29  ;;  %v8752_v57 = vld [vmem:[#allocation39_spill] sm:$0xff]  ;;  %v513_v9 = vpop.f32.mrb[27].mxu0  ;;  %v872_v49 = vmax.f32 %v840_v2, 0.0 }
 0x14c   :  { %1491 = vmatprep.mubr.bf16.mxu0 %v893_v36  ;;  %1379 = vmatmul.mubr.bf16.gmra.mrb[16].mxu1 %v892_v16  ;;  %v510_v0 = vadd.f32 %v509_v6, %v6764_v59  ;;  %v843_v23 = vadd.f32 %v5998_v39, %v799_v60  ;;  %v8750_v53 = vcombine.low %v6430_v12, %v6435_v11  ;;  %v8753_v59 = vld [vmem:[#allocation73_spill] sm:$0xff]  ;;  %v8757_v11 = vld [vmem:[#allocation40_spill] sm:$0xff]  ;;  %v873_v52 = vmax.f32 %v841_v27, 0.0  ;;  %v8762_v2 = vld [vmem:[#allocation75_spill] sm:$0xff] }
 0x14d   :  { %1492 = vmatmul.mubr.bf16.gmra.mrb[48].mxu0 %v892_v16  ;;  %v8751_v4 = vcombine.low %v6447_v15, %v8748_v45  ;;  %v659_v34 = vadd.f32 %v6778_v21, %v508_v48  ;;  %v512_v55 = vadd.f32 %v511_v37, %v8752_v57  ;;  %v874_v10 = vmax.f32 %v842_v54, 0.0  ;;  %v8765_v45 = vld [vmem:[#allocation77_spill] sm:$0xff]  ;;  %v517_v27 = vpop.f32.mrb[28].mxu0 }
 0x14e   :  { %3223 = vmatpush1.bf16.msra.mxu1 %v8750_v53  ;;  %v8755_v61 = vcombine.high %v8753_v59, %v8754_v28  ;;  %v8756_v47 = vcombine.high %v6485_v46, %v6490_v44  ;;  %v660_v12 = vadd.f32 %v6790_v32, %v510_v0  ;;  %v514_v15 = vadd.f32 %v513_v9, %v8757_v11  ;;  %v731_v13 = vpop.permute.xlu1 %730  ;;  %v8773_v9 = vld [vmem:[#allocation46_spill] sm:$0xff] }
 0x14f   :  { %3449 = vmatpush1.bf16.msra.mxu0 %v8751_v4  ;;  %v875_v17 = vmax.f32 %v843_v23, 0.0  ;;  %v632_v21 = vmul.f32 %v8683_v5, %v586_v29  ;;  %v800_v51 = vadd.f32 %v8758_v19, %v659_v34  ;;  %v661_v56 = vadd.f32 %v6796_v30, %v512_v55  ;;  %v8771_v34 = vld [vmem:[#allocation78_spill] sm:$0xff] }
 0x150   :  { %3224 = vmatprep.subr.bf16.mxu1 %v8755_v61  ;;  %3450 = vmatprep.subr.bf16.mxu0 %v8756_v47  ;;  %v894_v16 = vpack.c.bf16 %v874_v10, %v872_v49  ;;  %v801_v35 = vadd.f32 %v8759_v40, %v660_v12  ;;  %v662_v58 = vadd.f32 %v6802_v7, %v514_v15  ;;  %v8764_v7 = vld [vmem:[#allocation76_spill] sm:$0xff]  ;;  %v8774_v61 = vld [vmem:[#allocation51_spill] sm:$0xff] }
 0x151   :  { %v895_v36 = vpack.c.bf16 %v875_v17, %v873_v52  ;;  %v8760_v32 = vcombine.low %v8753_v59, %v8754_v28  ;;  %v8761_v33 = vcombine.low %v6485_v46, %v6490_v44  ;;  %v802_v29 = vadd.f32 %v770_v8, %v661_v56  ;;  %v1737_v28 = vld [vmem:[%s8510_s7 + $0x368] sm:$0xff]  ;;  %v8775_v52 = vld [vmem:[#allocation52_spill] sm:$0xff] }
 0x152   :  { %v633_v22 = vmul.f32 %v5939_v42, %v590_v14  ;;  %v844_v30 = vadd.f32 %v5995_v38, %v800_v51  ;;  %v8763_v24 = vcombine.high %v6507_v3, %v8762_v2  ;;  %v8766_v50 = vcombine.high %v8764_v7, %v8765_v45  ;;  %v519_v42 = vpop.f32.mrb[29].mxu0 }
 0x153   :  { %3225 = vmatpush1.bf16.msra.mxu1 %v8760_v32  ;;  %3451 = vmatpush1.bf16.msra.mxu0 %v8761_v33  ;;  %v803_v60 = vadd.f32 %v771_v43, %v662_v58  ;;  %v634_v63 = vmul.f32 %v8683_v5, %v590_v14  ;;  %v845_v46 = vadd.f32 %v5998_v39, %v801_v35  ;;  %v521_v54 = vpop.f32.mrb[30].mxu0  ;;  %v8778_v35 = vld [vmem:[#allocation79_spill] sm:$0xff]  ;;  %v8779_v58 = vld [vmem:[#allocation80_spill] sm:$0xff]  ;;  %v8782_v32 = vld [vmem:[#allocation13_spill] sm:$0xff] }
 0x154   :  { %3226 = vmatprep.subr.bf16.mxu1 %v8763_v24  ;;  %3452 = vmatprep.subr.bf16.mxu0 %v8766_v50  ;;  %v518_v44 = vadd.f32 %v517_v27, %v249_v1  ;;  %v774_v8 = vmul.f32 %v5948_v25, %v731_v13  ;;  %v846_v48 = vadd.f32 %v5995_v38, %v802_v29  ;;  %v1732_v25 = vld [vmem:[%s8510_s7 + $0x340] sm:$0xff]  ;;  %v523_v23 = vpop.f32.mrb[31].mxu0  ;;  %v876_v53 = vmax.f32 %v844_v30, 0.0 }
 0x155   :  { %1388 = vmatprep.mubr.bf16.mxu1 %v895_v36  ;;  %1501 = vmatprep.mubr.bf16.mxu0 %v895_v36  ;;  %v520_v6 = vadd.f32 %v519_v42, %v250_v18  ;;  %v775_v0 = vmul.f32 %v5951_v26, %v731_v13  ;;  %v847_v43 = vadd.f32 %v5998_v39, %v803_v60  ;;  %v1736_v18 = vld [vmem:[%s8510_s7 + $0x360] sm:$0xff]  ;;  %v8769_v26 = vld [vmem:[#allocation45_spill] sm:$0xff]  ;;  %v877_v10 = vmax.f32 %v845_v46, 0.0  ;;  %v8781_v13 = vld [vmem:[#allocation18_spill] sm:$0xff] }
 0x156   :  { %1389 = vmatmul.mubr.bf16.gmra.mrb[20].mxu1 %v894_v16  ;;  %1502 = vmatmul.mubr.bf16.gmra.mrb[52].mxu0 %v894_v16  ;;  %v8767_v5 = vcombine.low %v6507_v3, %v8762_v2  ;;  %v8768_v1 = vcombine.low %v8764_v7, %v8765_v45  ;;  %v663_v37 = vadd.f32 %v631_v62, %v518_v44  ;;  %v878_v4 = vmax.f32 %v846_v48, 0.0  ;;  %v1733_v62 = vld [vmem:[%s8510_s7 + $0x348] sm:$0xff]  ;;  %v1744_v46 = vld [vmem:[%s8510_s7 + $0x3a0] sm:$0xff] }
 0x157   :  { %v522_v14 = vadd.f32 %v521_v54, %v8769_v26  ;;  %v8770_v3 = vcombine.high %v6553_v20, %v6558_v41  ;;  %v8772_v57 = vcombine.high %v6567_v31, %v8771_v34  ;;  %v664_v55 = vadd.f32 %v632_v21, %v520_v6  ;;  %v1741_v44 = vld [vmem:[%s8510_s7 + $0x388] sm:$0xff] }
 0x158   :  { %3227 = vmatpush1.bf16.msra.mxu1 %v8767_v5  ;;  %3453 = vmatpush1.bf16.msra.mxu0 %v8768_v1  ;;  %v524_v49 = vadd.f32 %v523_v23, %v8773_v9  ;;  %v879_v59 = vmax.f32 %v847_v43, 0.0  ;;  %v804_v47 = vadd.f32 %v8774_v61, %v663_v37  ;;  %v896_v11 = vpack.c.bf16 %v878_v4, %v876_v53  ;;  %v1752_v43 = vld [vmem:[%s8510_s7 + $0x3e0] sm:$0xff]  ;;  %v1749_v5 = vld [vmem:[%s8510_s7 + $0x3c8] sm:$0xff]  ;;  %v8786_v9 = vld [vmem:[#allocation6_spill] sm:$0xff] }
 0x159   :  { %3228 = vmatprep.subr.bf16.mxu1 %v8770_v3  ;;  %3454 = vmatprep.subr.bf16.mxu0 %v8772_v57  ;;  %v665_v12 = vadd.f32 %v633_v22, %v522_v14  ;;  %v4643_v15 = vcombine.high %v1732_v25, %v1736_v18  ;;  %v805_v17 = vadd.f32 %v8775_v52, %v664_v55  ;;  %v6971_v14 = vld [vmem:[%s8510_s7 + $0x400] sm:$0xff]  ;;  %v6981_v53 = vld [vmem:[%s8510_s7 + $0x408] sm:$0xff] }
 0x15a   :  { %v666_v21 = vadd.f32 %v634_v63, %v524_v49  ;;  %v897_v19 = vpack.c.bf16 %v879_v59, %v877_v10  ;;  %v8776_v51 = vcombine.low %v6553_v20, %v6558_v41  ;;  %v8777_v56 = vcombine.low %v6567_v31, %v8771_v34  ;;  %v6976_v23 = vld [vmem:[%s8510_s7 + $0x420] sm:$0xff]  ;;  %v6988_v3 = vld [vmem:[%s8510_s7 + $0x428] sm:$0xff] }
 0x15b   :  { %v848_v16 = vadd.f32 %v5995_v38, %v804_v47  ;;  %v806_v40 = vadd.f32 %v774_v8, %v665_v12  ;;  %v8780_v36 = vcombine.high %v8778_v35, %v8779_v58  ;;  %v8783_v33 = vcombine.high %v8781_v13, %v8782_v32  ;;  %v1745_v8 = vld [vmem:[%s8510_s7 + $0x3a8] sm:$0xff]  ;;  %v964_v10 = vld [vmem:[%s8509_s6] sm:$0xf] }
 0x15c   :  { %3229 = vmatpush1.bf16.msra.mxu1 %v8776_v51  ;;  %3455 = vmatpush1.bf16.msra.mxu0 %v8777_v56  ;;  %v4645_v29 = vcombine.high %v1733_v62, %v1737_v28  ;;  %v849_v22 = vadd.f32 %v5998_v39, %v805_v17  ;;  %v807_v20 = vadd.f32 %v775_v0, %v666_v21  ;;  %v1748_v0 = vld [vmem:[%s8510_s7 + $0x3c0] sm:$0xff]  ;;  %v8584_v49 = vsub.s32 2, %v8786_v9 }
 0x15d   :  { %3230 = vmatprep.subr.bf16.mxu1 %v8780_v36  ;;  %3456 = vmatprep.subr.bf16.mxu0 %v8783_v33  ;;  %v850_v31 = vadd.f32 %v5995_v38, %v806_v40  ;;  %v8784_v30 = vcombine.low %v8778_v35, %v8779_v58  ;;  %v8785_v2 = vcombine.low %v8781_v13, %v8782_v32  ;;  %v880_v45 = vmax.f32 %v848_v16, 0.0  ;;  %v8788_v47 = vld [vmem:[#allocation8_spill] sm:$0xff]  ;;  %v7030_v40 = vld [vmem:[%s8510_s7 + $0x448] sm:$0xff] }
 0x15e   :  { %1398 = vmatprep.mubr.bf16.mxu1 %v897_v19  ;;  %1511 = vmatprep.mubr.bf16.mxu0 %v897_v19  ;;  %v851_v41 = vadd.f32 %v5998_v39, %v807_v20  ;;  %v4642_v24 = vcombine.low %v1732_v25, %v1736_v18  ;;  %v4644_v7 = vcombine.low %v1733_v62, %v1737_v28  ;;  %v881_v60 = vmax.f32 %v849_v22, 0.0  ;;  %v1740_v39 = vld [vmem:[%s8510_s7 + $0x380] sm:$0xff]  ;;  %v1753_v25 = vld [vmem:[%s8510_s7 + $0x3e8] sm:$0xff]  ;;  %v8787_v62 = vld [vmem:[#allocation7_spill] sm:$0xff] }
 0x15f   :  { %1399 = vmatmul.mubr.bf16.gmra.mrb[24].mxu1 %v896_v11  ;;  %1512 = vmatmul.mubr.bf16.gmra.mrb[56].mxu0 %v896_v11  ;;  %v882_v50 = vmax.f32 %v850_v31, 0.0  ;;  %v4651_v42 = vcombine.high %v1740_v39, %v1744_v46  ;;  %v4650_v48 = vcombine.low %v1740_v39, %v1744_v46  ;;  %v4652_v6 = vcombine.low %v1741_v44, %v1745_v8  ;;  %v7018_v17 = vld [vmem:[%s8510_s7 + $0x440] sm:$0xff]  ;;  %v7035_v35 = vld [vmem:[%s8510_s7 + $0x468] sm:$0xff] }
 0x160   :  { %3231 = vmatpush1.bf16.msra.mxu1 %v8784_v30  ;;  %3457 = vmatpush1.bf16.msra.mxu0 %v8785_v2  ;;  %v883_v38 = vmax.f32 %v851_v41, 0.0  ;;  %v4653_v54 = vcombine.high %v1741_v44, %v1745_v8  ;;  %v4659_v1 = vcombine.high %v1748_v0, %v1752_v43  ;;  %v4658_v18 = vcombine.low %v1748_v0, %v1752_v43  ;;  %v7023_v21 = vld [vmem:[%s8510_s7 + $0x460] sm:$0xff]  ;;  %v7067_v39 = vld [vmem:[%s8510_s7 + $0x4a8] sm:$0xff] }
 0x161   :  { %3232 = vmatprep.subr.bf16.mxu1 %v4643_v15  ;;  %3458 = vmatprep.subr.bf16.mxu0 %v4645_v29  ;;  %v898_v63 = vpack.c.bf16 %v882_v50, %v880_v45  ;;  %v4660_v37 = vcombine.low %v1749_v5, %v1753_v25  ;;  %v4661_v26 = vcombine.high %v1749_v5, %v1753_v25  ;;  %v8583_v59 = vsub.s32 3, %v8786_v9  ;;  %v7057_v45 = vld [vmem:[%s8510_s7 + $0x4a0] sm:$0xff] }
 0x162   :  { %v899_v27 = vpack.c.bf16 %v883_v38, %v881_v60  ;;  %v4667_v4 = vcombine.high %v6971_v14, %v6976_v23  ;;  %v4666_v34 = vcombine.low %v6971_v14, %v6976_v23  ;;  %v4668_v57 = vcombine.low %v6981_v53, %v6988_v3 }
 0x163   :  { %v4669_v55 = vcombine.high %v6981_v53, %v6988_v3  ;;  %v7002_v28 = vrot.slane %v964_v10, %v8787_v62  ;;  %v7006_v61 = vrot.slane %v964_v10, %v8584_v49  ;;  %v7009_v12 = vrot.slane %v964_v10, %v8788_v47  ;;  %v7146_v53 = vld [vmem:[%s8510_s7 + $0x508] sm:$0xff]  ;;  %v1876_v49 = vld [vmem:[%s8510_s7 + $0x7c0] sm:$0xff] }
 0x164   :  { %3233 = vmatpush1.bf16.msra.mxu1 %v4642_v24  ;;  %3459 = vmatpush1.bf16.msra.mxu0 %v4644_v7  ;;  %v7013_v11 = vrot.slane %v964_v10, %v8583_v59  ;;  %v4675_v31 = vcombine.high %v7018_v17, %v7023_v21  ;;  %v4674_v2 = vcombine.low %v7018_v17, %v7023_v21  ;;  %v7052_v7 = vld [vmem:[%s8510_s7 + $0x480] sm:$0xff]  ;;  %v7103_v10 = vld [vmem:[%s8510_s7 + $0x4e8] sm:$0xff] }
 0x165   :  { %1408 = vmatprep.mubr.bf16.mxu1 %v899_v27  ;;  %1521 = vmatprep.mubr.bf16.mxu0 %v899_v27  ;;  %v4676_v24 = vcombine.low %v7030_v40, %v7035_v35  ;;  %v7062_v27 = vld [vmem:[%s8510_s7 + $0x488] sm:$0xff]  ;;  %v4677_v43 = vcombine.high %v7030_v40, %v7035_v35  ;;  %v4683_v5 = vcombine.high %v7052_v7, %v7057_v45 }
 0x166   :  { %3234 = vmatprep.subr.bf16.mxu1 %v4651_v42  ;;  %3460 = vmatprep.subr.bf16.mxu0 %v4653_v54  ;;  %v7151_v3 = vld [vmem:[%s8510_s7 + $0x528] sm:$0xff] }
 0x167   :  { %1409 = vmatmul.mubr.bf16.gmra.mrb[28].mxu1 %v898_v63  ;;  %1522 = vmatmul.mubr.bf16.gmra.mrb[60].mxu0 %v898_v63  ;;  %v4701_v17 = vcombine.high %v7146_v53, %v7151_v3  ;;  %v7193_v21 = vld [vmem:[%s8510_s7 + $0x548] sm:$0xff] }
 0x168   :  { %3235 = vmatpush1.bf16.msra.mxu1 %v4650_v48  ;;  %3461 = vmatpush1.bf16.msra.mxu0 %v4652_v6  ;;  %v7072_v48 = vld [vmem:[%s8510_s7 + $0x4c0] sm:$0xff]  ;;  %v7198_v40 = vld [vmem:[%s8510_s7 + $0x568] sm:$0xff] }
 0x169   :  { %3236 = vmatprep.subr.bf16.mxu1 %v4659_v1  ;;  %3462 = vmatprep.subr.bf16.mxu0 %v4661_v26  ;;  %v7077_v6 = vld [vmem:[%s8510_s7 + $0x4e0] sm:$0xff]  ;;  %v4682_v26 = vcombine.low %v7052_v7, %v7057_v45 }
 0x16c   :  { %3237 = vmatpush1.bf16.msra.mxu1 %v4658_v18  ;;  %3463 = vmatpush1.bf16.msra.mxu0 %v4660_v37 }
 0x16d   :  { %3319 = vmatprep.subr.bf16.mxu1 %v4667_v4  ;;  %3545 = vmatprep.subr.bf16.mxu0 %v4669_v55  ;;  %v4684_v4 = vcombine.low %v7062_v27, %v7067_v39  ;;  %v7098_v55 = vld [vmem:[%s8510_s7 + $0x4c8] sm:$0xff] }
 0x1f9   :  { %v1340_v15 = vpop.f32.mrb[0].mxu1  ;;  %v1453_v52 = vpop.f32.mrb[32].mxu0 }
 0x1fa   :  { %v1341_v19 = vadd.f32 %v1340_v15, %v7002_v28  ;;  %v1454_v51 = vadd.f32 %v1453_v52, %v7006_v61  ;;  %v1342_v56 = vpop.f32.mrb[1].mxu1  ;;  %v1455_v16 = vpop.f32.mrb[33].mxu0 }
 0x1fb   :  { %v1343_v58 = vadd.f32 %v1342_v56, %v7009_v12  ;;  %v1456_v36 = vadd.f32 %v1455_v16, %v7013_v11  ;;  %v1344_v13 = vpop.f32.mrb[2].mxu1  ;;  %v1457_v32 = vpop.f32.mrb[34].mxu0  ;;  %v4685_v56 = vcombine.high %v7062_v27, %v7067_v39  ;;  %v4691_v16 = vcombine.high %v7072_v48, %v7077_v6 }
 0x1fc   :  { %v1345_v33 = vadd.f32 %v1344_v13, %v7002_v28  ;;  %v1458_v29 = vadd.f32 %v1457_v32, %v7006_v61  ;;  %v1346_v22 = vpop.f32.mrb[3].mxu1  ;;  %v1459_v20 = vpop.f32.mrb[35].mxu0  ;;  %v1532_v50 = vmax.f32 %v1341_v19, 0.0  ;;  %v1534_v60 = vmax.f32 %v1454_v51, 0.0 }
 0x1fd   :  { %v1347_v41 = vadd.f32 %v1346_v22, %v7009_v12  ;;  %v1460_v30 = vadd.f32 %v1459_v20, %v7013_v11  ;;  %v1533_v46 = vmax.f32 %v1343_v58, 0.0  ;;  %v1535_v44 = vmax.f32 %v1456_v36, 0.0 }
 0x1fe   :  { %v1536_v38 = vmax.f32 %v1345_v33, 0.0  ;;  %v1538_v63 = vmax.f32 %v1458_v29, 0.0  ;;  %v4690_v33 = vcombine.low %v7072_v48, %v7077_v6 }
 0x1ff   :  { %v1537_v42 = vmax.f32 %v1347_v41, 0.0  ;;  %v1539_v8 = vmax.f32 %v1460_v30, 0.0  ;;  %v4692_v30 = vcombine.low %v7098_v55, %v7103_v10 }
 0x200   :  { %v7079_v54 = vpack.c.bf16 %v1536_v38, %v1532_v50  ;;  %v7081_v0 = vpack.c.bf16 %v1538_v63, %v1534_v60  ;;  %v4693_v38 = vcombine.high %v7098_v55, %v7103_v10  ;;  %v7136_v63 = vld [vmem:[%s8510_s7 + $0x500] sm:$0xff] }
 0x201   :  { %v7087_v1 = vpack.c.bf16 %v1537_v42, %v1533_v46  ;;  %v7089_v25 = vpack.c.bf16 %v1539_v8, %v1535_v44  ;;  %v7141_v46 = vld [vmem:[%s8510_s7 + $0x520] sm:$0xff] }
 0x202   :  { %v1350_v18 = vpop.f32.mrb[4].mxu1 }
 0x203   :  { %v1463_v37 = vpop.f32.mrb[36].mxu0  ;;  %v1351_v15 = vadd.f32 %v1350_v18, %v7002_v28  ;;  %v1352_v19 = vpop.f32.mrb[5].mxu1  ;;  %3238 = vmatprep.mubr.bf16.mxu1 %v7087_v1  ;;  %3464 = vmatprep.mubr.bf16.mxu0 %v7087_v1 }
 0x204   :  { %v1464_v52 = vadd.f32 %v1463_v37, %v7006_v61  ;;  %v1465_v51 = vpop.f32.mrb[37].mxu0  ;;  %v1353_v58 = vadd.f32 %v1352_v19, %v7009_v12  ;;  %v1354_v13 = vpop.f32.mrb[6].mxu1  ;;  %3239 = vmatmul.mubr.bf16.vlgmr.msra.gmra.mrb[32].mxu1 %v7079_v54  ;;  %3465 = vmatmul.mubr.bf16.vlgmr.msra.gmra.mrb[64].mxu0 %v7079_v54  ;;  %v7169_v19 = vld [vmem:[%s8510_s7 + $0x560] sm:$0xff] }
 0x205   :  { %v1466_v36 = vadd.f32 %v1465_v51, %v7013_v11  ;;  %v1467_v32 = vpop.f32.mrb[38].mxu0  ;;  %v1355_v29 = vadd.f32 %v1354_v13, %v7002_v28  ;;  %v1356_v20 = vpop.f32.mrb[7].mxu1  ;;  %3320 = vmatpush1.bf16.msra.mxu1 %v4666_v34  ;;  %3546 = vmatpush1.bf16.msra.mxu0 %v4668_v57  ;;  %v1540_v44 = vmax.f32 %v1351_v15, 0.0 }
 0x206   :  { %v1468_v22 = vadd.f32 %v1467_v32, %v7006_v61  ;;  %v1469_v41 = vpop.f32.mrb[39].mxu0  ;;  %v1357_v50 = vadd.f32 %v1356_v20, %v7009_v12  ;;  %v1542_v14 = vmax.f32 %v1464_v52, 0.0  ;;  %3321 = vmatprep.subr.bf16.mxu1 %v4675_v31  ;;  %3547 = vmatprep.subr.bf16.mxu0 %v4677_v43  ;;  %v1541_v57 = vmax.f32 %v1353_v58, 0.0  ;;  %v7164_v52 = vld [vmem:[%s8510_s7 + $0x540] sm:$0xff] }
 0x207   :  { %v1470_v60 = vadd.f32 %v1469_v41, %v7013_v11  ;;  %v1544_v23 = vmax.f32 %v1355_v29, 0.0  ;;  %v1543_v42 = vmax.f32 %v1466_v36, 0.0  ;;  %v4698_v31 = vcombine.low %v7136_v63, %v7141_v46 }
 0x208   :  { %v1546_v34 = vmax.f32 %v1468_v22, 0.0  ;;  %v1545_v8 = vmax.f32 %v1357_v50, 0.0  ;;  %v4699_v43 = vcombine.high %v7136_v63, %v7141_v46  ;;  %v4700_v32 = vcombine.low %v7146_v53, %v7151_v3  ;;  %v7320_v53 = vld [vmem:[%s8510_s7 + $0x600] sm:$0xff] }
 0x209   :  { %v1547_v18 = vmax.f32 %v1470_v60, 0.0  ;;  %v7153_v37 = vpack.c.bf16 %v1544_v23, %v1540_v44  ;;  %3322 = vmatpush1.bf16.msra.mxu1 %v4674_v2  ;;  %3548 = vmatpush1.bf16.msra.mxu0 %v4676_v24  ;;  %v4706_v23 = vcombine.low %v7164_v52, %v7169_v19  ;;  %v7325_v3 = vld [vmem:[%s8510_s7 + $0x620] sm:$0xff] }
 0x20a   :  { %v7155_v15 = vpack.c.bf16 %v1546_v34, %v1542_v14  ;;  %v7171_v51 = vpack.c.bf16 %v1545_v8, %v1541_v57  ;;  %3323 = vmatprep.subr.bf16.mxu1 %v4683_v5  ;;  %3549 = vmatprep.subr.bf16.mxu0 %v4685_v56  ;;  %v4707_v56 = vcombine.high %v7164_v52, %v7169_v19  ;;  %v7225_v8 = vld [vmem:[%s8510_s7 + $0x580] sm:$0xff] }
 0x20b   :  { %v7173_v58 = vpack.c.bf16 %v1547_v18, %v1543_v42  ;;  %v4708_v42 = vcombine.low %v7193_v21, %v7198_v40  ;;  %v7230_v18 = vld [vmem:[%s8510_s7 + $0x5a0] sm:$0xff]  ;;  %v4730_v52 = vcombine.low %v7320_v53, %v7325_v3 }
 0x20c   :  { %v1360_v36 = vpop.f32.mrb[8].mxu1  ;;  %v1473_v13 = vpop.f32.mrb[40].mxu0  ;;  %3248 = vmatprep.mubr.bf16.mxu1 %v7171_v51  ;;  %3474 = vmatprep.mubr.bf16.mxu0 %v7171_v51  ;;  %v7367_v19 = vld [vmem:[%s8510_s7 + $0x640] sm:$0xff] }
 0x20d   :  { %v1361_v29 = vadd.f32 %v1360_v36, %v7002_v28  ;;  %v1474_v22 = vadd.f32 %v1473_v13, %v7006_v61  ;;  %v1362_v20 = vpop.f32.mrb[9].mxu1  ;;  %v1475_v41 = vpop.f32.mrb[41].mxu0  ;;  %3249 = vmatmul.mubr.bf16.gmra.mrb[36].mxu1 %v7153_v37  ;;  %3475 = vmatmul.mubr.bf16.gmra.mrb[68].mxu0 %v7153_v37 }
 0x20e   :  { %v1363_v35 = vadd.f32 %v1362_v20, %v7009_v12  ;;  %v1476_v2 = vadd.f32 %v1475_v41, %v7013_v11  ;;  %v1364_v24 = vpop.f32.mrb[10].mxu1  ;;  %v1477_v5 = vpop.f32.mrb[42].mxu0  ;;  %3324 = vmatpush1.bf16.msra.mxu1 %v4682_v26  ;;  %3550 = vmatpush1.bf16.msra.mxu0 %v4684_v4  ;;  %v7238_v20 = vld [vmem:[%s8510_s7 + $0x588] sm:$0xff] }
 0x20f   :  { %v1365_v50 = vadd.f32 %v1364_v24, %v7002_v28  ;;  %v1478_v60 = vadd.f32 %v1477_v5, %v7006_v61  ;;  %v1366_v44 = vpop.f32.mrb[11].mxu1  ;;  %v1479_v14 = vpop.f32.mrb[43].mxu0  ;;  %v1548_v36 = vmax.f32 %v1361_v29, 0.0  ;;  %v1550_v7 = vmax.f32 %v1474_v22, 0.0  ;;  %3325 = vmatprep.subr.bf16.mxu1 %v4691_v16  ;;  %3551 = vmatprep.subr.bf16.mxu0 %v4693_v38  ;;  %v7243_v29 = vld [vmem:[%s8510_s7 + $0x5a8] sm:$0xff] }
 0x210   :  { %v1367_v34 = vadd.f32 %v1366_v44, %v7009_v12  ;;  %v1480_v57 = vadd.f32 %v1479_v14, %v7013_v11  ;;  %v1549_v27 = vmax.f32 %v1363_v35, 0.0  ;;  %v1551_v39 = vmax.f32 %v1476_v2, 0.0  ;;  %v7273_v44 = vld [vmem:[%s8510_s7 + $0x5e0] sm:$0xff] }
 0x211   :  { %v1552_v45 = vmax.f32 %v1365_v50, 0.0  ;;  %v1554_v26 = vmax.f32 %v1478_v60, 0.0  ;;  %v4709_v16 = vcombine.high %v7193_v21, %v7198_v40  ;;  %v4715_v38 = vcombine.high %v7225_v8, %v7230_v18  ;;  %v7268_v60 = vld [vmem:[%s8510_s7 + $0x5c0] sm:$0xff] }
 0x212   :  { %v1553_v4 = vmax.f32 %v1367_v34, 0.0  ;;  %v1555_v13 = vmax.f32 %v1480_v57, 0.0  ;;  %3326 = vmatpush1.bf16.msra.mxu1 %v4690_v33  ;;  %3552 = vmatpush1.bf16.msra.mxu0 %v4692_v30  ;;  %v4714_v50 = vcombine.low %v7225_v8, %v7230_v18  ;;  %v4716_v10 = vcombine.low %v7238_v20, %v7243_v29  ;;  %v7372_v21 = vld [vmem:[%s8510_s7 + $0x660] sm:$0xff] }
 0x213   :  { %v7245_v22 = vpack.c.bf16 %v1552_v45, %v1548_v36  ;;  %v7247_v41 = vpack.c.bf16 %v1554_v26, %v1550_v7  ;;  %3327 = vmatprep.subr.bf16.mxu1 %v4699_v43  ;;  %3553 = vmatprep.subr.bf16.mxu0 %v4701_v17  ;;  %v4717_v36 = vcombine.high %v7238_v20, %v7243_v29 }
 0x214   :  { %v7253_v35 = vpack.c.bf16 %v1553_v4, %v1549_v27  ;;  %v7255_v2 = vpack.c.bf16 %v1555_v13, %v1551_v39  ;;  %v4723_v26 = vcombine.high %v7268_v60, %v7273_v44  ;;  %v4722_v4 = vcombine.low %v7268_v60, %v7273_v44  ;;  %v7307_v13 = vld [vmem:[%s8510_s7 + $0x5c8] sm:$0xff] }
 0x215   :  { %v1370_v24 = vpop.f32.mrb[12].mxu1 }
 0x216   :  { %v1483_v5 = vpop.f32.mrb[44].mxu0  ;;  %v1371_v48 = vadd.f32 %v1370_v24, %v7002_v28  ;;  %v1372_v33 = vpop.f32.mrb[13].mxu1  ;;  %3258 = vmatprep.mubr.bf16.mxu1 %v7253_v35  ;;  %3484 = vmatprep.mubr.bf16.mxu0 %v7253_v35  ;;  %v7312_v24 = vld [vmem:[%s8510_s7 + $0x5e8] sm:$0xff] }
 0x217   :  { %v1484_v6 = vadd.f32 %v1483_v5, %v7006_v61  ;;  %v1485_v55 = vpop.f32.mrb[45].mxu0  ;;  %v1373_v30 = vadd.f32 %v1372_v33, %v7009_v12  ;;  %v1374_v34 = vpop.f32.mrb[14].mxu1  ;;  %3259 = vmatmul.mubr.bf16.gmra.mrb[40].mxu1 %v7245_v22  ;;  %3485 = vmatmul.mubr.bf16.gmra.mrb[72].mxu0 %v7245_v22 }
 0x218   :  { %v1486_v14 = vadd.f32 %v1485_v55, %v7013_v11  ;;  %v1487_v57 = vpop.f32.mrb[46].mxu0  ;;  %v1375_v7 = vadd.f32 %v1374_v34, %v7002_v28  ;;  %v1376_v17 = vpop.f32.mrb[15].mxu1  ;;  %3328 = vmatpush1.bf16.msra.mxu1 %v4698_v31  ;;  %3554 = vmatpush1.bf16.msra.mxu0 %v4700_v32  ;;  %v1556_v5 = vmax.f32 %v1371_v48, 0.0 }
 0x219   :  { %v1488_v43 = vadd.f32 %v1487_v57, %v7006_v61  ;;  %v1489_v45 = vpop.f32.mrb[47].mxu0  ;;  %v1377_v27 = vadd.f32 %v1376_v17, %v7009_v12  ;;  %v1558_v63 = vmax.f32 %v1484_v6, 0.0  ;;  %3329 = vmatprep.subr.bf16.mxu1 %v4707_v56  ;;  %3555 = vmatprep.subr.bf16.mxu0 %v4709_v16  ;;  %v1557_v32 = vmax.f32 %v1373_v30, 0.0  ;;  %v7338_v57 = vld [vmem:[%s8510_s7 + $0x608] sm:$0xff] }
 0x21a   :  { %v1490_v39 = vadd.f32 %v1489_v45, %v7013_v11  ;;  %v1560_v46 = vmax.f32 %v1375_v7, 0.0  ;;  %v1559_v48 = vmax.f32 %v1486_v14, 0.0  ;;  %v4724_v56 = vcombine.low %v7307_v13, %v7312_v24  ;;  %v7343_v30 = vld [vmem:[%s8510_s7 + $0x628] sm:$0xff] }
 0x21b   :  { %v1562_v31 = vmax.f32 %v1488_v43, 0.0  ;;  %v1561_v6 = vmax.f32 %v1377_v27, 0.0  ;;  %v4725_v16 = vcombine.high %v7307_v13, %v7312_v24  ;;  %v4731_v45 = vcombine.high %v7320_v53, %v7325_v3 }
 0x21c   :  { %v1563_v33 = vmax.f32 %v1490_v39, 0.0  ;;  %v7327_v55 = vpack.c.bf16 %v1560_v46, %v1556_v5  ;;  %3330 = vmatpush1.bf16.msra.mxu1 %v4706_v23  ;;  %3556 = vmatpush1.bf16.msra.mxu0 %v4708_v42 }
 0x21d   :  { %v7329_v34 = vpack.c.bf16 %v1562_v31, %v1558_v63  ;;  %v7345_v14 = vpack.c.bf16 %v1561_v6, %v1557_v32  ;;  %3331 = vmatprep.subr.bf16.mxu1 %v4715_v38  ;;  %3557 = vmatprep.subr.bf16.mxu0 %v4717_v36  ;;  %v4732_v36 = vcombine.low %v7338_v57, %v7343_v30 }
 0x21e   :  { %v7347_v7 = vpack.c.bf16 %v1563_v33, %v1559_v48  ;;  %v4733_v32 = vcombine.high %v7338_v57, %v7343_v30  ;;  %v4739_v33 = vcombine.high %v7367_v19, %v7372_v21  ;;  %v7485_v57 = vld [vmem:[%s8510_s7 + $0x6c8] sm:$0xff] }
 0x21f   :  { %v1380_v43 = vpop.f32.mrb[16].mxu1  ;;  %3268 = vmatprep.mubr.bf16.mxu1 %v7345_v14  ;;  %3494 = vmatprep.mubr.bf16.mxu0 %v7345_v14  ;;  %v7490_v30 = vld [vmem:[%s8510_s7 + $0x6e8] sm:$0xff] }
 0x220   :  { %v1493_v17 = vpop.f32.mrb[48].mxu0  ;;  %v1381_v27 = vadd.f32 %v1380_v43, %v7002_v28  ;;  %v1382_v13 = vpop.f32.mrb[17].mxu1  ;;  %3269 = vmatmul.mubr.bf16.gmra.mrb[44].mxu1 %v7327_v55  ;;  %3495 = vmatmul.mubr.bf16.gmra.mrb[76].mxu0 %v7327_v55  ;;  %v7399_v43 = vld [vmem:[%s8510_s7 + $0x648] sm:$0xff] }
 0x221   :  { %v1494_v39 = vadd.f32 %v1493_v17, %v7006_v61  ;;  %v1495_v24 = vpop.f32.mrb[49].mxu0  ;;  %v1383_v40 = vadd.f32 %v1382_v13, %v7009_v12  ;;  %v1384_v42 = vpop.f32.mrb[18].mxu1  ;;  %3332 = vmatpush1.bf16.msra.mxu1 %v4714_v50  ;;  %3558 = vmatpush1.bf16.msra.mxu0 %v4716_v10  ;;  %v7404_v17 = vld [vmem:[%s8510_s7 + $0x668] sm:$0xff] }
 0x222   :  { %v1496_v23 = vadd.f32 %v1495_v24, %v7013_v11  ;;  %v1497_v38 = vpop.f32.mrb[50].mxu0  ;;  %v1385_v5 = vadd.f32 %v1384_v42, %v7002_v28  ;;  %v1386_v46 = vpop.f32.mrb[19].mxu1  ;;  %v1564_v13 = vmax.f32 %v1381_v27, 0.0  ;;  %3333 = vmatprep.subr.bf16.mxu1 %v4723_v26  ;;  %3559 = vmatprep.subr.bf16.mxu0 %v4725_v16  ;;  %v7412_v42 = vld [vmem:[%s8510_s7 + $0x680] sm:$0xff]  ;;  %v4738_v26 = vcombine.low %v7367_v19, %v7372_v21  ;;  %v7439_v19 = vld [vmem:[%s8510_s7 + $0x688] sm:$0xff] }
 0x223   :  { %v1498_v63 = vadd.f32 %v1497_v38, %v7006_v61  ;;  %v1499_v31 = vpop.f32.mrb[51].mxu0  ;;  %v1387_v48 = vadd.f32 %v1386_v46, %v7009_v12  ;;  %v1566_v8 = vmax.f32 %v1494_v39, 0.0  ;;  %v1565_v20 = vmax.f32 %v1383_v40, 0.0  ;;  %v7417_v27 = vld [vmem:[%s8510_s7 + $0x6a0] sm:$0xff]  ;;  %v7444_v21 = vld [vmem:[%s8510_s7 + $0x6a8] sm:$0xff] }
 0x224   :  { %v1500_v6 = vadd.f32 %v1499_v31, %v7013_v11  ;;  %v1568_v18 = vmax.f32 %v1385_v5, 0.0  ;;  %v1567_v29 = vmax.f32 %v1496_v23, 0.0  ;;  %v4740_v16 = vcombine.low %v7399_v43, %v7404_v17 }
 0x225   :  { %v1570_v50 = vmax.f32 %v1498_v63, 0.0  ;;  %v1569_v10 = vmax.f32 %v1387_v48, 0.0  ;;  %3334 = vmatpush1.bf16.msra.mxu1 %v4722_v4  ;;  %3560 = vmatpush1.bf16.msra.mxu0 %v4724_v56  ;;  %v4741_v46 = vcombine.high %v7399_v43, %v7404_v17  ;;  %v4747_v56 = vcombine.high %v7412_v42, %v7417_v27 }
 0x226   :  { %v1571_v24 = vmax.f32 %v1500_v6, 0.0  ;;  %v7419_v39 = vpack.c.bf16 %v1568_v18, %v1564_v13  ;;  %3335 = vmatprep.subr.bf16.mxu1 %v4731_v45  ;;  %3561 = vmatprep.subr.bf16.mxu0 %v4733_v32  ;;  %v4746_v13 = vcombine.low %v7412_v42, %v7417_v27 }
 0x227   :  { %v7421_v38 = vpack.c.bf16 %v1570_v50, %v1566_v8  ;;  %v7427_v40 = vpack.c.bf16 %v1569_v10, %v1565_v20  ;;  %v4748_v50 = vcombine.low %v7439_v19, %v7444_v21  ;;  %v4749_v10 = vcombine.high %v7439_v19, %v7444_v21 }
 0x228   :  { %v7429_v23 = vpack.c.bf16 %v1571_v24, %v1567_v29  ;;  %v7475_v24 = vld [vmem:[%s8510_s7 + $0x6c0] sm:$0xff] }
 0x229   :  { %v1390_v5 = vpop.f32.mrb[20].mxu1  ;;  %v1503_v63 = vpop.f32.mrb[52].mxu0  ;;  %3278 = vmatprep.mubr.bf16.mxu1 %v7427_v40  ;;  %3504 = vmatprep.mubr.bf16.mxu0 %v7427_v40 }
 0x22a   :  { %v1391_v31 = vadd.f32 %v1390_v5, %v7002_v28  ;;  %v1504_v60 = vadd.f32 %v1503_v63, %v7006_v61  ;;  %v1392_v44 = vpop.f32.mrb[21].mxu1  ;;  %v1505_v4 = vpop.f32.mrb[53].mxu0  ;;  %3279 = vmatmul.mubr.bf16.gmra.mrb[48].mxu1 %v7419_v39  ;;  %3505 = vmatmul.mubr.bf16.gmra.mrb[80].mxu0 %v7419_v39  ;;  %v7480_v5 = vld [vmem:[%s8510_s7 + $0x6e0] sm:$0xff] }
 0x22b   :  { %v1393_v48 = vadd.f32 %v1392_v44, %v7009_v12  ;;  %v1506_v6 = vadd.f32 %v1505_v4, %v7013_v11  ;;  %v1394_v43 = vpop.f32.mrb[22].mxu1  ;;  %v1507_v17 = vpop.f32.mrb[54].mxu0  ;;  %3336 = vmatpush1.bf16.msra.mxu1 %v4730_v52  ;;  %3562 = vmatpush1.bf16.msra.mxu0 %v4732_v36  ;;  %v7503_v4 = vld [vmem:[%s8510_s7 + $0x700] sm:$0xff] }
 0x22c   :  { %v1395_v8 = vadd.f32 %v1394_v43, %v7002_v28  ;;  %v1508_v45 = vadd.f32 %v1507_v17, %v7006_v61  ;;  %v1396_v32 = vpop.f32.mrb[23].mxu1  ;;  %v1509_v18 = vpop.f32.mrb[55].mxu0  ;;  %v1572_v63 = vmax.f32 %v1391_v31, 0.0  ;;  %v1574_v53 = vmax.f32 %v1504_v60, 0.0  ;;  %3337 = vmatprep.subr.bf16.mxu1 %v4739_v33  ;;  %3563 = vmatprep.subr.bf16.mxu0 %v4741_v46 }
 0x22d   :  { %v1397_v20 = vadd.f32 %v1396_v32, %v7009_v12  ;;  %v1510_v29 = vadd.f32 %v1509_v18, %v7013_v11  ;;  %v1573_v36 = vmax.f32 %v1393_v48, 0.0  ;;  %v1575_v19 = vmax.f32 %v1506_v6, 0.0  ;;  %v7508_v48 = vld [vmem:[%s8510_s7 + $0x720] sm:$0xff] }
 0x22e   :  { %v1576_v3 = vmax.f32 %v1395_v8, 0.0  ;;  %v1578_v52 = vmax.f32 %v1508_v45, 0.0  ;;  %v4754_v33 = vcombine.low %v7475_v24, %v7480_v5  ;;  %v4755_v46 = vcombine.high %v7475_v24, %v7480_v5 }
 0x22f   :  { %v1577_v21 = vmax.f32 %v1397_v20, 0.0  ;;  %v1579_v44 = vmax.f32 %v1510_v29, 0.0  ;;  %3338 = vmatpush1.bf16.msra.mxu1 %v4738_v26  ;;  %3564 = vmatpush1.bf16.msra.mxu0 %v4740_v16  ;;  %v4756_v45 = vcombine.low %v7485_v57, %v7490_v30  ;;  %v4757_v24 = vcombine.high %v7485_v57, %v7490_v30  ;;  %v7523_v26 = vld [vmem:[%s8510_s7 + $0x708] sm:$0xff] }
 0x230   :  { %v7492_v31 = vpack.c.bf16 %v1576_v3, %v1572_v63  ;;  %v7494_v60 = vpack.c.bf16 %v1578_v52, %v1574_v53  ;;  %3339 = vmatprep.subr.bf16.mxu1 %v4747_v56  ;;  %3565 = vmatprep.subr.bf16.mxu0 %v4749_v10  ;;  %v7528_v16 = vld [vmem:[%s8510_s7 + $0x728] sm:$0xff]  ;;  %v4763_v10 = vcombine.high %v7503_v4, %v7508_v48 }
 0x231   :  { %v7510_v6 = vpack.c.bf16 %v1577_v21, %v1573_v36  ;;  %v7512_v43 = vpack.c.bf16 %v1579_v44, %v1575_v19  ;;  %v4762_v36 = vcombine.low %v7503_v4, %v7508_v48  ;;  %v4765_v44 = vcombine.high %v7523_v26, %v7528_v16  ;;  %v7557_v4 = vld [vmem:[%s8510_s7 + $0x760] sm:$0xff] }
 0x232   :  { %v1400_v17 = vpop.f32.mrb[24].mxu1  ;;  %v1513_v8 = vpop.f32.mrb[56].mxu0 }
 0x233   :  { %v1401_v32 = vadd.f32 %v1400_v17, %v7002_v28  ;;  %v1514_v18 = vadd.f32 %v1513_v8, %v7006_v61  ;;  %v1402_v20 = vpop.f32.mrb[25].mxu1  ;;  %v1515_v29 = vpop.f32.mrb[57].mxu0  ;;  %3288 = vmatprep.mubr.bf16.mxu1 %v7510_v6  ;;  %3514 = vmatprep.mubr.bf16.mxu0 %v7510_v6  ;;  %v7552_v17 = vld [vmem:[%s8510_s7 + $0x740] sm:$0xff] }
 0x234   :  { %v1403_v5 = vadd.f32 %v1402_v20, %v7009_v12  ;;  %v1516_v63 = vadd.f32 %v1515_v29, %v7013_v11  ;;  %v1404_v53 = vpop.f32.mrb[26].mxu1  ;;  %v1517_v56 = vpop.f32.mrb[58].mxu0  ;;  %3289 = vmatmul.mubr.bf16.gmra.mrb[52].mxu1 %v7492_v31  ;;  %3515 = vmatmul.mubr.bf16.gmra.mrb[84].mxu0 %v7492_v31 }
 0x235   :  { %v1405_v3 = vadd.f32 %v1404_v53, %v7002_v28  ;;  %v1518_v52 = vadd.f32 %v1517_v56, %v7006_v61  ;;  %v1406_v57 = vpop.f32.mrb[27].mxu1  ;;  %v1519_v30 = vpop.f32.mrb[59].mxu0  ;;  %3340 = vmatpush1.bf16.msra.mxu1 %v4746_v13  ;;  %3566 = vmatpush1.bf16.msra.mxu0 %v4748_v50  ;;  %v1580_v48 = vmax.f32 %v1401_v32, 0.0  ;;  %v1582_v8 = vmax.f32 %v1514_v18, 0.0  ;;  %v1861_v53 = vld [vmem:[%s8510_s7 + $0x748] sm:$0xff] }
 0x236   :  { %v1407_v19 = vadd.f32 %v1406_v57, %v7009_v12  ;;  %v1520_v21 = vadd.f32 %v1519_v30, %v7013_v11  ;;  %3341 = vmatprep.subr.bf16.mxu1 %v4755_v46  ;;  %3567 = vmatprep.subr.bf16.mxu0 %v4757_v24  ;;  %v1581_v42 = vmax.f32 %v1403_v5, 0.0  ;;  %v1583_v27 = vmax.f32 %v1516_v63, 0.0  ;;  %v1865_v56 = vld [vmem:[%s8510_s7 + $0x768] sm:$0xff]  ;;  %v7582_v30 = vld [vmem:[%s8510_s7 + $0x780] sm:$0xff] }
 0x237   :  { %v1584_v20 = vmax.f32 %v1405_v3, 0.0  ;;  %v1586_v29 = vmax.f32 %v1518_v52, 0.0  ;;  %v4764_v46 = vcombine.low %v7523_v26, %v7528_v16  ;;  %v4771_v18 = vcombine.high %v7552_v17, %v7557_v4  ;;  %v7587_v26 = vld [vmem:[%s8510_s7 + $0x7a0] sm:$0xff] }
 0x238   :  { %v1585_v13 = vmax.f32 %v1407_v19, 0.0  ;;  %v1587_v50 = vmax.f32 %v1520_v21, 0.0  ;;  %v4770_v52 = vcombine.low %v7552_v17, %v7557_v4  ;;  %v1869_v17 = vld [vmem:[%s8510_s7 + $0x788] sm:$0xff] }
 0x239   :  { %v7565_v57 = vpack.c.bf16 %v1584_v20, %v1580_v48  ;;  %v7567_v32 = vpack.c.bf16 %v1586_v29, %v1582_v8  ;;  %3342 = vmatpush1.bf16.msra.mxu1 %v4754_v33  ;;  %3568 = vmatpush1.bf16.msra.mxu0 %v4756_v45  ;;  %v4773_v45 = vcombine.high %v1861_v53, %v1865_v56  ;;  %v1873_v4 = vld [vmem:[%s8510_s7 + $0x7a8] sm:$0xff] }
 0x23a   :  { %v7573_v24 = vpack.c.bf16 %v1585_v13, %v1581_v42  ;;  %v7575_v5 = vpack.c.bf16 %v1587_v50, %v1583_v27  ;;  %v1410_v63 = vpop.f32.mrb[28].mxu1  ;;  %v1523_v3 = vpop.f32.mrb[60].mxu0  ;;  %3343 = vmatprep.subr.bf16.mxu1 %v4763_v10  ;;  %3569 = vmatprep.subr.bf16.mxu0 %v4765_v44  ;;  %v4772_v10 = vcombine.low %v1861_v53, %v1865_v56 }
 0x23b   :  { %v1411_v16 = vadd.f32 %v1410_v63, %v7002_v28  ;;  %v1524_v33 = vadd.f32 %v1523_v3, %v7006_v61  ;;  %v1412_v19 = vpop.f32.mrb[29].mxu1  ;;  %v1525_v21 = vpop.f32.mrb[61].mxu0  ;;  %v4779_v50 = vcombine.high %v7582_v30, %v7587_v26  ;;  %v4781_v53 = vcombine.high %v1869_v17, %v1873_v4 }
 0x23c   :  { %v1413_v48 = vadd.f32 %v1412_v19, %v7009_v12  ;;  %v1526_v8 = vadd.f32 %v1525_v21, %v7013_v11  ;;  %v1414_v20 = vpop.f32.mrb[30].mxu1  ;;  %v1527_v29 = vpop.f32.mrb[62].mxu0  ;;  %3298 = vmatprep.mubr.bf16.mxu1 %v7573_v24  ;;  %3524 = vmatprep.mubr.bf16.mxu0 %v7573_v24 }
 0x23d   :  { %v1415_v44 = vadd.f32 %v1414_v20, %v7002_v28  ;;  %v1528_v42 = vadd.f32 %v1527_v29, %v7006_v61  ;;  %v1416_v27 = vpop.f32.mrb[31].mxu1  ;;  %v1529_v13 = vpop.f32.mrb[63].mxu0  ;;  %3299 = vmatmul.mubr.bf16.gmra.mrb[56].mxu1 %v7565_v57  ;;  %3525 = vmatmul.mubr.bf16.gmra.mrb[88].mxu0 %v7565_v57  ;;  %v1588_v56 = vmax.f32 %v1411_v16, 0.0  ;;  %v1590_v28 = vmax.f32 %v1524_v33, 0.0 }
 0x23e   :  { %v1417_v63 = vadd.f32 %v1416_v27, %v7009_v12  ;;  %v1530_v3 = vadd.f32 %v1529_v13, %v7013_v11  ;;  %3344 = vmatpush1.bf16.msra.mxu1 %v4762_v36  ;;  %3570 = vmatpush1.bf16.msra.mxu0 %v4764_v46  ;;  %v1589_v21 = vmax.f32 %v1413_v48, 0.0  ;;  %v1591_v20 = vmax.f32 %v1526_v8, 0.0  ;;  %v1880_v36 = vld [vmem:[%s8510_s7 + $0x7e0] sm:$0xff]  ;;  %v1877_v46 = vld [vmem:[%s8510_s7 + $0x7c8] sm:$0xff]  ;;  %v1638_v27 = vld [vmem:[%s8510_s7 + $0x50] sm:$0xff] }
 0x23f   :  { %v1592_v19 = vmax.f32 %v1415_v44, 0.0  ;;  %v1594_v61 = vmax.f32 %v1528_v42, 0.0  ;;  %3345 = vmatprep.subr.bf16.mxu1 %v4771_v18  ;;  %3571 = vmatprep.subr.bf16.mxu0 %v4773_v45  ;;  %v1881_v18 = vld [vmem:[%s8510_s7 + $0x7e8] sm:$0xff]  ;;  %v4778_v45 = vcombine.low %v7582_v30, %v7587_v26  ;;  %v4780_v48 = vcombine.low %v1869_v17, %v1873_v4  ;;  %v1630_v42 = vld [vmem:[%s8510_s7 + $0x10] sm:$0xff]  ;;  %v1635_v30 = vld [vmem:[%s8510_s7 + $0x38] sm:$0xff] }
 0x240   :  { %v1593_v29 = vmax.f32 %v1417_v63, 0.0  ;;  %v1595_v59 = vmax.f32 %v1530_v3, 0.0  ;;  %v4787_v8 = vcombine.high %v1876_v49, %v1880_v36  ;;  %v4789_v44 = vcombine.high %v1877_v46, %v1881_v18  ;;  %v1642_v13 = vld [vmem:[%s8510_s7 + $0x70] sm:$0xff]  ;;  %v1643_v63 = vld [vmem:[%s8510_s7 + $0x78] sm:$0xff] }
 0x241   :  { %v7612_v12 = vpack.c.bf16 %v1592_v19, %v1588_v56  ;;  %v7614_v11 = vpack.c.bf16 %v1594_v61, %v1590_v28  ;;  %v4786_v26 = vcombine.low %v1876_v49, %v1880_v36  ;;  %v4788_v17 = vcombine.low %v1877_v46, %v1881_v18  ;;  %v1639_v49 = vld [vmem:[%s8510_s7 + $0x58] sm:$0xff]  ;;  %v1646_v56 = vld [vmem:[%s8510_s7 + $0x90] sm:$0xff] }
 0x242   :  { %v7625_v16 = vpack.c.bf16 %v1593_v29, %v1589_v21  ;;  %v7627_v33 = vpack.c.bf16 %v1595_v59, %v1591_v20  ;;  %3346 = vmatpush1.bf16.msra.mxu1 %v4770_v52  ;;  %3572 = vmatpush1.bf16.msra.mxu0 %v4772_v10  ;;  %v1634_v59 = vld [vmem:[%s8510_s7 + $0x30] sm:$0xff]  ;;  %v1631_v52 = vld [vmem:[%s8510_s7 + $0x18] sm:$0xff]  ;;  %v4553_v19 = vcombine.high %v1639_v49, %v1643_v63 }
 0x243   :  { %3347 = vmatprep.subr.bf16.mxu1 %v4779_v50  ;;  %3573 = vmatprep.subr.bf16.mxu0 %v4781_v53  ;;  %v4543_v4 = vcombine.high %v1630_v42, %v1634_v59  ;;  %v4545_v10 = vcombine.high %v1631_v52, %v1635_v30  ;;  %v4542_v50 = vcombine.low %v1630_v42, %v1634_v59  ;;  %v1650_v28 = vld [vmem:[%s8510_s7 + $0xb0] sm:$0xff]  ;;  %v1647_v21 = vld [vmem:[%s8510_s7 + $0x98] sm:$0xff] }
 0x244   :  { %3308 = vmatprep.mubr.bf16.mxu1 %v7625_v16  ;;  %3534 = vmatprep.mubr.bf16.mxu0 %v7625_v16  ;;  %v4544_v3 = vcombine.low %v1631_v52, %v1635_v30  ;;  %v4551_v53 = vcombine.high %v1638_v27, %v1642_v13  ;;  %v4550_v61 = vcombine.low %v1638_v27, %v1642_v13  ;;  %v1651_v20 = vld [vmem:[%s8510_s7 + $0xb8] sm:$0xff]  ;;  %v1654_v18 = vld [vmem:[%s8510_s7 + $0xd0] sm:$0xff] }
 0x245   :  { %3309 = vmatmul.mubr.bf16.gmra.mrb[60].mxu1 %v7612_v12  ;;  %3535 = vmatmul.mubr.bf16.gmra.mrb[92].mxu0 %v7612_v12  ;;  %v4559_v29 = vcombine.high %v1646_v56, %v1650_v28  ;;  %v4552_v36 = vcombine.low %v1639_v49, %v1643_v63  ;;  %v4561_v46 = vcombine.high %v1647_v21, %v1651_v20  ;;  %v1662_v52 = vld [vmem:[%s8510_s7 + $0x110] sm:$0xff] }
 0x246   :  { %3348 = vmatpush1.bf16.msra.mxu1 %v4778_v45  ;;  %3351 = vmatprep.mubr.bf16.mxu1 %v7089_v25  ;;  %v1658_v45 = vld [vmem:[%s8510_s7 + $0xf0] sm:$0xff]  ;;  %v4560_v42 = vcombine.low %v1647_v21, %v1651_v20 }
 0x247   :  { %3574 = vmatpush1.bf16.msra.mxu0 %v4780_v48  ;;  %3577 = vmatprep.mubr.bf16.mxu0 %v7089_v25  ;;  %v4558_v48 = vcombine.low %v1646_v56, %v1650_v28  ;;  %v4567_v59 = vcombine.high %v1654_v18, %v1658_v45  ;;  %v1666_v30 = vld [vmem:[%s8510_s7 + $0x130] sm:$0xff]  ;;  %v1675_v56 = vld [vmem:[%s8510_s7 + $0x178] sm:$0xff] }
 0x248   :  { %3349 = vmatprep.subr.bf16.mxu1 %v4787_v8  ;;  %3575 = vmatprep.subr.bf16.mxu0 %v4789_v44  ;;  %v1655_v8 = vld [vmem:[%s8510_s7 + $0xd8] sm:$0xff]  ;;  %v4575_v27 = vcombine.high %v1662_v52, %v1666_v30  ;;  %v1670_v49 = vld [vmem:[%s8510_s7 + $0x150] sm:$0xff] }
 0x249   :  { %v1659_v44 = vld [vmem:[%s8510_s7 + $0xf8] sm:$0xff]  ;;  %v1674_v63 = vld [vmem:[%s8510_s7 + $0x170] sm:$0xff] }
 0x24a   :  { %3350 = vmatpush1.bf16.msra.mxu1 %v4786_v26  ;;  %v4569_v26 = vcombine.high %v1655_v8, %v1659_v44  ;;  %v4568_v13 = vcombine.low %v1655_v8, %v1659_v44  ;;  %v1682_v21 = vld [vmem:[%s8510_s7 + $0x1b0] sm:$0xff] }
 0x24b   :  { %3576 = vmatpush1.bf16.msra.mxu0 %v4788_v17  ;;  %3658 = vmatprep.subr.bf16.mxu1 %v4543_v4  ;;  %v4566_v17 = vcombine.low %v1654_v18, %v1658_v45  ;;  %v1663_v4 = vld [vmem:[%s8510_s7 + $0x118] sm:$0xff]  ;;  %v1686_v8 = vld [vmem:[%s8510_s7 + $0x1d0] sm:$0xff] }
 0x24c   :  { %3884 = vmatprep.subr.bf16.mxu0 %v4545_v10  ;;  %v1667_v10 = vld [vmem:[%s8510_s7 + $0x138] sm:$0xff]  ;;  %v1690_v44 = vld [vmem:[%s8510_s7 + $0x1f0] sm:$0xff] }
 0x24d   :  { %3352 = vmatmul.mubr.bf16.vlgmr.msra.gmra.mrb[32].mxu1 %v7081_v0  ;;  %v4576_v28 = vcombine.low %v1663_v4, %v1667_v10 }
 0x24e   :  { %3578 = vmatmul.mubr.bf16.vlgmr.msra.gmra.mrb[64].mxu0 %v7081_v0  ;;  %3659 = vmatpush1.bf16.msra.mxu1 %v4542_v50  ;;  %v4577_v50 = vcombine.high %v1663_v4, %v1667_v10  ;;  %v1698_v4 = vld [vmem:[%s8510_s7 + $0x230] sm:$0xff] }
 0x24f   :  { %3361 = vmatprep.mubr.bf16.mxu1 %v7173_v58  ;;  %3587 = vmatprep.mubr.bf16.mxu0 %v7173_v58 }
 0x250   :  { %3885 = vmatpush1.bf16.msra.mxu0 %v4544_v3  ;;  %3660 = vmatprep.subr.bf16.mxu1 %v4551_v53  ;;  %v4574_v3 = vcombine.low %v1662_v52, %v1666_v30  ;;  %v1671_v53 = vld [vmem:[%s8510_s7 + $0x158] sm:$0xff] }
 0x251   :  { %3886 = vmatprep.subr.bf16.mxu0 %v4553_v19  ;;  %v4583_v19 = vcombine.high %v1670_v49, %v1674_v63  ;;  %v4585_v20 = vcombine.high %v1671_v53, %v1675_v56  ;;  %v4584_v45 = vcombine.low %v1671_v53, %v1675_v56  ;;  %v1691_v52 = vld [vmem:[%s8510_s7 + $0x1f8] sm:$0xff]  ;;  %v1702_v53 = vld [vmem:[%s8510_s7 + $0x250] sm:$0xff] }
 0x252   :  { %3661 = vmatpush1.bf16.msra.mxu1 %v4550_v61  ;;  %v1678_v61 = vld [vmem:[%s8510_s7 + $0x190] sm:$0xff] }
 0x253   :  { %3662 = vmatprep.subr.bf16.mxu1 %v4559_v29  ;;  %v4582_v29 = vcombine.low %v1670_v49, %v1674_v63  ;;  %v4591_v18 = vcombine.high %v1678_v61, %v1682_v21  ;;  %v1706_v56 = vld [vmem:[%s8510_s7 + $0x270] sm:$0xff] }
 0x254   :  { %3887 = vmatpush1.bf16.msra.mxu0 %v4552_v36  ;;  %v1679_v36 = vld [vmem:[%s8510_s7 + $0x198] sm:$0xff] }
 0x255   :  { %3362 = vmatmul.mubr.bf16.gmra.mrb[36].mxu1 %v7155_v15  ;;  %3888 = vmatprep.subr.bf16.mxu0 %v4561_v46  ;;  %v1683_v46 = vld [vmem:[%s8510_s7 + $0x1b8] sm:$0xff] }
 0x256   :  { %3588 = vmatmul.mubr.bf16.gmra.mrb[68].mxu0 %v7155_v15  ;;  %3663 = vmatpush1.bf16.msra.mxu1 %v4558_v48  ;;  %v4593_v48 = vcombine.high %v1679_v36, %v1683_v46  ;;  %v4592_v30 = vcombine.low %v1679_v36, %v1683_v46  ;;  %v1714_v36 = vld [vmem:[%s8510_s7 + $0x2b0] sm:$0xff] }
 0x257   :  { %3371 = vmatprep.mubr.bf16.mxu1 %v7255_v2  ;;  %3597 = vmatprep.mubr.bf16.mxu0 %v7255_v2 }
 0x258   :  { %3889 = vmatpush1.bf16.msra.mxu0 %v4560_v42  ;;  %3664 = vmatprep.subr.bf16.mxu1 %v4567_v59  ;;  %v4590_v42 = vcombine.low %v1678_v61, %v1682_v21  ;;  %v1687_v59 = vld [vmem:[%s8510_s7 + $0x1d8] sm:$0xff] }
 0x259   :  { %3890 = vmatprep.subr.bf16.mxu0 %v4569_v26  ;;  %v4599_v26 = vcombine.high %v1686_v8, %v1690_v44  ;;  %v4601_v10 = vcombine.high %v1687_v59, %v1691_v52  ;;  %v4600_v63 = vcombine.low %v1687_v59, %v1691_v52  ;;  %v1707_v61 = vld [vmem:[%s8510_s7 + $0x278] sm:$0xff]  ;;  %v1718_v59 = vld [vmem:[%s8510_s7 + $0x2d0] sm:$0xff] }
 0x25a   :  { %3665 = vmatpush1.bf16.msra.mxu1 %v4566_v17  ;;  %v1694_v17 = vld [vmem:[%s8510_s7 + $0x210] sm:$0xff] }
 0x25b   :  { %3666 = vmatprep.subr.bf16.mxu1 %v4575_v27  ;;  %v4598_v27 = vcombine.low %v1686_v8, %v1690_v44  ;;  %v4607_v49 = vcombine.high %v1694_v17, %v1698_v4  ;;  %v1722_v52 = vld [vmem:[%s8510_s7 + $0x2f0] sm:$0xff] }
 0x25c   :  { %3891 = vmatpush1.bf16.msra.mxu0 %v4568_v13  ;;  %v1695_v13 = vld [vmem:[%s8510_s7 + $0x218] sm:$0xff] }
 0x25d   :  { %3372 = vmatmul.mubr.bf16.gmra.mrb[40].mxu1 %v7247_v41  ;;  %3892 = vmatprep.subr.bf16.mxu0 %v4577_v50  ;;  %v1699_v50 = vld [vmem:[%s8510_s7 + $0x238] sm:$0xff] }
 0x25e   :  { %3598 = vmatmul.mubr.bf16.gmra.mrb[72].mxu0 %v7247_v41  ;;  %3667 = vmatpush1.bf16.msra.mxu1 %v4574_v3  ;;  %v4609_v3 = vcombine.high %v1695_v13, %v1699_v50  ;;  %v4608_v21 = vcombine.low %v1695_v13, %v1699_v50  ;;  %v1730_v13 = vld [vmem:[%s8510_s7 + $0x330] sm:$0xff] }
 0x25f   :  { %3381 = vmatprep.mubr.bf16.mxu1 %v7347_v7  ;;  %3607 = vmatprep.mubr.bf16.mxu0 %v7347_v7 }
 0x260   :  { %3893 = vmatpush1.bf16.msra.mxu0 %v4576_v28  ;;  %3668 = vmatprep.subr.bf16.mxu1 %v4583_v19  ;;  %v4606_v28 = vcombine.low %v1694_v17, %v1698_v4  ;;  %v1703_v19 = vld [vmem:[%s8510_s7 + $0x258] sm:$0xff] }
 0x261   :  { %3894 = vmatprep.subr.bf16.mxu0 %v4585_v20  ;;  %v4615_v20 = vcombine.high %v1702_v53, %v1706_v56  ;;  %v4617_v46 = vcombine.high %v1703_v19, %v1707_v61  ;;  %v4616_v44 = vcombine.low %v1703_v19, %v1707_v61  ;;  %v1723_v17 = vld [vmem:[%s8510_s7 + $0x2f8] sm:$0xff]  ;;  %v1734_v19 = vld [vmem:[%s8510_s7 + $0x350] sm:$0xff] }
 0x262   :  { %3669 = vmatpush1.bf16.msra.mxu1 %v4582_v29  ;;  %v1710_v29 = vld [vmem:[%s8510_s7 + $0x290] sm:$0xff] }
 0x263   :  { %3670 = vmatprep.subr.bf16.mxu1 %v4591_v18  ;;  %v4614_v18 = vcombine.low %v1702_v53, %v1706_v56  ;;  %v4623_v8 = vcombine.high %v1710_v29, %v1714_v36  ;;  %v1738_v61 = vld [vmem:[%s8510_s7 + $0x370] sm:$0xff] }
 0x264   :  { %3895 = vmatpush1.bf16.msra.mxu0 %v4584_v45  ;;  %v1711_v45 = vld [vmem:[%s8510_s7 + $0x298] sm:$0xff] }
 0x265   :  { %3382 = vmatmul.mubr.bf16.gmra.mrb[44].mxu1 %v7329_v34  ;;  %3896 = vmatprep.subr.bf16.mxu0 %v4593_v48  ;;  %v1715_v48 = vld [vmem:[%s8510_s7 + $0x2b8] sm:$0xff] }
 0x266   :  { %3608 = vmatmul.mubr.bf16.gmra.mrb[76].mxu0 %v7329_v34  ;;  %3671 = vmatpush1.bf16.msra.mxu1 %v4590_v42  ;;  %v4625_v42 = vcombine.high %v1711_v45, %v1715_v48  ;;  %v4624_v4 = vcombine.low %v1711_v45, %v1715_v48  ;;  %v1746_v45 = vld [vmem:[%s8510_s7 + $0x3b0] sm:$0xff] }
 0x267   :  { %3391 = vmatprep.mubr.bf16.mxu1 %v7429_v23  ;;  %3617 = vmatprep.mubr.bf16.mxu0 %v7429_v23 }
 0x268   :  { %3897 = vmatpush1.bf16.msra.mxu0 %v4592_v30  ;;  %3672 = vmatprep.subr.bf16.mxu1 %v4599_v26  ;;  %v4622_v30 = vcombine.low %v1710_v29, %v1714_v36  ;;  %v1719_v26 = vld [vmem:[%s8510_s7 + $0x2d8] sm:$0xff] }
 0x269   :  { %3898 = vmatprep.subr.bf16.mxu0 %v4601_v10  ;;  %v4631_v10 = vcombine.high %v1718_v59, %v1722_v52  ;;  %v4633_v50 = vcombine.high %v1719_v26, %v1723_v17  ;;  %v4632_v56 = vcombine.low %v1719_v26, %v1723_v17  ;;  %v1739_v29 = vld [vmem:[%s8510_s7 + $0x378] sm:$0xff]  ;;  %v1750_v26 = vld [vmem:[%s8510_s7 + $0x3d0] sm:$0xff] }
 0x26a   :  { %3673 = vmatpush1.bf16.msra.mxu1 %v4598_v27  ;;  %v1726_v27 = vld [vmem:[%s8510_s7 + $0x310] sm:$0xff] }
 0x26b   :  { %3674 = vmatprep.subr.bf16.mxu1 %v4607_v49  ;;  %v4630_v49 = vcombine.low %v1718_v59, %v1722_v52  ;;  %v4639_v53 = vcombine.high %v1726_v27, %v1730_v13  ;;  %v1754_v17 = vld [vmem:[%s8510_s7 + $0x3f0] sm:$0xff] }
 0x26c   :  { %3899 = vmatpush1.bf16.msra.mxu0 %v4600_v63  ;;  %v1727_v63 = vld [vmem:[%s8510_s7 + $0x318] sm:$0xff] }
 0x26d   :  { %3392 = vmatmul.mubr.bf16.gmra.mrb[48].mxu1 %v7421_v38  ;;  %3900 = vmatprep.subr.bf16.mxu0 %v4609_v3  ;;  %v1731_v3 = vld [vmem:[%s8510_s7 + $0x338] sm:$0xff] }
 0x26e   :  { %3618 = vmatmul.mubr.bf16.gmra.mrb[80].mxu0 %v7421_v38  ;;  %3675 = vmatpush1.bf16.msra.mxu1 %v4606_v28  ;;  %v4641_v28 = vcombine.high %v1727_v63, %v1731_v3  ;;  %v4640_v36 = vcombine.low %v1727_v63, %v1731_v3  ;;  %v1762_v63 = vld [vmem:[%s8510_s7 + $0x430] sm:$0xff] }
 0x26f   :  { %3401 = vmatprep.mubr.bf16.mxu1 %v7512_v43  ;;  %3627 = vmatprep.mubr.bf16.mxu0 %v7512_v43 }
 0x270   :  { %3901 = vmatpush1.bf16.msra.mxu0 %v4608_v21  ;;  %3676 = vmatprep.subr.bf16.mxu1 %v4615_v20  ;;  %v4638_v21 = vcombine.low %v1726_v27, %v1730_v13  ;;  %v1735_v20 = vld [vmem:[%s8510_s7 + $0x358] sm:$0xff] }
 0x271   :  { %3902 = vmatprep.subr.bf16.mxu0 %v4617_v46  ;;  %v4647_v46 = vcombine.high %v1734_v19, %v1738_v61  ;;  %v4649_v48 = vcombine.high %v1735_v20, %v1739_v29  ;;  %v4648_v52 = vcombine.low %v1735_v20, %v1739_v29  ;;  %v1755_v27 = vld [vmem:[%s8510_s7 + $0x3f8] sm:$0xff]  ;;  %v1770_v20 = vld [vmem:[%s8510_s7 + $0x470] sm:$0xff] }
 0x272   :  { %3677 = vmatpush1.bf16.msra.mxu1 %v4614_v18  ;;  %v1742_v18 = vld [vmem:[%s8510_s7 + $0x390] sm:$0xff] }
 0x273   :  { %3678 = vmatprep.subr.bf16.mxu1 %v4623_v8  ;;  %v4646_v8 = vcombine.low %v1734_v19, %v1738_v61  ;;  %v4655_v59 = vcombine.high %v1742_v18, %v1746_v45 }
 0x274   :  { %3903 = vmatpush1.bf16.msra.mxu0 %v4616_v44  ;;  %v1743_v44 = vld [vmem:[%s8510_s7 + $0x398] sm:$0xff] }
 0x275   :  { %3402 = vmatmul.mubr.bf16.gmra.mrb[52].mxu1 %v7494_v60  ;;  %3904 = vmatprep.subr.bf16.mxu0 %v4625_v42  ;;  %v1747_v42 = vld [vmem:[%s8510_s7 + $0x3b8] sm:$0xff] }
 0x276   :  { %3628 = vmatmul.mubr.bf16.gmra.mrb[84].mxu0 %v7494_v60  ;;  %3679 = vmatpush1.bf16.msra.mxu1 %v4622_v30  ;;  %v4657_v30 = vcombine.high %v1743_v44, %v1747_v42  ;;  %v4656_v13 = vcombine.low %v1743_v44, %v1747_v42 }
 0x277   :  { %3411 = vmatprep.mubr.bf16.mxu1 %v7575_v5  ;;  %3637 = vmatprep.mubr.bf16.mxu0 %v7575_v5 }
 0x278   :  { %3905 = vmatpush1.bf16.msra.mxu0 %v4624_v4  ;;  %3680 = vmatprep.subr.bf16.mxu1 %v4631_v10  ;;  %v4654_v4 = vcombine.low %v1742_v18, %v1746_v45  ;;  %v1751_v10 = vld [vmem:[%s8510_s7 + $0x3d8] sm:$0xff] }
 0x279   :  { %3906 = vmatprep.subr.bf16.mxu0 %v4633_v50  ;;  %v4663_v50 = vcombine.high %v1750_v26, %v1754_v17  ;;  %v4665_v3 = vcombine.high %v1751_v10, %v1755_v27  ;;  %v4664_v61 = vcombine.low %v1751_v10, %v1755_v27  ;;  %v1787_v27 = vld [vmem:[%s8510_s7 + $0x4f8] sm:$0xff] }
 0x27a   :  { %3681 = vmatpush1.bf16.msra.mxu1 %v4630_v49  ;;  %v1758_v49 = vld [vmem:[%s8510_s7 + $0x410] sm:$0xff] }
 0x27b   :  { %3682 = vmatprep.subr.bf16.mxu1 %v4639_v53  ;;  %v4662_v53 = vcombine.low %v1750_v26, %v1754_v17  ;;  %v4671_v19 = vcombine.high %v1758_v49, %v1762_v63  ;;  %v1782_v17 = vld [vmem:[%s8510_s7 + $0x4d0] sm:$0xff] }
 0x27c   :  { %3907 = vmatpush1.bf16.msra.mxu0 %v4632_v56  ;;  %v1759_v56 = vld [vmem:[%s8510_s7 + $0x418] sm:$0xff] }
 0x27d   :  { %3412 = vmatmul.mubr.bf16.gmra.mrb[56].mxu1 %v7567_v32  ;;  %3908 = vmatprep.subr.bf16.mxu0 %v4641_v28  ;;  %v1763_v28 = vld [vmem:[%s8510_s7 + $0x438] sm:$0xff] }
 0x27e   :  { %3638 = vmatmul.mubr.bf16.gmra.mrb[88].mxu0 %v7567_v32  ;;  %3683 = vmatpush1.bf16.msra.mxu1 %v4638_v21  ;;  %v1766_v21 = vld [vmem:[%s8510_s7 + $0x450] sm:$0xff]  ;;  %v7879_v29 = vcombine.high %v1759_v56, %v1763_v28  ;;  %v7887_v45 = vcombine.low %v1759_v56, %v1763_v28  ;;  %v1791_v56 = vld [vmem:[%s8510_s7 + $0x518] sm:$0xff] }
 0x27f   :  { %3421 = vmatprep.mubr.bf16.mxu1 %v7627_v33  ;;  %3647 = vmatprep.mubr.bf16.mxu0 %v7627_v33  ;;  %v4679_v18 = vcombine.high %v1766_v21, %v1770_v20  ;;  %v4678_v42 = vcombine.low %v1766_v21, %v1770_v20  ;;  %v1795_v28 = vld [vmem:[%s8510_s7 + $0x538] sm:$0xff]  ;;  %v1798_v21 = vld [vmem:[%s8510_s7 + $0x550] sm:$0xff] }
 0x280   :  { %3909 = vmatpush1.bf16.msra.mxu0 %v4640_v36  ;;  %3684 = vmatprep.subr.bf16.mxu1 %v4647_v46  ;;  %v4670_v36 = vcombine.low %v1758_v49, %v1762_v63  ;;  %v1771_v46 = vld [vmem:[%s8510_s7 + $0x478] sm:$0xff]  ;;  %v1790_v49 = vld [vmem:[%s8510_s7 + $0x510] sm:$0xff] }
 0x281   :  { %3910 = vmatprep.subr.bf16.mxu0 %v4649_v48  ;;  %v1774_v48 = vld [vmem:[%s8510_s7 + $0x490] sm:$0xff] }
 0x282   :  { %3685 = vmatpush1.bf16.msra.mxu1 %v4646_v8  ;;  %v1778_v8 = vld [vmem:[%s8510_s7 + $0x4b0] sm:$0xff] }
 0x283   :  { %3686 = vmatprep.subr.bf16.mxu1 %v4655_v59  ;;  %v1775_v59 = vld [vmem:[%s8510_s7 + $0x498] sm:$0xff]  ;;  %v1794_v63 = vld [vmem:[%s8510_s7 + $0x530] sm:$0xff] }
 0x284   :  { %3911 = vmatpush1.bf16.msra.mxu0 %v4648_v52  ;;  %v1779_v52 = vld [vmem:[%s8510_s7 + $0x4b8] sm:$0xff]  ;;  %v1802_v20 = vld [vmem:[%s8510_s7 + $0x570] sm:$0xff] }
 0x285   :  { %3422 = vmatmul.mubr.bf16.gmra.mrb[60].mxu1 %v7614_v11  ;;  %3912 = vmatprep.subr.bf16.mxu0 %v4657_v30  ;;  %v4687_v30 = vcombine.high %v1774_v48, %v1778_v8  ;;  %v7918_v10 = vcombine.high %v1775_v59, %v1779_v52 }
 0x286   :  { %3648 = vmatmul.mubr.bf16.gmra.mrb[92].mxu0 %v7614_v11  ;;  %3687 = vmatpush1.bf16.msra.mxu1 %v4654_v4  ;;  %v1786_v4 = vld [vmem:[%s8510_s7 + $0x4f0] sm:$0xff] }
 0x287   :  { %3690 = vmatprep.mubr.bf16.mxu1 %v7087_v1  ;;  %3916 = vmatprep.mubr.bf16.mxu0 %v7087_v1  ;;  %v1767_v1 = vld [vmem:[%s8510_s7 + $0x458] sm:$0xff] }
 0x288   :  { %3913 = vmatpush1.bf16.msra.mxu0 %v4656_v13  ;;  %3688 = vmatprep.subr.bf16.mxu1 %v4663_v50  ;;  %v7897_v44 = vcombine.high %v1767_v1, %v1771_v46  ;;  %v7909_v26 = vcombine.low %v1767_v1, %v1771_v46  ;;  %v4695_v13 = vcombine.high %v1782_v17, %v1786_v4  ;;  %v1803_v1 = vld [vmem:[%s8510_s7 + $0x578] sm:$0xff] }
 0x289   :  { %3914 = vmatprep.subr.bf16.mxu0 %v4665_v3  ;;  %v7927_v50 = vcombine.low %v1775_v59, %v1779_v52  ;;  %v4711_v46 = vcombine.high %v1798_v21, %v1802_v20  ;;  %v4710_v59 = vcombine.low %v1798_v21, %v1802_v20  ;;  %v1807_v52 = vld [vmem:[%s8510_s7 + $0x598] sm:$0xff] }
 0x28a   :  { %3689 = vmatpush1.bf16.msra.mxu1 %v4662_v53  ;;  %v4694_v53 = vcombine.low %v1782_v17, %v1786_v4  ;;  %v1823_v21 = vld [vmem:[%s8510_s7 + $0x618] sm:$0xff] }
 0x28b   :  { %3771 = vmatprep.subr.bf16.mxu1 %v4671_v19  ;;  %v4703_v19 = vcombine.high %v1790_v49, %v1794_v63  ;;  %v1827_v20 = vld [vmem:[%s8510_s7 + $0x638] sm:$0xff] }
 0x28c   :  { %3915 = vmatpush1.bf16.msra.mxu0 %v4664_v61 }
 0x28d   :  { %3691 = vmatmul.mubr.bf16.vlgmr.msra.gmra.mrb[64].mxu1 %v7079_v54  ;;  %3997 = vmatprep.subr.bf16.mxu0 %v7879_v29 }
 0x28e   :  { %3772 = vmatpush1.bf16.msra.mxu1 %v4670_v36  ;;  %3700 = vmatprep.mubr.bf16.mxu1 %v7171_v51  ;;  %v7958_v36 = vcombine.high %v1791_v56, %v1795_v28 }
 0x28f   :  { %3917 = vmatmul.mubr.bf16.vlgmr.msra.gmra.mrb[96].mxu0 %v7079_v54  ;;  %3773 = vmatprep.subr.bf16.mxu1 %v4679_v18  ;;  %v4686_v54 = vcombine.low %v1774_v48, %v1778_v8  ;;  %v7967_v18 = vcombine.low %v1791_v56, %v1795_v28  ;;  %v1806_v48 = vld [vmem:[%s8510_s7 + $0x590] sm:$0xff] }
 0x290   :  { %3926 = vmatprep.mubr.bf16.mxu0 %v7171_v51  ;;  %3998 = vmatpush1.bf16.msra.mxu0 %v7887_v45  ;;  %v1783_v51 = vld [vmem:[%s8510_s7 + $0x4d8] sm:$0xff]  ;;  %v1810_v8 = vld [vmem:[%s8510_s7 + $0x5b0] sm:$0xff] }
 0x291   :  { %3999 = vmatprep.subr.bf16.mxu0 %v7897_v44  ;;  %v7937_v3 = vcombine.high %v1783_v51, %v1787_v27  ;;  %v7949_v61 = vcombine.low %v1783_v51, %v1787_v27  ;;  %v4719_v17 = vcombine.high %v1806_v48, %v1810_v8  ;;  %v1818_v51 = vld [vmem:[%s8510_s7 + $0x5f0] sm:$0xff] }
 0x292   :  { %3774 = vmatpush1.bf16.msra.mxu1 %v4678_v42  ;;  %v1826_v56 = vld [vmem:[%s8510_s7 + $0x630] sm:$0xff] }
 0x293   :  { %3775 = vmatprep.subr.bf16.mxu1 %v4687_v30  ;;  %v1811_v30 = vld [vmem:[%s8510_s7 + $0x5b8] sm:$0xff] }
 0x294   :  { %4000 = vmatpush1.bf16.msra.mxu0 %v7909_v26  ;;  %v7998_v27 = vcombine.high %v1807_v52, %v1811_v30 }
 0x295   :  { %3701 = vmatmul.mubr.bf16.gmra.mrb[68].mxu1 %v7153_v37  ;;  %4001 = vmatprep.subr.bf16.mxu0 %v7918_v10 }
 0x296   :  { %3776 = vmatpush1.bf16.msra.mxu1 %v4686_v54  ;;  %3710 = vmatprep.mubr.bf16.mxu1 %v7253_v35  ;;  %v1814_v54 = vld [vmem:[%s8510_s7 + $0x5d0] sm:$0xff] }
 0x297   :  { %3927 = vmatmul.mubr.bf16.gmra.mrb[100].mxu0 %v7153_v37  ;;  %3777 = vmatprep.subr.bf16.mxu1 %v4695_v13  ;;  %v4702_v37 = vcombine.low %v1790_v49, %v1794_v63  ;;  %v1819_v13 = vld [vmem:[%s8510_s7 + $0x5f8] sm:$0xff]  ;;  %v4727_v49 = vcombine.high %v1814_v54, %v1818_v51  ;;  %v8007_v63 = vcombine.low %v1807_v52, %v1811_v30  ;;  %v1838_v30 = vld [vmem:[%s8510_s7 + $0x690] sm:$0xff] }
 0x298   :  { %3936 = vmatprep.mubr.bf16.mxu0 %v7253_v35  ;;  %4002 = vmatpush1.bf16.msra.mxu0 %v7927_v50  ;;  %v1799_v35 = vld [vmem:[%s8510_s7 + $0x558] sm:$0xff]  ;;  %v8047_v52 = vcombine.low %v1823_v21, %v1827_v20 }
 0x299   :  { %4003 = vmatprep.subr.bf16.mxu0 %v7937_v3  ;;  %v7977_v42 = vcombine.high %v1799_v35, %v1803_v1  ;;  %v7989_v4 = vcombine.low %v1799_v35, %v1803_v1  ;;  %v1830_v1 = vld [vmem:[%s8510_s7 + $0x650] sm:$0xff] }
 0x29a   :  { %3778 = vmatpush1.bf16.msra.mxu1 %v4694_v53  ;;  %v1822_v53 = vld [vmem:[%s8510_s7 + $0x610] sm:$0xff] }
 0x29b   :  { %3779 = vmatprep.subr.bf16.mxu1 %v4703_v19  ;;  %v4726_v19 = vcombine.low %v1814_v54, %v1818_v51 }
 0x29c   :  { %4004 = vmatpush1.bf16.msra.mxu0 %v7949_v61 }
 0x29d   :  { %3711 = vmatmul.mubr.bf16.gmra.mrb[72].mxu1 %v7245_v22  ;;  %4005 = vmatprep.subr.bf16.mxu0 %v7958_v36 }
 0x29e   :  { %3780 = vmatpush1.bf16.msra.mxu1 %v4702_v37  ;;  %3720 = vmatprep.mubr.bf16.mxu1 %v7345_v14  ;;  %v4735_v37 = vcombine.high %v1822_v53, %v1826_v56 }
 0x29f   :  { %3937 = vmatmul.mubr.bf16.gmra.mrb[104].mxu0 %v7245_v22  ;;  %3781 = vmatprep.subr.bf16.mxu1 %v4711_v46  ;;  %v4718_v22 = vcombine.low %v1806_v48, %v1810_v8  ;;  %v1834_v46 = vld [vmem:[%s8510_s7 + $0x670] sm:$0xff]  ;;  %v8038_v48 = vcombine.high %v1823_v21, %v1827_v20  ;;  %v1835_v8 = vld [vmem:[%s8510_s7 + $0x678] sm:$0xff] }
 0x2a0   :  { %3946 = vmatprep.mubr.bf16.mxu0 %v7345_v14  ;;  %4006 = vmatpush1.bf16.msra.mxu0 %v7967_v18  ;;  %v1815_v14 = vld [vmem:[%s8510_s7 + $0x5d8] sm:$0xff]  ;;  %v4742_v51 = vcombine.low %v1830_v1, %v1834_v46 }
 0x2a1   :  { %4007 = vmatprep.subr.bf16.mxu0 %v7977_v42  ;;  %v8017_v28 = vcombine.high %v1815_v14, %v1819_v13  ;;  %v8029_v35 = vcombine.low %v1815_v14, %v1819_v13  ;;  %v1843_v14 = vld [vmem:[%s8510_s7 + $0x6b8] sm:$0xff] }
 0x2a2   :  { %3782 = vmatpush1.bf16.msra.mxu1 %v4710_v59  ;;  %v4743_v59 = vcombine.high %v1830_v1, %v1834_v46  ;;  %v1851_v21 = vld [vmem:[%s8510_s7 + $0x6f8] sm:$0xff]  ;;  %v1854_v1 = vld [vmem:[%s8510_s7 + $0x710] sm:$0xff] }
 0x2a3   :  { %3783 = vmatprep.subr.bf16.mxu1 %v4719_v17  ;;  %v1842_v17 = vld [vmem:[%s8510_s7 + $0x6b0] sm:$0xff] }
 0x2a4   :  { %4008 = vmatpush1.bf16.msra.mxu0 %v7989_v4  ;;  %v4751_v13 = vcombine.high %v1838_v30, %v1842_v17  ;;  %v1858_v46 = vld [vmem:[%s8510_s7 + $0x730] sm:$0xff] }
 0x2a5   :  { %3721 = vmatmul.mubr.bf16.gmra.mrb[76].mxu1 %v7327_v55  ;;  %4009 = vmatprep.subr.bf16.mxu0 %v7998_v27 }
 0x2a6   :  { %3784 = vmatpush1.bf16.msra.mxu1 %v4718_v22  ;;  %3730 = vmatprep.mubr.bf16.mxu1 %v7427_v40  ;;  %v1839_v22 = vld [vmem:[%s8510_s7 + $0x698] sm:$0xff] }
 0x2a7   :  { %3947 = vmatmul.mubr.bf16.gmra.mrb[108].mxu0 %v7327_v55  ;;  %3785 = vmatprep.subr.bf16.mxu1 %v4727_v49  ;;  %v4734_v55 = vcombine.low %v1822_v53, %v1826_v56  ;;  %v1846_v53 = vld [vmem:[%s8510_s7 + $0x6d0] sm:$0xff] }
 0x2a8   :  { %3956 = vmatprep.mubr.bf16.mxu0 %v7427_v40  ;;  %4010 = vmatpush1.bf16.msra.mxu0 %v8007_v63  ;;  %v1831_v40 = vld [vmem:[%s8510_s7 + $0x658] sm:$0xff]  ;;  %v1850_v56 = vld [vmem:[%s8510_s7 + $0x6f0] sm:$0xff] }
 0x2a9   :  { %4011 = vmatprep.subr.bf16.mxu0 %v8017_v28  ;;  %v8057_v54 = vcombine.high %v1831_v40, %v1835_v8  ;;  %v8069_v49 = vcombine.low %v1831_v40, %v1835_v8  ;;  %v4759_v20 = vcombine.high %v1846_v53, %v1850_v56  ;;  %v4758_v40 = vcombine.low %v1846_v53, %v1850_v56  ;;  %v1855_v8 = vld [vmem:[%s8510_s7 + $0x718] sm:$0xff] }
 0x2aa   :  { %3786 = vmatpush1.bf16.msra.mxu1 %v4726_v19  ;;  %v8078_v19 = vcombine.high %v1839_v22, %v1843_v14 }
 0x2ab   :  { %3787 = vmatprep.subr.bf16.mxu1 %v4735_v37  ;;  %v8087_v37 = vcombine.low %v1839_v22, %v1843_v14  ;;  %v1866_v22 = vld [vmem:[%s8510_s7 + $0x770] sm:$0xff] }
 0x2ac   :  { %4012 = vmatpush1.bf16.msra.mxu0 %v8029_v35 }
 0x2ad   :  { %3731 = vmatmul.mubr.bf16.gmra.mrb[80].mxu1 %v7419_v39  ;;  %4013 = vmatprep.subr.bf16.mxu0 %v8038_v48 }
 0x2ae   :  { %3788 = vmatpush1.bf16.msra.mxu1 %v4734_v55  ;;  %3740 = vmatprep.mubr.bf16.mxu1 %v7510_v6 }
 0x2af   :  { %3957 = vmatmul.mubr.bf16.gmra.mrb[112].mxu0 %v7419_v39  ;;  %3789 = vmatprep.subr.bf16.mxu1 %v4743_v59  ;;  %v4750_v39 = vcombine.low %v1838_v30, %v1842_v17  ;;  %v1859_v59 = vld [vmem:[%s8510_s7 + $0x738] sm:$0xff]  ;;  %v4767_v30 = vcombine.high %v1854_v1, %v1858_v46 }
 0x2b0   :  { %3966 = vmatprep.mubr.bf16.mxu0 %v7510_v6  ;;  %4014 = vmatpush1.bf16.msra.mxu0 %v8047_v52  ;;  %v1847_v6 = vld [vmem:[%s8510_s7 + $0x6d8] sm:$0xff]  ;;  %v8118_v14 = vcombine.high %v1855_v8, %v1859_v59  ;;  %v8127_v56 = vcombine.low %v1855_v8, %v1859_v59  ;;  %v1878_v59 = vld [vmem:[%s8510_s7 + $0x7d0] sm:$0xff] }
 0x2b1   :  { %4015 = vmatprep.subr.bf16.mxu0 %v8057_v54  ;;  %v8097_v55 = vcombine.high %v1847_v6, %v1851_v21  ;;  %v8109_v17 = vcombine.low %v1847_v6, %v1851_v21  ;;  %v1874_v6 = vld [vmem:[%s8510_s7 + $0x7b0] sm:$0xff] }
 0x2b2   :  { %3790 = vmatpush1.bf16.msra.mxu1 %v4742_v51  ;;  %v1862_v51 = vld [vmem:[%s8510_s7 + $0x750] sm:$0xff] }
 0x2b3   :  { %3791 = vmatprep.subr.bf16.mxu1 %v4751_v13  ;;  %v1867_v13 = vld [vmem:[%s8510_s7 + $0x778] sm:$0xff]  ;;  %v4775_v53 = vcombine.high %v1862_v51, %v1866_v22 }
 0x2b4   :  { %4016 = vmatpush1.bf16.msra.mxu0 %v8069_v49 }
 0x2b5   :  { %3741 = vmatmul.mubr.bf16.gmra.mrb[84].mxu1 %v7492_v31  ;;  %4017 = vmatprep.subr.bf16.mxu0 %v8078_v19 }
 0x2b6   :  { %3792 = vmatpush1.bf16.msra.mxu1 %v4750_v39  ;;  %3750 = vmatprep.mubr.bf16.mxu1 %v7573_v24  ;;  %v1870_v39 = vld [vmem:[%s8510_s7 + $0x790] sm:$0xff] }
 0x2b7   :  { %3967 = vmatmul.mubr.bf16.gmra.mrb[116].mxu0 %v7492_v31  ;;  %3793 = vmatprep.subr.bf16.mxu1 %v4759_v20  ;;  %v4766_v31 = vcombine.low %v1854_v1, %v1858_v46  ;;  %v4774_v20 = vcombine.low %v1862_v51, %v1866_v22  ;;  %v1871_v1 = vld [vmem:[%s8510_s7 + $0x798] sm:$0xff] }
 0x2b8   :  { %3976 = vmatprep.mubr.bf16.mxu0 %v7573_v24  ;;  %4018 = vmatpush1.bf16.msra.mxu0 %v8087_v37  ;;  %v1863_v24 = vld [vmem:[%s8510_s7 + $0x758] sm:$0xff] }
 0x2b9   :  { %4019 = vmatprep.subr.bf16.mxu0 %v8097_v55  ;;  %v8137_v21 = vcombine.high %v1863_v24, %v1867_v13  ;;  %v1875_v46 = vld [vmem:[%s8510_s7 + $0x7b8] sm:$0xff]  ;;  %v8149_v8 = vcombine.low %v1863_v24, %v1867_v13 }
 0x2ba   :  { %3794 = vmatpush1.bf16.msra.mxu1 %v4758_v40  ;;  %v4783_v40 = vcombine.high %v1870_v39, %v1874_v6  ;;  %v8158_v51 = vcombine.high %v1871_v1, %v1875_v46  ;;  %v1883_v22 = vld [vmem:[%s8510_s7 + $0x7f8] sm:$0xff]  ;;  %v8167_v24 = vcombine.low %v1871_v1, %v1875_v46 }
 0x2bb   :  { %3795 = vmatprep.subr.bf16.mxu1 %v4767_v30  ;;  %v1882_v30 = vld [vmem:[%s8510_s7 + $0x7f0] sm:$0xff] }
 0x2bc   :  { %4020 = vmatpush1.bf16.msra.mxu0 %v8109_v17 }
 0x2bd   :  { %3751 = vmatmul.mubr.bf16.gmra.mrb[88].mxu1 %v7565_v57  ;;  %4021 = vmatprep.subr.bf16.mxu0 %v8118_v14 }
 0x2be   :  { %3796 = vmatpush1.bf16.msra.mxu1 %v4766_v31  ;;  %3760 = vmatprep.mubr.bf16.mxu1 %v7625_v16  ;;  %v4791_v31 = vcombine.high %v1878_v59, %v1882_v30 }
 0x2bf   :  { %3977 = vmatmul.mubr.bf16.gmra.mrb[120].mxu0 %v7565_v57  ;;  %3797 = vmatprep.subr.bf16.mxu1 %v4775_v53  ;;  %v4782_v57 = vcombine.low %v1870_v39, %v1874_v6  ;;  %v4790_v53 = vcombine.low %v1878_v59, %v1882_v30 }
 0x2c0   :  { %3986 = vmatprep.mubr.bf16.mxu0 %v7625_v16  ;;  %4022 = vmatpush1.bf16.msra.mxu0 %v8127_v56  ;;  %v1879_v16 = vld [vmem:[%s8510_s7 + $0x7d8] sm:$0xff] }
 0x2c1   :  { %4023 = vmatprep.subr.bf16.mxu0 %v8137_v21  ;;  %v8171_v13 = vcombine.high %v1879_v16, %v1883_v22  ;;  %v4792_v39 = vcombine.low %v1879_v16, %v1883_v22 }
 0x2c2   :  { %3798 = vmatpush1.bf16.msra.mxu1 %v4774_v20 }
 0x2c3   :  { %3799 = vmatprep.subr.bf16.mxu1 %v4783_v40 }
 0x2c4   :  { %4024 = vmatpush1.bf16.msra.mxu0 %v8149_v8 }
 0x2c5   :  { %3761 = vmatmul.mubr.bf16.gmra.mrb[92].mxu1 %v7612_v12  ;;  %4025 = vmatprep.subr.bf16.mxu0 %v8158_v51 }
 0x2c6   :  { %3800 = vmatpush1.bf16.msra.mxu1 %v4782_v57  ;;  %3803 = vmatprep.mubr.bf16.mxu1 %v7089_v25 }
 0x2c7   :  { %3987 = vmatmul.mubr.bf16.gmra.mrb[124].mxu0 %v7612_v12  ;;  %3801 = vmatprep.subr.bf16.mxu1 %v4791_v31 }
 0x2c8   :  { %4026 = vmatpush1.bf16.msra.mxu0 %v8167_v24  ;;  %4029 = vmatprep.mubr.bf16.mxu0 %v7089_v25 }
 0x2c9   :  { %4027 = vmatprep.subr.bf16.mxu0 %v8171_v13 }
 0x2ca   :  { %3802 = vmatpush1.bf16.msra.mxu1 %v4790_v53 }
 0x2cb   :  { %4794 = vmatprep.subr.bf16.mxu1 %v7879_v29 }
 0x2cc   :  { %4028 = vmatpush1.bf16.msra.mxu0 %v4792_v39 }
 0x2cd   :  { %3804 = vmatmul.mubr.bf16.vlgmr.msra.gmra.mrb[64].mxu1 %v7081_v0 }
 0x2ce   :  { %4810 = vmatpush1.bf16.msra.mxu1 %v7887_v45  ;;  %3813 = vmatprep.mubr.bf16.mxu1 %v7173_v58 }
 0x2cf   :  { %4030 = vmatmul.mubr.bf16.vlgmr.msra.gmra.mrb[96].mxu0 %v7081_v0  ;;  %4795 = vmatprep.subr.bf16.mxu1 %v7897_v44  ;;  %v8239_v0 = vld [vmem:[%s8511_s8] sm:$0xff]  ;;  %s5287_s8 = smov [#allocation3]  }
 0x2d0   :  { %4039 = vmatprep.mubr.bf16.mxu0 %v7173_v58  ;;  %v8245_v25 = vrot.slane %v8239_v0, %v8787_v62  ;;  %v8789_v58 = vsub.s32 2, %v8786_v9  ;;  %s4432_s26 = sshll.u32 %s5287_s8, 4  ;;  %s4433_s26 = int_to_ptr.vmem [resolvable:$true] %s4432_s26 }
 0x2d1   :  { %s5259_s27 = scalar_lea.vmem %s4433_s26, 256  ;;  %p5264_p1 = scmp.lt.s32.totalorder %s4433_s26, %s4433_s26 }
 0x2d2   :  { %4811 = vmatpush1.bf16.msra.mxu1 %v7909_v26  ;;  %p5260_p0 = scmp.ne.s32.totalorder %s4433_s26, %s5259_s27  ;;  %p5265_p2 = scmp.lt.s32.totalorder %s5259_s27, %s5259_s27 }
 0x2d3   :  { %4796 = vmatprep.subr.bf16.mxu1 %v7918_v10 }
 0x2d4   :  { %p5266_p3 = por %p5265_p2, %p5264_p1 }
 0x2d5   :  { %3814 = vmatmul.mubr.bf16.gmra.mrb[68].mxu1 %v7155_v15 }
 0x2d6   :  { %4812 = vmatpush1.bf16.msra.mxu1 %v7927_v50  ;;  %3823 = vmatprep.mubr.bf16.mxu1 %v7255_v2  ;;  %p5267_p4 = pnand %p5266_p3, %p5260_p0 }
 0x2d7   :  { %4040 = vmatmul.mubr.bf16.gmra.mrb[100].mxu0 %v7155_v15  ;;  %4797 = vmatprep.subr.bf16.mxu1 %v7937_v3 }
 0x2d8   :  { %4049 = vmatprep.mubr.bf16.mxu0 %v7255_v2  ;;  %v8254_v2 = vrot.slane %v8239_v0, %v8788_v47 }
 0x2da   :  { %4813 = vmatpush1.bf16.msra.mxu1 %v7949_v61 }
 0x2db   :  { %4798 = vmatprep.subr.bf16.mxu1 %v7958_v36 }
 0x2dd   :  { %3824 = vmatmul.mubr.bf16.gmra.mrb[72].mxu1 %v7247_v41 }
 0x2de   :  { %4814 = vmatpush1.bf16.msra.mxu1 %v7967_v18  ;;  %3833 = vmatprep.mubr.bf16.mxu1 %v7347_v7 }
 0x2df   :  { %4050 = vmatmul.mubr.bf16.gmra.mrb[104].mxu0 %v7247_v41  ;;  %4799 = vmatprep.subr.bf16.mxu1 %v7977_v42  ;;  %v8250_v41 = vrot.slane %v8239_v0, %v8789_v58 }
 0x2e0   :  { %4059 = vmatprep.mubr.bf16.mxu0 %v7347_v7 }
 0x2e2   :  { %4815 = vmatpush1.bf16.msra.mxu1 %v7989_v4 }
 0x2e3   :  { %4800 = vmatprep.subr.bf16.mxu1 %v7998_v27 }
 0x2e5   :  { %3834 = vmatmul.mubr.bf16.gmra.mrb[76].mxu1 %v7329_v34 }
 0x2e6   :  { %4816 = vmatpush1.bf16.msra.mxu1 %v8007_v63  ;;  %3843 = vmatprep.mubr.bf16.mxu1 %v7429_v23 }
 0x2e7   :  { %4060 = vmatmul.mubr.bf16.gmra.mrb[108].mxu0 %v7329_v34  ;;  %4801 = vmatprep.subr.bf16.mxu1 %v8017_v28 }
 0x2ea   :  { %4817 = vmatpush1.bf16.msra.mxu1 %v8029_v35 }
 0x2eb   :  { %4802 = vmatprep.subr.bf16.mxu1 %v8038_v48 }
 0x2ed   :  { %3844 = vmatmul.mubr.bf16.gmra.mrb[80].mxu1 %v7421_v38 }
 0x2ee   :  { %4818 = vmatpush1.bf16.msra.mxu1 %v8047_v52  ;;  %3853 = vmatprep.mubr.bf16.mxu1 %v7512_v43 }
 0x2ef   :  { %4803 = vmatprep.subr.bf16.mxu1 %v8057_v54 }
 0x2f2   :  { %4819 = vmatpush1.bf16.msra.mxu1 %v8069_v49 }
 0x2f3   :  { %4804 = vmatprep.subr.bf16.mxu1 %v8078_v19 }
 0x2f5   :  { %3854 = vmatmul.mubr.bf16.gmra.mrb[84].mxu1 %v7494_v60 }
 0x2f6   :  { %4820 = vmatpush1.bf16.msra.mxu1 %v8087_v37  ;;  %3863 = vmatprep.mubr.bf16.mxu1 %v7575_v5 }
 0x2f7   :  { %4805 = vmatprep.subr.bf16.mxu1 %v8097_v55 }
 0x2fa   :  { %4821 = vmatpush1.bf16.msra.mxu1 %v8109_v17 }
 0x2fb   :  { %4806 = vmatprep.subr.bf16.mxu1 %v8118_v14 }
 0x2fd   :  { %3864 = vmatmul.mubr.bf16.gmra.mrb[88].mxu1 %v7567_v32 }
 0x2fe   :  { %4822 = vmatpush1.bf16.msra.mxu1 %v8127_v56  ;;  %3873 = vmatprep.mubr.bf16.mxu1 %v7627_v33 }
 0x2ff   :  { %4807 = vmatprep.subr.bf16.mxu1 %v8137_v21 }
 0x302   :  { %4823 = vmatpush1.bf16.msra.mxu1 %v8149_v8 }
 0x303   :  { %4808 = vmatprep.subr.bf16.mxu1 %v8158_v51 }
 0x305   :  { %3874 = vmatmul.mubr.bf16.gmra.mrb[92].mxu1 %v7614_v11 }
 0x306   :  { %4824 = vmatpush1.bf16.msra.mxu1 %v8167_v24  ;;  %4069 = vmatprep.mubr.bf16.mxu1 %v7429_v23 }
 0x307   :  { %4809 = vmatprep.subr.bf16.mxu1 %v8171_v13 }
 0x30a   :  { %4825 = vmatpush1.bf16.msra.mxu1 %v4792_v39 }
 0x30d   :  { %4070 = vmatmul.mubr.bf16.vlgmr.msra.gmra.mrb[96].mxu1 %v7421_v38  ;;  %v8790_v38 = vsub.s32 3, %v8786_v9 }
 0x30e   :  { %4079 = vmatprep.mubr.bf16.mxu1 %v7512_v43 }
 0x30f   :  { %v8259_v23 = vrot.slane %v8239_v0, %v8790_v38 }
 0x315   :  { %4080 = vmatmul.mubr.bf16.gmra.mrb[100].mxu1 %v7494_v60 }
 0x316   :  { %4089 = vmatprep.mubr.bf16.mxu1 %v7575_v5 }
 0x31d   :  { %4090 = vmatmul.mubr.bf16.gmra.mrb[104].mxu1 %v7567_v32 }
 0x31e   :  { %4099 = vmatprep.mubr.bf16.mxu1 %v7627_v33 }
 0x320   :  { %v3353_v15 = vpop.f32.mrb[32].mxu1 }
 0x321   :  { %v3579_v34 = vpop.f32.mrb[64].mxu0  ;;  %v3355_v7 = vpop.f32.mrb[33].mxu1  ;;  %v4826_v43 = vadd.f32 %v3353_v15, %v8245_v25 }
 0x322   :  { %v3581_v60 = vpop.f32.mrb[65].mxu0  ;;  %v3357_v62 = vpop.f32.mrb[34].mxu1  ;;  %v4858_v33 = vadd.f32 %v3579_v34, %v8250_v41  ;;  %v4827_v47 = vadd.f32 %v3355_v7, %v8254_v2 }
 0x323   :  { %v4828_v32 = vadd.f32 %v3357_v62, %v8245_v25  ;;  %v3583_v5 = vpop.f32.mrb[66].mxu0  ;;  %v3359_v12 = vpop.f32.mrb[35].mxu1  ;;  %v4859_v26 = vadd.f32 %v3581_v60, %v8259_v23 }
 0x324   :  { %v4860_v29 = vadd.f32 %v3583_v5, %v8250_v41  ;;  %v4829_v45 = vadd.f32 %v3359_v12, %v8254_v2  ;;  %v3585_v44 = vpop.f32.mrb[67].mxu0 }
 0x325   :  { %v4110_v10 = vmax.f32 %v4826_v43, %v4828_v32  ;;  %v4861_v50 = vadd.f32 %v3585_v44, %v8259_v23  ;;  %4100 = vmatmul.mubr.bf16.gmra.mrb[108].mxu1 %v7614_v11 }
 0x326   :  { %v4136_v3 = vmax.f32 %v4858_v33, %v4860_v29  ;;  %v4123_v61 = vmax.f32 %v4827_v47, %v4829_v45 }
 0x327   :  { %v4149_v36 = vmax.f32 %v4859_v26, %v4861_v50 }
 0x328   :  { %v3363_v18 = vpop.f32.mrb[36].mxu1 }
 0x329   :  { %v4830_v42 = vadd.f32 %v3363_v18, %v8245_v25  ;;  %v3589_v4 = vpop.f32.mrb[68].mxu0  ;;  %v3365_v27 = vpop.f32.mrb[37].mxu1 }
 0x32a   :  { %v4862_v63 = vadd.f32 %v3589_v4, %v8250_v41  ;;  %v4831_v28 = vadd.f32 %v3365_v27, %v8254_v2  ;;  %v3591_v35 = vpop.f32.mrb[69].mxu0  ;;  %v3367_v48 = vpop.f32.mrb[38].mxu1 }
 0x32b   :  { %v4111_v52 = vmax.f32 %v4110_v10, %v4830_v42  ;;  %v4863_v54 = vadd.f32 %v3591_v35, %v8259_v23  ;;  %v4832_v49 = vadd.f32 %v3367_v48, %v8245_v25  ;;  %v3593_v11 = vpop.f32.mrb[70].mxu0  ;;  %v3369_v19 = vpop.f32.mrb[39].mxu1 }
 0x32c   :  { %v4137_v37 = vmax.f32 %v4136_v3, %v4862_v63  ;;  %v4124_v55 = vmax.f32 %v4123_v61, %v4831_v28  ;;  %v4864_v17 = vadd.f32 %v3593_v11, %v8250_v41  ;;  %v4833_v14 = vadd.f32 %v3369_v19, %v8254_v2  ;;  %v3595_v56 = vpop.f32.mrb[71].mxu0 }
 0x32d   :  { %v4150_v6 = vmax.f32 %v4149_v36, %v4863_v54  ;;  %v4112_v21 = vmax.f32 %v4111_v52, %v4832_v49  ;;  %v4865_v20 = vadd.f32 %v3595_v56, %v8259_v23  ;;  %v5286_v49 = vmov 1983009808  }
 0x32e   :  { %v4138_v1 = vmax.f32 %v4137_v37, %v4864_v17  ;;  %v4125_v46 = vmax.f32 %v4124_v55, %v4833_v14  ;;  %v4337_v11 = vunpack.c.l.s4 %v5286_v49 }
 0x32f   :  { %v4151_v40 = vmax.f32 %v4150_v6, %v4865_v20 }
 0x330   :  { %v3373_v8 = vpop.f32.mrb[40].mxu1 }
 0x331   :  { %v4834_v59 = vadd.f32 %v3373_v8, %v8245_v25  ;;  %v3599_v30 = vpop.f32.mrb[72].mxu0  ;;  %v3375_v51 = vpop.f32.mrb[41].mxu1 }
 0x332   :  { %v4866_v57 = vadd.f32 %v3599_v30, %v8250_v41  ;;  %v4835_v16 = vadd.f32 %v3375_v51, %v8254_v2  ;;  %v3601_v22 = vpop.f32.mrb[73].mxu0  ;;  %v3377_v31 = vpop.f32.mrb[42].mxu1 }
 0x333   :  { %v4113_v24 = vmax.f32 %v4112_v21, %v4834_v59  ;;  %v4867_v13 = vadd.f32 %v3601_v22, %v8259_v23  ;;  %v4836_v53 = vadd.f32 %v3377_v31, %v8245_v25  ;;  %v3603_v39 = vpop.f32.mrb[74].mxu0  ;;  %v3379_v15 = vpop.f32.mrb[43].mxu1 }
 0x334   :  { %v4139_v58 = vmax.f32 %v4138_v1, %v4866_v57  ;;  %v4126_v34 = vmax.f32 %v4125_v46, %v4835_v16  ;;  %v4868_v7 = vadd.f32 %v3603_v39, %v8250_v41  ;;  %v4837_v38 = vadd.f32 %v3379_v15, %v8254_v2  ;;  %v3605_v60 = vpop.f32.mrb[75].mxu0 }
 0x335   :  { %v4152_v62 = vmax.f32 %v4151_v40, %v4867_v13  ;;  %v4114_v43 = vmax.f32 %v4113_v24, %v4836_v53  ;;  %v4869_v32 = vadd.f32 %v3605_v60, %v8259_v23  ;;  %v4338_v1 = vunpack.c.0.s8 %v4337_v11 }
 0x336   :  { %v4140_v5 = vmax.f32 %v4139_v58, %v4868_v7  ;;  %v4127_v12 = vmax.f32 %v4126_v34, %v4837_v38 }
 0x337   :  { %v4153_v33 = vmax.f32 %v4152_v62, %v4869_v32 }
 0x338   :  { %v3383_v47 = vpop.f32.mrb[44].mxu1 }
 0x339   :  { %v4838_v29 = vadd.f32 %v3383_v47, %v8245_v25  ;;  %v3609_v45 = vpop.f32.mrb[76].mxu0  ;;  %v3385_v44 = vpop.f32.mrb[45].mxu1 }
 0x33a   :  { %v4870_v26 = vadd.f32 %v3609_v45, %v8250_v41  ;;  %v4839_v10 = vadd.f32 %v3385_v44, %v8254_v2  ;;  %v3611_v50 = vpop.f32.mrb[77].mxu0  ;;  %v3387_v3 = vpop.f32.mrb[46].mxu1 }
 0x33b   :  { %v4115_v61 = vmax.f32 %v4114_v43, %v4838_v29  ;;  %v4871_v36 = vadd.f32 %v3611_v50, %v8259_v23  ;;  %v4840_v18 = vadd.f32 %v3387_v3, %v8245_v25  ;;  %v3613_v42 = vpop.f32.mrb[78].mxu0  ;;  %v3389_v4 = vpop.f32.mrb[47].mxu1 }
 0x33c   :  { %v4141_v27 = vmax.f32 %v4140_v5, %v4870_v26  ;;  %v4128_v63 = vmax.f32 %v4127_v12, %v4839_v10  ;;  %v4872_v28 = vadd.f32 %v3613_v42, %v8250_v41  ;;  %v4841_v35 = vadd.f32 %v3389_v4, %v8254_v2  ;;  %v3615_v48 = vpop.f32.mrb[79].mxu0 }
 0x33d   :  { %v4154_v52 = vmax.f32 %v4153_v33, %v4871_v36  ;;  %v4116_v54 = vmax.f32 %v4115_v61, %v4840_v18  ;;  %v4873_v19 = vadd.f32 %v3615_v48, %v8259_v23  ;;  %v8303_v18 = vsub.s32 %v4338_v1, %v8786_v9 }
 0x33e   :  { %v4142_v37 = vmax.f32 %v4141_v27, %v4872_v28  ;;  %v4129_v55 = vmax.f32 %v4128_v63, %v4841_v35 }
 0x33f   :  { %v4117_v17 = vrot.slane %v4116_v54, 4  ;;  %v4155_v14 = vmax.f32 %v4154_v52, %v4873_v19 }
 0x340   :  { %v4143_v56 = vrot.slane %v4142_v37, 4  ;;  %v4130_v6 = vrot.slane %v4129_v55, 4  ;;  %v3393_v21 = vpop.f32.mrb[48].mxu1 }
 0x341   :  { %v4118_v20 = vmax.f32 %v4116_v54, %v4117_v17  ;;  %v4156_v46 = vrot.slane %v4155_v14, 4  ;;  %v4842_v40 = vadd.f32 %v3393_v21, %v8245_v25  ;;  %v3619_v8 = vpop.f32.mrb[80].mxu0  ;;  %v3395_v59 = vpop.f32.mrb[49].mxu1 }
 0x342   :  { %v4144_v30 = vmax.f32 %v4142_v37, %v4143_v56  ;;  %v4131_v51 = vmax.f32 %v4129_v55, %v4130_v6  ;;  %v4874_v57 = vadd.f32 %v3619_v8, %v8250_v41  ;;  %v4843_v16 = vadd.f32 %v3395_v59, %v8254_v2  ;;  %v3621_v22 = vpop.f32.mrb[81].mxu0  ;;  %v3397_v31 = vpop.f32.mrb[50].mxu1 }
 0x343   :  { %v4119_v24 = vrot.slane %v4118_v20, 2  ;;  %v4157_v13 = vmax.f32 %v4155_v14, %v4156_v46  ;;  %v4875_v53 = vadd.f32 %v3621_v22, %v8259_v23  ;;  %v4844_v39 = vadd.f32 %v3397_v31, %v8245_v25  ;;  %v3623_v15 = vpop.f32.mrb[82].mxu0  ;;  %v3399_v58 = vpop.f32.mrb[51].mxu1 }
 0x344   :  { %v4145_v34 = vrot.slane %v4144_v30, 2  ;;  %v4132_v7 = vrot.slane %v4131_v51, 2  ;;  %v4876_v38 = vadd.f32 %v3623_v15, %v8250_v41  ;;  %v4845_v60 = vadd.f32 %v3399_v58, %v8254_v2  ;;  %v3625_v62 = vpop.f32.mrb[83].mxu0 }
 0x345   :  { %v4120_v43 = vmax.f32 %v4118_v20, %v4119_v24  ;;  %v4158_v32 = vrot.slane %v4157_v13, 2  ;;  %v4214_v5 = vmax.f32 %v4842_v40, %v4844_v39  ;;  %v4877_v12 = vadd.f32 %v3625_v62, %v8259_v23 }
 0x346   :  { %v4146_v33 = vmax.f32 %v4144_v30, %v4145_v34  ;;  %v4133_v47 = vmax.f32 %v4131_v51, %v4132_v7  ;;  %v4240_v29 = vmax.f32 %v4874_v57, %v4876_v38  ;;  %v4227_v45 = vmax.f32 %v4843_v16, %v4845_v60 }
 0x347   :  { %v4121_v44 = vrot.slane %v4120_v43, 1  ;;  %v4159_v26 = vmax.f32 %v4157_v13, %v4158_v32  ;;  %v4253_v10 = vmax.f32 %v4875_v53, %v4877_v12 }
 0x348   :  { %v4147_v50 = vrot.slane %v4146_v33, 1  ;;  %v4134_v3 = vrot.slane %v4133_v47, 1  ;;  %v3403_v61 = vpop.f32.mrb[52].mxu1 }
 0x349   :  { %v4122_v36 = vmax.f32 %v4120_v43, %v4121_v44  ;;  %v4160_v42 = vrot.slane %v4159_v26, 1  ;;  %v4846_v4 = vadd.f32 %v3403_v61, %v8245_v25  ;;  %v3629_v27 = vpop.f32.mrb[84].mxu0  ;;  %v3405_v63 = vpop.f32.mrb[53].mxu1 }
 0x34a   :  { %v4148_v28 = vmax.f32 %v4146_v33, %v4147_v50  ;;  %v4135_v35 = vmax.f32 %v4133_v47, %v4134_v3  ;;  %v4878_v48 = vadd.f32 %v3629_v27, %v8250_v41  ;;  %v4847_v52 = vadd.f32 %v3405_v63, %v8254_v2  ;;  %v3631_v54 = vpop.f32.mrb[85].mxu0  ;;  %v3407_v49 = vpop.f32.mrb[54].mxu1 }
 0x34b   :  { %v4161_v11 = vmax.f32 %v4159_v26, %v4160_v42  ;;  %v4215_v19 = vmax.f32 %v4214_v5, %v4846_v4  ;;  %v4879_v37 = vadd.f32 %v3631_v54, %v8259_v23  ;;  %v4848_v55 = vadd.f32 %v3407_v49, %v8245_v25  ;;  %v3633_v17 = vpop.f32.mrb[86].mxu0  ;;  %v3409_v14 = vpop.f32.mrb[55].mxu1 }
 0x34c   :  { %v4334_v56 = vcombine.low %v4122_v36, %v4135_v35  ;;  %v4241_v6 = vmax.f32 %v4240_v29, %v4878_v48  ;;  %v4228_v21 = vmax.f32 %v4227_v45, %v4847_v52  ;;  %v4880_v20 = vadd.f32 %v3633_v17, %v8250_v41  ;;  %v3635_v1 = vpop.f32.mrb[87].mxu0 }
 0x34d   :  { %v4335_v46 = vcombine.low %v4148_v28, %v4161_v11  ;;  %v4254_v40 = vmax.f32 %v4253_v10, %v4879_v37  ;;  %v4216_v8 = vmax.f32 %v4215_v19, %v4848_v55  ;;  %v4849_v59 = vadd.f32 %v3409_v14, %v8254_v2 }
 0x34e   :  { %v8313_v30 = vrot.slane %v4334_v56, %v8303_v18  ;;  %v4242_v51 = vmax.f32 %v4241_v6, %v4880_v20  ;;  %v4881_v57 = vadd.f32 %v3635_v1, %v8259_v23 }
 0x34f   :  { %v8317_v16 = vrot.slane %v4335_v46, %v8303_v18  ;;  %v4229_v22 = vmax.f32 %v4228_v21, %v4849_v59 }
 0x350   :  { %v4255_v31 = vmax.f32 %v4254_v40, %v4881_v57  ;;  %v3413_v24 = vpop.f32.mrb[56].mxu1 }
 0x351   :  { %v4350_v13 = vcombine.low %v8313_v30, %v8317_v16  ;;  %v4850_v53 = vadd.f32 %v3413_v24, %v8245_v25  ;;  %v3639_v39 = vpop.f32.mrb[88].mxu0  ;;  %v3415_v15 = vpop.f32.mrb[57].mxu1 }
 0x352   :  { %v4882_v58 = vadd.f32 %v3639_v39, %v8250_v41  ;;  %v4851_v34 = vadd.f32 %v3415_v15, %v8254_v2  ;;  %v3641_v7 = vpop.f32.mrb[89].mxu0  ;;  %v3417_v38 = vpop.f32.mrb[58].mxu1 }
 0x353   :  { %v4217_v60 = vmax.f32 %v4216_v8, %v4850_v53  ;;  %v4883_v62 = vadd.f32 %v3641_v7, %v8259_v23  ;;  %v4852_v43 = vadd.f32 %v3417_v38, %v8245_v25  ;;  %v3643_v32 = vpop.f32.mrb[90].mxu0  ;;  %v3419_v5 = vpop.f32.mrb[59].mxu1 }
 0x354   :  { %v4243_v12 = vmax.f32 %v4242_v51, %v4882_v58  ;;  %v4230_v33 = vmax.f32 %v4229_v22, %v4851_v34  ;;  %v4884_v47 = vadd.f32 %v3643_v32, %v8250_v41  ;;  %v4853_v29 = vadd.f32 %v3419_v5, %v8254_v2  ;;  %v3645_v45 = vpop.f32.mrb[91].mxu0 }
 0x355   :  { %v4256_v44 = vmax.f32 %v4255_v31, %v4883_v62  ;;  %v4218_v26 = vmax.f32 %v4217_v60, %v4852_v43  ;;  %v4885_v10 = vadd.f32 %v3645_v45, %v8259_v23 }
 0x356   :  { %v4244_v50 = vmax.f32 %v4243_v12, %v4884_v47  ;;  %v4231_v3 = vmax.f32 %v4230_v33, %v4853_v29 }
 0x357   :  { %v4257_v61 = vmax.f32 %v4256_v44, %v4885_v10 }
 0x358   :  { %v3423_v36 = vpop.f32.mrb[60].mxu1 }
 0x359   :  { %v4854_v42 = vadd.f32 %v3423_v36, %v8245_v25  ;;  %v3649_v4 = vpop.f32.mrb[92].mxu0  ;;  %v3425_v27 = vpop.f32.mrb[61].mxu1 }
 0x35a   :  { %v4886_v63 = vadd.f32 %v3649_v4, %v8250_v41  ;;  %v4855_v28 = vadd.f32 %v3425_v27, %v8254_v2  ;;  %v3651_v35 = vpop.f32.mrb[93].mxu0  ;;  %v3427_v48 = vpop.f32.mrb[62].mxu1 }
 0x35b   :  { %v4219_v52 = vmax.f32 %v4218_v26, %v4854_v42  ;;  %v4887_v54 = vadd.f32 %v3651_v35, %v8259_v23  ;;  %v4856_v49 = vadd.f32 %v3427_v48, %v8245_v25  ;;  %v3653_v11 = vpop.f32.mrb[94].mxu0  ;;  %v3429_v19 = vpop.f32.mrb[63].mxu1 }
 0x35c   :  { %v4245_v37 = vmax.f32 %v4244_v50, %v4886_v63  ;;  %v4232_v55 = vmax.f32 %v4231_v3, %v4855_v28  ;;  %v4888_v17 = vadd.f32 %v3653_v11, %v8250_v41  ;;  %v4857_v14 = vadd.f32 %v3429_v19, %v8254_v2  ;;  %v3655_v56 = vpop.f32.mrb[95].mxu0 }
 0x35d   :  { %v4258_v6 = vmax.f32 %v4257_v61, %v4887_v54  ;;  %v4220_v21 = vmax.f32 %v4219_v52, %v4856_v49  ;;  %v4889_v20 = vadd.f32 %v3655_v56, %v8259_v23  ;;  %v1904_v11 = vsub.s32 4, %v8786_v9 }
 0x35e   :  { %v4246_v1 = vmax.f32 %v4245_v37, %v4888_v17  ;;  %v4233_v46 = vmax.f32 %v4232_v55, %v4857_v14  ;;  %v1908_v37 = vsub.s32 5, %v8786_v9  ;;  %v1912_v17 = vsub.s32 6, %v8786_v9 }
 0x35f   :  { %v4221_v40 = vrot.slane %v4220_v21, 4  ;;  %v4259_v8 = vmax.f32 %v4258_v6, %v4889_v20  ;;  %v8382_v14 = vrot.slane %v8239_v0, %v1904_v11  ;;  %v1916_v56 = vsub.s32 7, %v8786_v9 }
 0x360   :  { %v4247_v59 = vrot.slane %v4246_v1, 4  ;;  %v4234_v51 = vrot.slane %v4233_v46, 4 }
 0x361   :  { %v4222_v25 = vmax.f32 %v4220_v21, %v4221_v40  ;;  %v4260_v57 = vrot.slane %v4259_v8, 4  ;;  %v8386_v21 = vrot.slane %v8239_v0, %v1908_v37  ;;  %v8389_v40 = vrot.slane %v8239_v0, %v1912_v17 }
 0x362   :  { %v4248_v22 = vmax.f32 %v4246_v1, %v4247_v59  ;;  %v4235_v31 = vmax.f32 %v4233_v46, %v4234_v51 }
 0x363   :  { %v4223_v24 = vrot.slane %v4222_v25, 2  ;;  %v4261_v53 = vmax.f32 %v4259_v8, %v4260_v57  ;;  %v8394_v57 = vrot.slane %v8239_v0, %v1916_v56 }
 0x364   :  { %v4249_v41 = vrot.slane %v4248_v22, 2  ;;  %v4236_v39 = vrot.slane %v4235_v31, 2 }
 0x365   :  { %v4224_v2 = vmax.f32 %v4222_v25, %v4223_v24  ;;  %v4262_v15 = vrot.slane %v4261_v53, 2 }
 0x366   :  { %v4250_v58 = vmax.f32 %v4248_v22, %v4249_v41  ;;  %v4237_v34 = vmax.f32 %v4235_v31, %v4236_v39 }
 0x367   :  { %v4225_v7 = vrot.slane %v4224_v2, 1  ;;  %v4263_v23 = vmax.f32 %v4261_v53, %v4262_v15 }
 0x368   :  { %v4251_v38 = vrot.slane %v4250_v58, 1  ;;  %v4238_v60 = vrot.slane %v4237_v34, 1 }
 0x369   :  { %v4226_v62 = vmax.f32 %v4224_v2, %v4225_v7  ;;  %v4264_v43 = vrot.slane %v4263_v23, 1 }
 0x36a   :  { %v4252_v32 = vmax.f32 %v4250_v58, %v4251_v38  ;;  %v4239_v5 = vmax.f32 %v4237_v34, %v4238_v60 }
 0x36b   :  { %v4265_v12 = vmax.f32 %v4263_v23, %v4264_v43 }
 0x36c   :  { %v4368_v33 = vcombine.low %v4226_v62, %v4239_v5 }
 0x36d   :  { %v4369_v47 = vcombine.low %v4252_v32, %v4265_v12 }
 0x36e   :  { %v4376_v29 = vrot.slane %v4368_v33, %v8303_v18 }
 0x36f   :  { %v4383_v45 = vrot.slane %v4369_v47, %v8303_v18 }
 0x371   :  { %v4384_v44 = vcombine.low %v4376_v29, %v4383_v45 }
 0x373   :  { %v4406_v26 = vrot.slane %v4384_v44, 7 }
 0x375   :  { %v4408_v10 = vsel %vm4407_vm0, %v4406_v26, %v4350_v13 }
 0x376   :  { %v4410_v50 = vsel %vm4409_vm1, %v4406_v26, %v4408_v10 }
 0x377   :  { %v4412_v3 = vsel %vm4411_vm2, %v4406_v26, %v4410_v50 }
 0x378   :  { %v4414_v61 = vsel %vm4413_vm3, %v4406_v26, %v4412_v3 }
 0x379   :  { %4424 = vst [vmem:[#allocation3] sm:$0xff] %v4414_v61 }
 0x382   :  { %v8346_v36 = vpop.f32.mrb[112].mxu0 }
 0x383   :  { %v8348_v42 = vpop.f32.mrb[113].mxu0 }
 0x384   :  { %v8350_v4 = vpop.f32.mrb[114].mxu0 }
 0x385   :  { %v8352_v27 = vpop.f32.mrb[115].mxu0 }
 0x38a   :  { %v8354_v63 = vpop.f32.mrb[116].mxu0 }
 0x38b   :  { %v8356_v30 = vpop.f32.mrb[117].mxu0 }
 0x38c   :  { %v8358_v16 = vpop.f32.mrb[118].mxu0 }
 0x38d   :  { %v8360_v13 = vpop.f32.mrb[119].mxu0 }
 0x392   :  { %v8362_v28 = vpop.f32.mrb[120].mxu0 }
 0x393   :  { %v8364_v35 = vpop.f32.mrb[121].mxu0 }
 0x394   :  { %v8366_v48 = vpop.f32.mrb[122].mxu0 }
 0x395   :  { %v8368_v52 = vpop.f32.mrb[123].mxu0 }
 0x39a   :  { %v8370_v54 = vpop.f32.mrb[124].mxu0 }
 0x39b   :  { %v8372_v49 = vpop.f32.mrb[125].mxu0 }
 0x39c   :  { %v8375_v19 = vpop.f32.mrb[126].mxu0 }
 0x39d   :  { %v8378_v55 = vpop.f32.mrb[127].mxu0 }
 0x3a0   :  { %v3805_v6 = vpop.f32.mrb[64].mxu1 }
 0x3a1   :  { %v3807_v20 = vpop.f32.mrb[65].mxu1  ;;  %v4890_v8 = vadd.f32 %v3805_v6, %v8382_v14 }
 0x3a2   :  { %v4031_v1 = vpop.f32.mrb[96].mxu0  ;;  %v3809_v46 = vpop.f32.mrb[66].mxu1  ;;  %v4891_v9 = vadd.f32 %v3807_v20, %v8386_v21 }
 0x3a3   :  { %v4033_v59 = vpop.f32.mrb[97].mxu0  ;;  %v4892_v51 = vadd.f32 %v3809_v46, %v8382_v14  ;;  %v3811_v25 = vpop.f32.mrb[67].mxu1  ;;  %v4922_v24 = vadd.f32 %v4031_v1, %v8389_v40 }
 0x3a4   :  { %v4035_v22 = vpop.f32.mrb[98].mxu0  ;;  %v4893_v31 = vadd.f32 %v3811_v25, %v8386_v21  ;;  %v4923_v2 = vadd.f32 %v4033_v59, %v8394_v57 }
 0x3a5   :  { %v4162_v53 = vmax.f32 %v4890_v8, %v4892_v51  ;;  %v4924_v41 = vadd.f32 %v4035_v22, %v8389_v40  ;;  %v4037_v39 = vpop.f32.mrb[99].mxu0 }
 0x3a6   :  { %v4175_v15 = vmax.f32 %v4891_v9, %v4893_v31  ;;  %v4925_v58 = vadd.f32 %v4037_v39, %v8394_v57 }
 0x3a7   :  { %v4188_v34 = vmax.f32 %v4922_v24, %v4924_v41 }
 0x3a8   :  { %v4201_v7 = vmax.f32 %v4923_v2, %v4925_v58  ;;  %v3815_v0 = vpop.f32.mrb[68].mxu1 }
 0x3a9   :  { %v4894_v23 = vadd.f32 %v3815_v0, %v8382_v14  ;;  %v3817_v38 = vpop.f32.mrb[69].mxu1 }
 0x3aa   :  { %v4041_v60 = vpop.f32.mrb[100].mxu0  ;;  %v4895_v62 = vadd.f32 %v3817_v38, %v8386_v21  ;;  %v3819_v43 = vpop.f32.mrb[70].mxu1 }
 0x3ab   :  { %v4163_v32 = vmax.f32 %v4162_v53, %v4894_v23  ;;  %v4926_v5 = vadd.f32 %v4041_v60, %v8389_v40  ;;  %v4043_v12 = vpop.f32.mrb[101].mxu0  ;;  %v4896_v33 = vadd.f32 %v3819_v43, %v8382_v14  ;;  %v3821_v47 = vpop.f32.mrb[71].mxu1 }
 0x3ac   :  { %v4176_v29 = vmax.f32 %v4175_v15, %v4895_v62  ;;  %v4927_v45 = vadd.f32 %v4043_v12, %v8394_v57  ;;  %v4045_v44 = vpop.f32.mrb[102].mxu0  ;;  %v4897_v26 = vadd.f32 %v3821_v47, %v8386_v21 }
 0x3ad   :  { %v4189_v10 = vmax.f32 %v4188_v34, %v4926_v5  ;;  %v4164_v50 = vmax.f32 %v4163_v32, %v4896_v33  ;;  %v4928_v3 = vadd.f32 %v4045_v44, %v8389_v40  ;;  %v4047_v61 = vpop.f32.mrb[103].mxu0 }
 0x3ae   :  { %v4202_v11 = vmax.f32 %v4201_v7, %v4927_v45  ;;  %v4177_v37 = vmax.f32 %v4176_v29, %v4897_v26  ;;  %v4929_v17 = vadd.f32 %v4047_v61, %v8394_v57 }
 0x3af   :  { %v4190_v56 = vmax.f32 %v4189_v10, %v4928_v3 }
 0x3b0   :  { %v4203_v6 = vmax.f32 %v4202_v11, %v4929_v17  ;;  %v3825_v20 = vpop.f32.mrb[72].mxu1 }
 0x3b1   :  { %v4898_v1 = vadd.f32 %v3825_v20, %v8382_v14  ;;  %v3827_v46 = vpop.f32.mrb[73].mxu1 }
 0x3b2   :  { %v4051_v8 = vpop.f32.mrb[104].mxu0  ;;  %v4899_v59 = vadd.f32 %v3827_v46, %v8386_v21  ;;  %v3829_v51 = vpop.f32.mrb[74].mxu1 }
 0x3b3   :  { %v4165_v25 = vmax.f32 %v4164_v50, %v4898_v1  ;;  %v4930_v9 = vadd.f32 %v4051_v8, %v8389_v40  ;;  %v4053_v22 = vpop.f32.mrb[105].mxu0  ;;  %v4900_v31 = vadd.f32 %v3829_v51, %v8382_v14  ;;  %v3831_v24 = vpop.f32.mrb[75].mxu1 }
 0x3b4   :  { %v4178_v53 = vmax.f32 %v4177_v37, %v4899_v59  ;;  %v4931_v41 = vadd.f32 %v4053_v22, %v8394_v57  ;;  %v4055_v39 = vpop.f32.mrb[106].mxu0  ;;  %v4901_v2 = vadd.f32 %v3831_v24, %v8386_v21 }
 0x3b5   :  { %v4191_v15 = vmax.f32 %v4190_v56, %v4930_v9  ;;  %v4166_v58 = vmax.f32 %v4165_v25, %v4900_v31  ;;  %v4932_v34 = vadd.f32 %v4055_v39, %v8389_v40  ;;  %v4057_v7 = vpop.f32.mrb[107].mxu0 }
 0x3b6   :  { %v4204_v0 = vmax.f32 %v4203_v6, %v4931_v41  ;;  %v4179_v23 = vmax.f32 %v4178_v53, %v4901_v2  ;;  %v4933_v38 = vadd.f32 %v4057_v7, %v8394_v57 }
 0x3b7   :  { %v4192_v60 = vmax.f32 %v4191_v15, %v4932_v34 }
 0x3b8   :  { %v4205_v62 = vmax.f32 %v4204_v0, %v4933_v38  ;;  %v3835_v43 = vpop.f32.mrb[76].mxu1 }
 0x3b9   :  { %v4902_v32 = vadd.f32 %v3835_v43, %v8382_v14  ;;  %v3837_v5 = vpop.f32.mrb[77].mxu1 }
 0x3ba   :  { %v4061_v12 = vpop.f32.mrb[108].mxu0  ;;  %v4903_v33 = vadd.f32 %v3837_v5, %v8386_v21  ;;  %v3839_v47 = vpop.f32.mrb[78].mxu1 }
 0x3bb   :  { %v4167_v29 = vmax.f32 %v4166_v58, %v4902_v32  ;;  %v4934_v45 = vadd.f32 %v4061_v12, %v8389_v40  ;;  %v4063_v44 = vpop.f32.mrb[109].mxu0  ;;  %v4904_v26 = vadd.f32 %v3839_v47, %v8382_v14  ;;  %v3841_v10 = vpop.f32.mrb[79].mxu1 }
 0x3bc   :  { %v4180_v50 = vmax.f32 %v4179_v23, %v4903_v33  ;;  %v4935_v3 = vadd.f32 %v4063_v44, %v8394_v57  ;;  %v4065_v61 = vpop.f32.mrb[110].mxu0  ;;  %v4905_v11 = vadd.f32 %v3841_v10, %v8386_v21 }
 0x3bd   :  { %v4193_v37 = vmax.f32 %v4192_v60, %v4934_v45  ;;  %v4168_v17 = vmax.f32 %v4167_v29, %v4904_v26  ;;  %v4936_v56 = vadd.f32 %v4065_v61, %v8389_v40  ;;  %v4067_v6 = vpop.f32.mrb[111].mxu0 }
 0x3be   :  { %v4206_v20 = vmax.f32 %v4205_v62, %v4935_v3  ;;  %v4181_v1 = vmax.f32 %v4180_v50, %v4905_v11  ;;  %v4937_v46 = vadd.f32 %v4067_v6, %v8394_v57 }
 0x3bf   :  { %v4169_v8 = vrot.slane %v4168_v17, 4  ;;  %v4194_v59 = vmax.f32 %v4193_v37, %v4936_v56 }
 0x3c0   :  { %v4182_v51 = vrot.slane %v4181_v1, 4  ;;  %v4207_v25 = vmax.f32 %v4206_v20, %v4937_v46  ;;  %v3845_v9 = vpop.f32.mrb[80].mxu1 }
 0x3c1   :  { %v4170_v22 = vmax.f32 %v4168_v17, %v4169_v8  ;;  %v4195_v31 = vrot.slane %v4194_v59, 4  ;;  %v3847_v24 = vpop.f32.mrb[81].mxu1  ;;  %v4906_v58 = vadd.f32 %v3845_v9, %v8382_v14 }
 0x3c2   :  { %v4183_v53 = vmax.f32 %v4181_v1, %v4182_v51  ;;  %v4208_v41 = vrot.slane %v4207_v25, 4  ;;  %v3849_v39 = vpop.f32.mrb[82].mxu1  ;;  %v4907_v38 = vadd.f32 %v3847_v24, %v8386_v21 }
 0x3c3   :  { %v4171_v2 = vrot.slane %v4170_v22, 2  ;;  %v4196_v15 = vmax.f32 %v4194_v59, %v4195_v31  ;;  %v4908_v34 = vadd.f32 %v3849_v39, %v8382_v14  ;;  %v3851_v7 = vpop.f32.mrb[83].mxu1 }
 0x3c4   :  { %v4184_v0 = vrot.slane %v4183_v53, 2  ;;  %v4209_v23 = vmax.f32 %v4207_v25, %v4208_v41  ;;  %v4909_v60 = vadd.f32 %v3851_v7, %v8386_v21 }
 0x3c5   :  { %v4172_v62 = vmax.f32 %v4170_v22, %v4171_v2  ;;  %v4197_v43 = vrot.slane %v4196_v15, 2  ;;  %v4266_v32 = vmax.f32 %v4906_v58, %v4908_v34 }
 0x3c6   :  { %v4185_v5 = vmax.f32 %v4183_v53, %v4184_v0  ;;  %v4210_v12 = vrot.slane %v4209_v23, 2  ;;  %v4279_v33 = vmax.f32 %v4907_v38, %v4909_v60 }
 0x3c7   :  { %v4173_v47 = vrot.slane %v4172_v62, 1  ;;  %v4198_v29 = vmax.f32 %v4196_v15, %v4197_v43 }
 0x3c8   :  { %v4186_v45 = vrot.slane %v4185_v5, 1  ;;  %v4211_v44 = vmax.f32 %v4209_v23, %v4210_v12  ;;  %v3855_v26 = vpop.f32.mrb[84].mxu1 }
 0x3c9   :  { %v4174_v10 = vmax.f32 %v4172_v62, %v4173_v47  ;;  %v4199_v50 = vrot.slane %v4198_v29, 1  ;;  %v4910_v3 = vadd.f32 %v3855_v26, %v8382_v14  ;;  %v3857_v61 = vpop.f32.mrb[85].mxu1 }
 0x3ca   :  { %v4187_v11 = vmax.f32 %v4185_v5, %v4186_v45  ;;  %v4212_v37 = vrot.slane %v4211_v44, 1  ;;  %v4911_v17 = vadd.f32 %v3857_v61, %v8386_v21  ;;  %v3859_v56 = vpop.f32.mrb[86].mxu1  ;;  %v3959_v61 = vadd.f32 %v8346_v36, %v8389_v40 }
 0x3cb   :  { %v4200_v6 = vmax.f32 %v4198_v29, %v4199_v50  ;;  %v4267_v20 = vmax.f32 %v4266_v32, %v4910_v3  ;;  %v4912_v1 = vadd.f32 %v3859_v56, %v8382_v14  ;;  %v3861_v46 = vpop.f32.mrb[87].mxu1 }
 0x3cc   :  { %v4351_v8 = vcombine.low %v4174_v10, %v4187_v11  ;;  %v4213_v59 = vmax.f32 %v4211_v44, %v4212_v37  ;;  %v4280_v51 = vmax.f32 %v4279_v33, %v4911_v17  ;;  %v4913_v25 = vadd.f32 %v3861_v46, %v8386_v21 }
 0x3cd   :  { %v4268_v9 = vmax.f32 %v4267_v20, %v4912_v1  ;;  %v3961_v37 = vadd.f32 %v8348_v42, %v8394_v57 }
 0x3ce   :  { %v8435_v22 = vrot.slane %v4351_v8, %v8303_v18  ;;  %v4352_v31 = vcombine.low %v4200_v6, %v4213_v59  ;;  %v4281_v24 = vmax.f32 %v4280_v51, %v4913_v25  ;;  %v3963_v6 = vadd.f32 %v8350_v4, %v8389_v40 }
 0x3cf   :  { %v3969_v4 = vadd.f32 %v8354_v63, %v8389_v40 }
 0x3d0   :  { %v8438_v53 = vrot.slane %v4352_v31, %v8303_v18  ;;  %v3865_v41 = vpop.f32.mrb[88].mxu1 }
 0x3d1   :  { %v4914_v39 = vadd.f32 %v3865_v41, %v8382_v14  ;;  %v3867_v2 = vpop.f32.mrb[89].mxu1 }
 0x3d2   :  { %v4367_v15 = vcombine.low %v8435_v22, %v8438_v53  ;;  %v4915_v58 = vadd.f32 %v3867_v2, %v8386_v21  ;;  %v3869_v34 = vpop.f32.mrb[90].mxu1 }
 0x3d3   :  { %v4269_v7 = vmax.f32 %v4268_v9, %v4914_v39  ;;  %v4916_v0 = vadd.f32 %v3869_v34, %v8382_v14  ;;  %v3871_v23 = vpop.f32.mrb[91].mxu1 }
 0x3d4   :  { %v4282_v38 = vmax.f32 %v4281_v24, %v4915_v58  ;;  %v4917_v60 = vadd.f32 %v3871_v23, %v8386_v21  ;;  %v3971_v58 = vadd.f32 %v8356_v30, %v8394_v57 }
 0x3d5   :  { %v4270_v62 = vmax.f32 %v4269_v7, %v4916_v0  ;;  %v3973_v7 = vadd.f32 %v8358_v16, %v8389_v40  ;;  %v3979_v16 = vadd.f32 %v8362_v28, %v8389_v40 }
 0x3d6   :  { %v4283_v43 = vmax.f32 %v4282_v38, %v4917_v60  ;;  %v3975_v60 = vadd.f32 %v8360_v13, %v8394_v57  ;;  %v3983_v13 = vadd.f32 %v8366_v48, %v8389_v40  ;;  %v3991_v48 = vadd.f32 %v8372_v49, %v8394_v57 }
 0x3d8   :  { %v3875_v32 = vpop.f32.mrb[92].mxu1 }
 0x3d9   :  { %v4918_v5 = vadd.f32 %v3875_v32, %v8382_v14  ;;  %v3877_v12 = vpop.f32.mrb[93].mxu1 }
 0x3da   :  { %v4919_v33 = vadd.f32 %v3877_v12, %v8386_v21  ;;  %v3879_v47 = vpop.f32.mrb[94].mxu1 }
 0x3db   :  { %v4271_v29 = vmax.f32 %v4270_v62, %v4918_v5  ;;  %v4920_v45 = vadd.f32 %v3879_v47, %v8382_v14  ;;  %v3881_v44 = vpop.f32.mrb[95].mxu1 }
 0x3dc   :  { %v4284_v26 = vmax.f32 %v4283_v43, %v4919_v33  ;;  %v4921_v10 = vadd.f32 %v3881_v44, %v8386_v21  ;;  %v3965_v21 = vadd.f32 %v8352_v27, %v8394_v57  ;;  %v3981_v44 = vadd.f32 %v8364_v35, %v8394_v57 }
 0x3dd   :  { %v4272_v50 = vmax.f32 %v4271_v29, %v4920_v45  ;;  %v3989_v35 = vadd.f32 %v8370_v54, %v8389_v40 }
 0x3de   :  { %v4285_v3 = vmax.f32 %v4284_v26, %v4921_v10 }
 0x3df   :  { %v4273_v11 = vrot.slane %v4272_v50, 4 }
 0x3e0   :  { %v4286_v17 = vrot.slane %v4285_v3, 4  ;;  %v4071_v56 = vpop.f32.mrb[96].mxu1 }
 0x3e1   :  { %v4274_v20 = vmax.f32 %v4272_v50, %v4273_v11  ;;  %v4072_v14 = vadd.f32 %v4071_v56, %v3959_v61  ;;  %v4073_v1 = vpop.f32.mrb[97].mxu1 }
 0x3e2   :  { %v4287_v46 = vmax.f32 %v4285_v3, %v4286_v17  ;;  %v4074_v8 = vadd.f32 %v4073_v1, %v3961_v37  ;;  %v4075_v59 = vpop.f32.mrb[98].mxu1  ;;  %v3985_v3 = vadd.f32 %v8368_v52, %v8394_v57 }
 0x3e3   :  { %v4275_v51 = vrot.slane %v4274_v20, 2  ;;  %v4076_v36 = vadd.f32 %v4075_v59, %v3963_v6  ;;  %v4077_v25 = vpop.f32.mrb[99].mxu1 }
 0x3e4   :  { %v4288_v9 = vrot.slane %v4287_v46, 2  ;;  %v4078_v31 = vadd.f32 %v4077_v25, %v3965_v21  ;;  %v3993_v21 = vadd.f32 %v8375_v19, %v8389_v40 }
 0x3e5   :  { %v4276_v42 = vmax.f32 %v4274_v20, %v4275_v51  ;;  %v4292_v24 = vmax.f32 %v4072_v14, %v4076_v36 }
 0x3e6   :  { %v4289_v41 = vmax.f32 %v4287_v46, %v4288_v9  ;;  %v4305_v39 = vmax.f32 %v4074_v8, %v4078_v31  ;;  %v3995_v8 = vadd.f32 %v8378_v55, %v8394_v57 }
 0x3e7   :  { %v4277_v2 = vrot.slane %v4276_v42, 1 }
 0x3e8   :  { %v4290_v27 = vrot.slane %v4289_v41, 1  ;;  %v4081_v34 = vpop.f32.mrb[100].mxu1 }
 0x3e9   :  { %v4278_v0 = vmax.f32 %v4276_v42, %v4277_v2  ;;  %v4082_v23 = vadd.f32 %v4081_v34, %v3969_v4  ;;  %v4083_v38 = vpop.f32.mrb[101].mxu1 }
 0x3ea   :  { %v4291_v62 = vmax.f32 %v4289_v41, %v4290_v27  ;;  %v4084_v43 = vadd.f32 %v4083_v38, %v3971_v58  ;;  %v4085_v32 = vpop.f32.mrb[102].mxu1 }
 0x3eb   :  { %v4293_v5 = vmax.f32 %v4292_v24, %v4082_v23  ;;  %v4086_v63 = vadd.f32 %v4085_v32, %v3973_v7  ;;  %v4087_v12 = vpop.f32.mrb[103].mxu1 }
 0x3ec   :  { %v4385_v33 = vcombine.low %v4278_v0, %v4291_v62  ;;  %v4306_v47 = vmax.f32 %v4305_v39, %v4084_v43  ;;  %v4088_v30 = vadd.f32 %v4087_v12, %v3975_v60 }
 0x3ed   :  { %v4294_v29 = vmax.f32 %v4293_v5, %v4086_v63 }
 0x3ee   :  { %v4307_v45 = vmax.f32 %v4306_v47, %v4088_v30  ;;  %v4393_v0 = vrot.slane %v4385_v33, %v8303_v18 }
 0x3f0   :  { %v4091_v26 = vpop.f32.mrb[104].mxu1 }
 0x3f1   :  { %v4092_v10 = vadd.f32 %v4091_v26, %v3979_v16  ;;  %v4093_v50 = vpop.f32.mrb[105].mxu1 }
 0x3f2   :  { %v4094_v61 = vadd.f32 %v4093_v50, %v3981_v44  ;;  %v4095_v11 = vpop.f32.mrb[106].mxu1 }
 0x3f3   :  { %v4295_v37 = vmax.f32 %v4294_v29, %v4092_v10  ;;  %v4096_v17 = vadd.f32 %v4095_v11, %v3983_v13  ;;  %v4097_v56 = vpop.f32.mrb[107].mxu1 }
 0x3f4   :  { %v4308_v6 = vmax.f32 %v4307_v45, %v4094_v61  ;;  %v4098_v20 = vadd.f32 %v4097_v56, %v3985_v3 }
 0x3f5   :  { %v4296_v28 = vmax.f32 %v4295_v37, %v4096_v17 }
 0x3f6   :  { %v4309_v14 = vmax.f32 %v4308_v6, %v4098_v20 }
 0x3f8   :  { %v4101_v1 = vpop.f32.mrb[108].mxu1 }
 0x3f9   :  { %v4102_v52 = vadd.f32 %v4101_v1, %v3989_v35  ;;  %v4103_v46 = vpop.f32.mrb[109].mxu1 }
 0x3fa   :  { %v4104_v59 = vadd.f32 %v4103_v46, %v3991_v48  ;;  %v4105_v51 = vpop.f32.mrb[110].mxu1 }
 0x3fb   :  { %v4297_v36 = vmax.f32 %v4296_v28, %v4102_v52  ;;  %v4106_v25 = vadd.f32 %v4105_v51, %v3993_v21  ;;  %v4107_v9 = vpop.f32.mrb[111].mxu1 }
 0x3fc   :  { %v4310_v31 = vmax.f32 %v4309_v14, %v4104_v59  ;;  %v4108_v42 = vadd.f32 %v4107_v9, %v3995_v8 }
 0x3fd   :  { %v4298_v54 = vmax.f32 %v4297_v36, %v4106_v25 }
 0x3fe   :  { %v4311_v24 = vmax.f32 %v4310_v31, %v4108_v42 }
 0x3ff   :  { %v4299_v41 = vrot.slane %v4298_v54, 4 }
 0x400   :  { %v4312_v49 = vrot.slane %v4311_v24, 4 }
 0x401   :  { %v4300_v39 = vmax.f32 %v4298_v54, %v4299_v41 }
 0x402   :  { %v4313_v4 = vmax.f32 %v4311_v24, %v4312_v49 }
 0x403   :  { %v4301_v2 = vrot.slane %v4300_v39, 2 }
 0x404   :  { %v4314_v19 = vrot.slane %v4313_v4, 2 }
 0x405   :  { %v4302_v40 = vmax.f32 %v4300_v39, %v4301_v2 }
 0x406   :  { %v4315_v58 = vmax.f32 %v4313_v4, %v4314_v19 }
 0x407   :  { %v4303_v27 = vrot.slane %v4302_v40, 1 }
 0x408   :  { %v4316_v34 = vrot.slane %v4315_v58, 1 }
 0x409   :  { %v4304_v55 = vmax.f32 %v4302_v40, %v4303_v27 }
 0x40a   :  { %v4317_v57 = vmax.f32 %v4315_v58, %v4316_v34 }
 0x40c   :  { %v4386_v7 = vcombine.low %v4304_v55, %v4317_v57 }
 0x40e   :  { %v4400_v23 = vrot.slane %v4386_v7, %v8303_v18 }
 0x410   :  { %v4401_v38 = vcombine.low %v4393_v0, %v4400_v23 }
 0x412   :  { %v4417_v60 = vrot.slane %v4401_v38, 7 }
 0x414   :  { %v4418_v62 = vsel %vm4407_vm0, %v4417_v60, %v4367_v15 }
 0x415   :  { %v4419_v43 = vsel %vm4409_vm1, %v4417_v60, %v4418_v62 }
 0x416   :  { %v4420_v32 = vsel %vm4411_vm2, %v4417_v60, %v4419_v43 }
 0x417   :  { %v4421_v5 = vsel %vm4413_vm3, %v4417_v60, %v4420_v32 }
 0x418   :  { %4425 = vst [vmem:[#allocation3 + $0x8] sm:$0xff] %v4421_v5 }
 0x419   :  { %5270 = shalt.err (!%p5267_p4)
}
 0x41a   :  { %s5271_s5 = scalar_lea.hbm %s8512_s9, 256 }
 0x41b   :  { %p5272_p5 = scmp.ne.s32.totalorder %s8512_s9, %s5271_s5  ;;  %p5275_p6 = scmp.lt.u32.totalorder %s5271_s5, %s8512_s9 }
 0x41d   :  { %p5277_p7 = pnand %p5275_p6, %p5272_p5 }
 0x41f   :  { %5280 = shalt.err (!%p5277_p7)
}
 0x420   :  { %4435 = dma.vmem_to_hbm [thread:$0]  %s4433_s26, 256, %s8512_s9, [#allocation4]  }
 0x421   :  { %5281 = dma.done.wait [#allocation4], 256  }
 0x422   :  { %5282 = vsyncadd [#allocation4], 4294967040 }
 0x423   :  { %4439 = vsyncpa [#allocation4], 1 }

</bundles_post_ra>
